<compile_context>
chip_gen: v6e
topology: v6e:2x2x1
jax: 0.10.0
libtpu: 0.0.40
codegen_flags: <defaults>
</compile_context>

<pallas_src>
import functools

import numpy as np
import jax
import jax.numpy as jnp
from jax.experimental import pallas as pl
from jax.experimental.pallas import tpu as pltpu


# ----------------------------------------------------------------------------
# Fused decoder-stack kernel: grid axis = layer index, activation lives in VMEM.
# ----------------------------------------------------------------------------
def _decoder_kernel(x0_ref, enc_ref, smask_ref, cmask_ref,
                    wq_ref, bq_ref, wk_ref, bk_ref, wv_ref, bv_ref,
                    wo_ref, bo_ref, g1_ref, bt1_ref,
                    w1_ref, fb1_ref, w2_ref, fb2_ref, g2_ref, bt2_ref,
                    out_ref, x_sc, *, B, S, E, H):
    D = E // H
    layer = pl.program_id(0)

    # Layer 0: pull the embedded sequence into the VMEM-resident activation.
    @pl.when(layer == 0)
    def _():
        x_sc[...] = x0_ref[...]

    # This layer's weights (one (1, ...) block streamed per grid step).  They are
    # shared by the self- and cross-attention of the layer -> loaded from HBM once.
    wq = wq_ref[0]; bq = bq_ref[0]          # (E, E) bf16 / (1, E) f32
    wk = wk_ref[0]; bk = bk_ref[0]
    wv = wv_ref[0]; bv = bv_ref[0]
    wo = wo_ref[0]; bo = bo_ref[0]
    g1 = g1_ref[0]; bt1 = bt1_ref[0]        # (1, E)
    g2 = g2_ref[0]; bt2 = bt2_ref[0]
    mxu_dtype = wq.dtype

    def layer_norm(z, gamma, beta):         # z: (B*S, E) f32; gamma/beta: (1, E)
        mu = jnp.mean(z, axis=-1, keepdims=True)
        var = jnp.mean((z - mu) * (z - mu), axis=-1, keepdims=True)
        return (z - mu) * jax.lax.rsqrt(var + 1e-5) * gamma + beta

    def split_heads(t):                     # (B*S, E) -> (B*H, S, D), b-major
        return jnp.transpose(t.reshape(B, S, H, D), (0, 2, 1, 3)).reshape(B * H, S, D)

    def merge_heads(t):                     # (B*H, S, D) -> (B*S, E)
        return jnp.transpose(t.reshape(B, H, S, D), (0, 2, 1, 3)).reshape(B * S, E)

    def mha(q, kv, mask):                   # q, kv: (B*S, E) f32; mask: (B*H, S, S)
        qb = q.astype(mxu_dtype)
        kvb = kv.astype(mxu_dtype)
        # Fused head projections; the 1/sqrt(D) softmax scale is pre-folded into wq/bq.
        Q = jnp.dot(qb, wq, preferred_element_type=jnp.float32) + bq
        K = jnp.dot(kvb, wk, preferred_element_type=jnp.float32) + bk
        V = jnp.dot(kvb, wv, preferred_element_type=jnp.float32) + bv
        Qh = split_heads(Q).astype(mxu_dtype)
        Kh = split_heads(K).astype(mxu_dtype)
        Vh = split_heads(V).astype(mxu_dtype)
        s = jnp.einsum('zqd,zkd->zqk', Qh, Kh, preferred_element_type=jnp.float32)
        # masked_fill: finite large negative instead of -inf (no NaN on all-masked rows)
        s = jnp.where(mask > 0.5, -1e30, s)
        m = jnp.max(s, axis=-1, keepdims=True)
        e = jnp.exp(s - m)
        p = e * pl.reciprocal(jnp.sum(e, axis=-1, keepdims=True), approx=True)
        o = jnp.einsum('zqk,zkd->zqd', p.astype(mxu_dtype), Vh,
                       preferred_element_type=jnp.float32)
        # concat(heads) @ Wo as a single (B*S, E) @ (E, E) matmul
        proj = jnp.dot(merge_heads(o).astype(mxu_dtype), wo,
                       preferred_element_type=jnp.float32) + bo
        return layer_norm(q + proj, g1, bt1)            # residual = query

    x = x_sc[...]                                        # (B*S, E) f32
    x = mha(x, x, smask_ref[...])                        # self-attention
    x = mha(x, enc_ref[...], cmask_ref[...])             # cross-attention (same weights: module reuse)

    # Position-wise FFN: a distinct Linear pair per sequence position, no
    # nonlinearity (faithful to the PyTorch module), batched over S at once.
    w1 = w1_ref[0]; fb1 = fb1_ref[0]                     # (S, E, F) bf16 / (S, F) f32
    w2 = w2_ref[0]; fb2 = fb2_ref[0]                     # (S, F, E) bf16 / (S, E) f32
    xs = jnp.transpose(x.reshape(B, S, E), (1, 0, 2)).astype(mxu_dtype)   # (S, B, E)
    h = jnp.einsum('sbe,sef->sbf', xs, w1,
                   preferred_element_type=jnp.float32) + fb1[:, None, :]
    y = jnp.einsum('sbf,sfe->sbe', h.astype(mxu_dtype), w2,
                   preferred_element_type=jnp.float32) + fb2[:, None, :]
    z = jnp.transpose(y, (1, 0, 2)).reshape(B * S, E) + x                 # residual
    x = layer_norm(z, g2, bt2)

    x_sc[...] = x                                        # carry activation to next layer

    @pl.when(layer == pl.num_programs(0) - 1)
    def _():
        out_ref[...] = x.reshape(B, S, E)                # single whole-block store


def _layer_block_spec(arr):
    """Stream one layer's (1, ...) slice of a layer-stacked parameter per grid step."""
    nd = arr.ndim
    return pl.BlockSpec((1,) + tuple(arr.shape[1:]),
                        lambda l, _nd=nd: (l,) + (0,) * (_nd - 1))


def _whole_block_spec(arr):
    """Whole array resident in VMEM for every grid step (constant block index)."""
    nd = arr.ndim
    return pl.BlockSpec(tuple(arr.shape), lambda l, _nd=nd: (0,) * _nd)


def decoder_stack(x_emb, encoder_outputs, self_mask, ctx_mask, staged, num_heads):
    """One pallas_call over the whole decoder stack. x_emb/enc: (B, S, E)."""
    B, S, E = x_emb.shape
    H = num_heads
    L = staged["wq"].shape[0]

    x_flat = x_emb.reshape(B * S, E).astype(jnp.float32)
    enc_flat = encoder_outputs.reshape(B * S, E).astype(jnp.float32)
    # Expand masks over heads once here (hoisted out of the kernel), b-major.
    smask = jnp.broadcast_to(self_mask[:, None, :, :], (B, H, S, S)
                             ).reshape(B * H, S, S).astype(jnp.float32)
    cmask = jnp.broadcast_to(ctx_mask[:, None, :, :], (B, H, S, S)
                             ).reshape(B * H, S, S).astype(jnp.float32)

    operands = (x_flat, enc_flat, smask, cmask,
                staged["wq"], staged["bq"], staged["wk"], staged["bk"],
                staged["wv"], staged["bv"], staged["wo"], staged["bo"],
                staged["g1"], staged["bt1"],
                staged["w1"], staged["fb1"], staged["w2"], staged["fb2"],
                staged["g2"], staged["bt2"])

    in_specs = [_whole_block_spec(op) if i < 4 else _layer_block_spec(op)
                for i, op in enumerate(operands)]

    kernel = functools.partial(_decoder_kernel, B=B, S=S, E=E, H=H)

    # TODO(synk): for v7x megacore at large batch, add a leading "parallel" grid
    # axis over batch tiles; at B=2 the whole problem fits a single TensorCore.
    return pl.pallas_call(
        kernel,
        out_shape=jax.ShapeDtypeStruct((B, S, E), jnp.float32),
        grid_spec=pltpu.PrefetchScalarGridSpec(
            num_scalar_prefetch=0,
            grid=(L,),
            in_specs=in_specs,
            out_specs=pl.BlockSpec((B, S, E), lambda l: (0, 0, 0)),
            scratch_shapes=[pltpu.VMEM((B * S, E), jnp.float32)],
        ),
        compiler_params=pltpu.CompilerParams(
            dimension_semantics=("arbitrary",),   # layer axis carries x in VMEM scratch
        ),
    )(*operands)


# ----------------------------------------------------------------------------
# Parameter construction (deterministic, synthetic) + weight staging.
# Linear weights are stored pre-transposed, i.e. y = x @ W + b.
# ----------------------------------------------------------------------------
def make_pos_table(max_seq_len, embedding_dim):
    w = np.array([[pos / np.power(10000, 2.0 * (idx // 2) / embedding_dim)
                   for idx in range(embedding_dim)] for pos in range(max_seq_len)])
    w[:, 0::2] = np.sin(w[:, 0::2])
    w[:, 1::2] = np.cos(w[:, 1::2])
    return jnp.asarray(w, dtype=jnp.float32)


def init_params(key, vocab_size, max_seq_len, num_layers, E, H, F):
    """Module-shaped parameters (per-head Wq/Wk/Wv, per-position FFN linears)."""
    D = E // H
    counter = [0]

    def rnd(shape, scale=0.05):
        counter[0] += 1
        return jax.random.normal(jax.random.fold_in(key, counter[0]),
                                 shape, dtype=jnp.float32) * scale

    embedding = rnd((vocab_size, E), 1.0).at[0].set(0.0)   # padding_idx=0 row is zero
    params = {"embedding": embedding,
              "pos_table": make_pos_table(max_seq_len, E),
              "layers": []}
    for _ in range(num_layers):
        attn = {"wq": rnd((H, E, D)), "bq": rnd((H, D)),
                "wk": rnd((H, E, D)), "bk": rnd((H, D)),
                "wv": rnd((H, E, D)), "bv": rnd((H, D)),
                "wo": rnd((E, E)),    "bo": rnd((E,)),
                "gamma": jnp.ones((E,), jnp.float32), "beta": jnp.zeros((E,), jnp.float32)}
        ffn = {"w1": rnd((max_seq_len, E, F)), "b1": rnd((max_seq_len, F)),
               "w2": rnd((max_seq_len, F, E)), "b2": rnd((max_seq_len, E)),
               "gamma": jnp.ones((E,), jnp.float32), "beta": jnp.zeros((E,), jnp.float32)}
        params["layers"].append({"attn": attn, "ffn": ffn})
    return params


def stage_params(params, num_heads, mxu_dtype=jnp.bfloat16):
    """Fuse heads into (E,E) matrices, fold 1/sqrt(D) into Wq/bq, stack layers, and
    cast the matmul weights to the MXU input dtype (f32 accumulation in-kernel)."""
    layers = params["layers"]
    E = layers[0]["attn"]["wo"].shape[0]
    D = E // num_heads
    scale = 1.0 / np.sqrt(D)

    def fuse_w(w):   # (H, E, D) -> (E, H*D): head h occupies columns [h*D, (h+1)*D)
        return jnp.transpose(w, (1, 0, 2)).reshape(E, E)

    def stack(fn):
        return jnp.stack([fn(lp) for lp in layers], axis=0)

    return {
        "wq": stack(lambda lp: fuse_w(lp["attn"]["wq"]) * scale).astype(mxu_dtype),
        "bq": stack(lambda lp: (lp["attn"]["bq"].reshape(1, E) * scale)),
        "wk": stack(lambda lp: fuse_w(lp["attn"]["wk"])).astype(mxu_dtype),
        "bk": stack(lambda lp: lp["attn"]["bk"].reshape(1, E)),
        "wv": stack(lambda lp: fuse_w(lp["attn"]["wv"])).astype(mxu_dtype),
        "bv": stack(lambda lp: lp["attn"]["bv"].reshape(1, E)),
        "wo": stack(lambda lp: lp["attn"]["wo"]).astype(mxu_dtype),
        "bo": stack(lambda lp: lp["attn"]["bo"].reshape(1, E)),
        "g1": stack(lambda lp: lp["attn"]["gamma"].reshape(1, E)),
        "bt1": stack(lambda lp: lp["attn"]["beta"].reshape(1, E)),
        "w1": stack(lambda lp: lp["ffn"]["w1"]).astype(mxu_dtype),
        "fb1": stack(lambda lp: lp["ffn"]["b1"]),
        "w2": stack(lambda lp: lp["ffn"]["w2"]).astype(mxu_dtype),
        "fb2": stack(lambda lp: lp["ffn"]["b2"]),
        "g2": stack(lambda lp: lp["ffn"]["gamma"].reshape(1, E)),
        "bt2": stack(lambda lp: lp["ffn"]["beta"].reshape(1, E)),
    }


# ----------------------------------------------------------------------------
# Decoder forward (embedding / positional / mask glue in plain JAX; the whole
# layer stack runs inside the single fused Pallas kernel above).
# ----------------------------------------------------------------------------
def decoder_forward(params, staged, num_heads, encoder_outputs, decoder_seq,
                    decoder_seq_length, context_mask):
    B, S = decoder_seq.shape

    # embedding + positional encoding (positions beyond length use position 0)
    emb = params["embedding"][decoder_seq]                           # (B, S, E)
    pos_ids = np.zeros((B, S), dtype=np.int32)
    for b, L in enumerate(decoder_seq_length):
        pos_ids[b, :L] = np.arange(L)
    x = emb + params["pos_table"][jnp.asarray(pos_ids)]

    # self mask = key-padding mask OR future (causal) mask
    pad = (decoder_seq == 0)[:, None, :].astype(jnp.int32)           # (B, 1, S)
    fut = jnp.triu(jnp.ones((S, S), dtype=jnp.int32), k=1)[None]     # (1, S, S)
    self_mask = jnp.broadcast_to(((pad + fut) > 0), (B, S, S)).astype(jnp.float32)
    ctx_mask = context_mask.astype(jnp.float32)

    return decoder_stack(x, encoder_outputs, self_mask, ctx_mask, staged, num_heads)


if __name__ == "__main__":
    vocab_size, max_seq_len, num_layers = 50, 8, 2
    embedding_dim, num_heads, FFN_dim = 32, 4, 64
    B, S = 2, max_seq_len

    key = jax.random.PRNGKey(0)
    k_par, k_tok, k_enc_tok, k_enc = jax.random.split(key, 4)

    params = init_params(k_par, vocab_size, max_seq_len, num_layers,
                         embedding_dim, num_heads, FFN_dim)
    staged = stage_params(params, num_heads)

    # decoder tokens with padding (token 0) beyond each sequence length
    decoder_seq_length = [8, 5]
    tokens = jax.random.randint(k_tok, (B, S), 1, vocab_size, dtype=jnp.int32)
    len_arr = jnp.asarray(decoder_seq_length)[:, None]
    decoder_seq = jnp.where(jnp.arange(S)[None, :] < len_arr, tokens, 0)

    # encoder side: outputs + padding-based context mask
    enc_lengths = jnp.asarray([8, 6])[:, None]
    enc_tokens = jax.random.randint(k_enc_tok, (B, S), 1, vocab_size, dtype=jnp.int32)
    enc_tokens = jnp.where(jnp.arange(S)[None, :] < enc_lengths, enc_tokens, 0)
    encoder_outputs = jax.random.normal(k_enc, (B, S, embedding_dim), dtype=jnp.float32)
    context_mask = jnp.broadcast_to((enc_tokens == 0)[:, None, :], (B, S, S))

    out = decoder_forward(params, staged, num_heads, encoder_outputs, decoder_seq,
                          decoder_seq_length, context_mask)
    out = jax.block_until_ready(out)

    assert out.shape == (B, S, embedding_dim)
    assert bool(jnp.all(jnp.isfinite(out)))
    print("KERNEL_OK")
</pallas_src>

<mosaic_0001>
module attributes {stable_mosaic.version = 11 : i64} {
  func.func @_decoder_kernel(%arg0: i32, %arg1: memref<16x32xf32, #tpu.memory_space<vmem>>, %arg2: memref<16x32xf32, #tpu.memory_space<vmem>>, %arg3: memref<8x8x8xf32, #tpu.memory_space<vmem>>, %arg4: memref<8x8x8xf32, #tpu.memory_space<vmem>>, %arg5: memref<1x32x32xbf16, #tpu.memory_space<vmem>>, %arg6: memref<1x1x32xf32, #tpu.memory_space<vmem>>, %arg7: memref<1x32x32xbf16, #tpu.memory_space<vmem>>, %arg8: memref<1x1x32xf32, #tpu.memory_space<vmem>>, %arg9: memref<1x32x32xbf16, #tpu.memory_space<vmem>>, %arg10: memref<1x1x32xf32, #tpu.memory_space<vmem>>, %arg11: memref<1x32x32xbf16, #tpu.memory_space<vmem>>, %arg12: memref<1x1x32xf32, #tpu.memory_space<vmem>>, %arg13: memref<1x1x32xf32, #tpu.memory_space<vmem>>, %arg14: memref<1x1x32xf32, #tpu.memory_space<vmem>>, %arg15: memref<1x8x32x64xbf16, #tpu.memory_space<vmem>>, %arg16: memref<1x8x64xf32, #tpu.memory_space<vmem>>, %arg17: memref<1x8x64x32xbf16, #tpu.memory_space<vmem>>, %arg18: memref<1x8x32xf32, #tpu.memory_space<vmem>>, %arg19: memref<1x1x32xf32, #tpu.memory_space<vmem>>, %arg20: memref<1x1x32xf32, #tpu.memory_space<vmem>>, %arg21: memref<2x8x32xf32, #tpu.memory_space<vmem>>, %arg22: memref<16x32xf32, #tpu.memory_space<vmem>>) attributes {dimension_semantics = [#tpu.dimension_semantics<arbitrary>], iteration_bounds = array<i64: 2>, scalar_prefetch = 0 : i64, scratch_operands = 1 : i64, tpu.core_type = #tpu.core_type<tc>, window_params = [{pipeline_mode = #tpu.pipeline_mode<synchronous>, transform_indices = @transform_0, window_bounds = array<i64: 16, 32>}, {pipeline_mode = #tpu.pipeline_mode<synchronous>, transform_indices = @transform_1, window_bounds = array<i64: 16, 32>}, {pipeline_mode = #tpu.pipeline_mode<synchronous>, transform_indices = @transform_2, window_bounds = array<i64: 8, 8, 8>}, {pipeline_mode = #tpu.pipeline_mode<synchronous>, transform_indices = @transform_3, window_bounds = array<i64: 8, 8, 8>}, {transform_indices = @transform_4, window_bounds = array<i64: 1, 32, 32>}, {transform_indices = @transform_5, window_bounds = array<i64: 1, 1, 32>}, {transform_indices = @transform_6, window_bounds = array<i64: 1, 32, 32>}, {transform_indices = @transform_7, window_bounds = array<i64: 1, 1, 32>}, {transform_indices = @transform_8, window_bounds = array<i64: 1, 32, 32>}, {transform_indices = @transform_9, window_bounds = array<i64: 1, 1, 32>}, {transform_indices = @transform_10, window_bounds = array<i64: 1, 32, 32>}, {transform_indices = @transform_11, window_bounds = array<i64: 1, 1, 32>}, {transform_indices = @transform_12, window_bounds = array<i64: 1, 1, 32>}, {transform_indices = @transform_13, window_bounds = array<i64: 1, 1, 32>}, {transform_indices = @transform_14, window_bounds = array<i64: 1, 8, 32, 64>}, {transform_indices = @transform_15, window_bounds = array<i64: 1, 8, 64>}, {transform_indices = @transform_16, window_bounds = array<i64: 1, 8, 64, 32>}, {transform_indices = @transform_17, window_bounds = array<i64: 1, 8, 32>}, {transform_indices = @transform_18, window_bounds = array<i64: 1, 1, 32>}, {transform_indices = @transform_19, window_bounds = array<i64: 1, 1, 32>}, {pipeline_mode = #tpu.pipeline_mode<synchronous>, transform_indices = @transform_20, window_bounds = array<i64: 2, 8, 32>}]} {
    %c0_i32 = arith.constant 0 : i32
    %0 = arith.cmpi eq, %arg0, %c0_i32 : i32
    %1 = arith.extui %0 : i1 to i32
    %c0_i32_0 = arith.constant 0 : i32
    %2 = arith.cmpi ne, %1, %c0_i32_0 : i32
    scf.if %2 {
      %c0_99 = arith.constant 0 : index
      %c0_100 = arith.constant 0 : index
      %226 = vector.load %arg1[%c0_99, %c0_100] : memref<16x32xf32, #tpu.memory_space<vmem>>, vector<16x32xf32>
      %c0_101 = arith.constant 0 : index
      %c0_102 = arith.constant 0 : index
      %227 = vector.load %arg22[%c0_101, %c0_102] : memref<16x32xf32, #tpu.memory_space<vmem>>, vector<16x32xf32>
      tpu.vector_store %arg22[%c0_101, %c0_102], %226 {strides = array<i32>} : memref<16x32xf32, #tpu.memory_space<vmem>>, vector<16x32xf32>,
    } else {
    }
    %c0 = arith.constant 0 : index
    %c0_1 = arith.constant 0 : index
    %c0_2 = arith.constant 0 : index
    %3 = vector.load %arg5[%c0, %c0_1, %c0_2] : memref<1x32x32xbf16, #tpu.memory_space<vmem>>, vector<1x32x32xbf16>
    %4 = vector.shape_cast %3 : vector<1x32x32xbf16> to vector<32x32xbf16>
    %c0_3 = arith.constant 0 : index
    %c0_4 = arith.constant 0 : index
    %c0_5 = arith.constant 0 : index
    %5 = vector.load %arg6[%c0_3, %c0_4, %c0_5] : memref<1x1x32xf32, #tpu.memory_space<vmem>>, vector<1x1x32xf32>
    %6 = vector.shape_cast %5 : vector<1x1x32xf32> to vector<1x32xf32>
    %c0_6 = arith.constant 0 : index
    %c0_7 = arith.constant 0 : index
    %c0_8 = arith.constant 0 : index
    %7 = vector.load %arg7[%c0_6, %c0_7, %c0_8] : memref<1x32x32xbf16, #tpu.memory_space<vmem>>, vector<1x32x32xbf16>
    %8 = vector.shape_cast %7 : vector<1x32x32xbf16> to vector<32x32xbf16>
    %c0_9 = arith.constant 0 : index
    %c0_10 = arith.constant 0 : index
    %c0_11 = arith.constant 0 : index
    %9 = vector.load %arg8[%c0_9, %c0_10, %c0_11] : memref<1x1x32xf32, #tpu.memory_space<vmem>>, vector<1x1x32xf32>
    %10 = vector.shape_cast %9 : vector<1x1x32xf32> to vector<1x32xf32>
    %c0_12 = arith.constant 0 : index
    %c0_13 = arith.constant 0 : index
    %c0_14 = arith.constant 0 : index
    %11 = vector.load %arg9[%c0_12, %c0_13, %c0_14] : memref<1x32x32xbf16, #tpu.memory_space<vmem>>, vector<1x32x32xbf16>
    %12 = vector.shape_cast %11 : vector<1x32x32xbf16> to vector<32x32xbf16>
    %c0_15 = arith.constant 0 : index
    %c0_16 = arith.constant 0 : index
    %c0_17 = arith.constant 0 : index
    %13 = vector.load %arg10[%c0_15, %c0_16, %c0_17] : memref<1x1x32xf32, #tpu.memory_space<vmem>>, vector<1x1x32xf32>
    %14 = vector.shape_cast %13 : vector<1x1x32xf32> to vector<1x32xf32>
    %c0_18 = arith.constant 0 : index
    %c0_19 = arith.constant 0 : index
    %c0_20 = arith.constant 0 : index
    %15 = vector.load %arg11[%c0_18, %c0_19, %c0_20] : memref<1x32x32xbf16, #tpu.memory_space<vmem>>, vector<1x32x32xbf16>
    %16 = vector.shape_cast %15 : vector<1x32x32xbf16> to vector<32x32xbf16>
    %c0_21 = arith.constant 0 : index
    %c0_22 = arith.constant 0 : index
    %c0_23 = arith.constant 0 : index
    %17 = vector.load %arg12[%c0_21, %c0_22, %c0_23] : memref<1x1x32xf32, #tpu.memory_space<vmem>>, vector<1x1x32xf32>
    %18 = vector.shape_cast %17 : vector<1x1x32xf32> to vector<1x32xf32>
    %c0_24 = arith.constant 0 : index
    %c0_25 = arith.constant 0 : index
    %c0_26 = arith.constant 0 : index
    %19 = vector.load %arg13[%c0_24, %c0_25, %c0_26] : memref<1x1x32xf32, #tpu.memory_space<vmem>>, vector<1x1x32xf32>
    %20 = vector.shape_cast %19 : vector<1x1x32xf32> to vector<1x32xf32>
    %c0_27 = arith.constant 0 : index
    %c0_28 = arith.constant 0 : index
    %c0_29 = arith.constant 0 : index
    %21 = vector.load %arg14[%c0_27, %c0_28, %c0_29] : memref<1x1x32xf32, #tpu.memory_space<vmem>>, vector<1x1x32xf32>
    %22 = vector.shape_cast %21 : vector<1x1x32xf32> to vector<1x32xf32>
    %c0_30 = arith.constant 0 : index
    %c0_31 = arith.constant 0 : index
    %c0_32 = arith.constant 0 : index
    %23 = vector.load %arg19[%c0_30, %c0_31, %c0_32] : memref<1x1x32xf32, #tpu.memory_space<vmem>>, vector<1x1x32xf32>
    %24 = vector.shape_cast %23 : vector<1x1x32xf32> to vector<1x32xf32>
    %c0_33 = arith.constant 0 : index
    %c0_34 = arith.constant 0 : index
    %c0_35 = arith.constant 0 : index
    %25 = vector.load %arg20[%c0_33, %c0_34, %c0_35] : memref<1x1x32xf32, #tpu.memory_space<vmem>>, vector<1x1x32xf32>
    %26 = vector.shape_cast %25 : vector<1x1x32xf32> to vector<1x32xf32>
    %c0_36 = arith.constant 0 : index
    %c0_37 = arith.constant 0 : index
    %27 = vector.load %arg22[%c0_36, %c0_37] : memref<16x32xf32, #tpu.memory_space<vmem>>, vector<16x32xf32>
    %c0_38 = arith.constant 0 : index
    %c0_39 = arith.constant 0 : index
    %c0_40 = arith.constant 0 : index
    %28 = vector.load %arg3[%c0_38, %c0_39, %c0_40] : memref<8x8x8xf32, #tpu.memory_space<vmem>>, vector<8x8x8xf32>
    %29 = arith.truncf %27 : vector<16x32xf32> to vector<16x32xbf16>
    %30 = arith.truncf %27 : vector<16x32xf32> to vector<16x32xbf16>
    %cst = arith.constant dense<0.000000e+00> : vector<16x32xf32>
    %31 = tpu.matmul %29, %4, %cst {dimension_numbers = #tpu.dot_dimension_numbers<[1], [0], [0], [1], [0, 0, 1, 1], [], []>} : vector<16x32xbf16>, vector<32x32xbf16>, vector<16x32xf32> -> vector<16x32xf32>
    %32 = vector.broadcast %6 : vector<1x32xf32> to vector<16x32xf32>
    %33 = arith.addf %31, %32 : vector<16x32xf32>
    %cst_41 = arith.constant dense<0.000000e+00> : vector<16x32xf32>
    %34 = tpu.matmul %30, %8, %cst_41 {dimension_numbers = #tpu.dot_dimension_numbers<[1], [0], [0], [1], [0, 0, 1, 1], [], []>} : vector<16x32xbf16>, vector<32x32xbf16>, vector<16x32xf32> -> vector<16x32xf32>
    %35 = vector.broadcast %10 : vector<1x32xf32> to vector<16x32xf32>
    %36 = arith.addf %34, %35 : vector<16x32xf32>
    %cst_42 = arith.constant dense<0.000000e+00> : vector<16x32xf32>
    %37 = tpu.matmul %30, %12, %cst_42 {dimension_numbers = #tpu.dot_dimension_numbers<[1], [0], [0], [1], [0, 0, 1, 1], [], []>} : vector<16x32xbf16>, vector<32x32xbf16>, vector<16x32xf32> -> vector<16x32xf32>
    %38 = vector.broadcast %14 : vector<1x32xf32> to vector<16x32xf32>
    %39 = arith.addf %37, %38 : vector<16x32xf32>
    %40 = vector.shape_cast %33 : vector<16x32xf32> to vector<2x8x4x8xf32>
    %41 = tpu.transpose %40, [0, 2, 1, 3] : vector<2x8x4x8xf32> -> vector<2x4x8x8xf32>
    %42 = vector.shape_cast %41 : vector<2x4x8x8xf32> to vector<8x8x8xf32>
    %43 = arith.truncf %42 : vector<8x8x8xf32> to vector<8x8x8xbf16>
    %44 = vector.shape_cast %36 : vector<16x32xf32> to vector<2x8x4x8xf32>
    %45 = tpu.transpose %44, [0, 2, 1, 3] : vector<2x8x4x8xf32> -> vector<2x4x8x8xf32>
    %46 = vector.shape_cast %45 : vector<2x4x8x8xf32> to vector<8x8x8xf32>
    %47 = arith.truncf %46 : vector<8x8x8xf32> to vector<8x8x8xbf16>
    %48 = vector.shape_cast %39 : vector<16x32xf32> to vector<2x8x4x8xf32>
    %49 = tpu.transpose %48, [0, 2, 1, 3] : vector<2x8x4x8xf32> -> vector<2x4x8x8xf32>
    %50 = vector.shape_cast %49 : vector<2x4x8x8xf32> to vector<8x8x8xf32>
    %51 = arith.truncf %50 : vector<8x8x8xf32> to vector<8x8x8xbf16>
    "tpu.trace_start"() <{level = 10 : i32, message = "zqd,zkd->zqk"}> : () -> ()
    %cst_43 = arith.constant dense<0.000000e+00> : vector<8x8x8xf32>
    %52 = tpu.matmul %43, %47, %cst_43 {dimension_numbers = #tpu.dot_dimension_numbers<[2], [2], [1], [1], [0, 0, 0, 1, 1, 1], [0], [0]>} : vector<8x8x8xbf16>, vector<8x8x8xbf16>, vector<8x8x8xf32> -> vector<8x8x8xf32>
    %cst_44 = arith.constant 5.000000e-01 : f32
    "tpu.trace_stop"() : () -> ()
    %53 = vector.broadcast %cst_44 : f32 to vector<8x8x8xf32>
    %54 = arith.cmpf ogt, %28, %53 : vector<8x8x8xf32>
    %cst_45 = arith.constant -1.000000e+30 : f32
    %55 = vector.broadcast %cst_45 : f32 to vector<8x8x8xf32>
    %56 = arith.select %54, %55, %52 : vector<8x8x8xi1>, vector<8x8x8xf32>
    %cst_46 = arith.constant dense<0xFF800000> : vector<8x8xf32>
    %57 = vector.multi_reduction <maximumf>, %56, %cst_46 [2] : vector<8x8x8xf32> to vector<8x8xf32>
    %58 = vector.shape_cast %57 : vector<8x8xf32> to vector<8x8x1xf32>
    %59 = vector.broadcast %58 : vector<8x8x1xf32> to vector<8x8x8xf32>
    %60 = arith.subf %56, %59 : vector<8x8x8xf32>
    %61 = math.exp %60 : vector<8x8x8xf32>
    %cst_47 = arith.constant dense<0.000000e+00> : vector<8x8xf32>
    %62 = vector.multi_reduction <add>, %61, %cst_47 [2] : vector<8x8x8xf32> to vector<8x8xf32>
    %63 = vector.shape_cast %62 : vector<8x8xf32> to vector<8x8x1xf32>
    %64 = tpu.reciprocal %63 {approx = true} : vector<8x8x1xf32> -> vector<8x8x1xf32>
    %65 = vector.broadcast %64 : vector<8x8x1xf32> to vector<8x8x8xf32>
    %66 = arith.mulf %61, %65 : vector<8x8x8xf32>
    %67 = arith.truncf %66 : vector<8x8x8xf32> to vector<8x8x8xbf16>
    "tpu.trace_start"() <{level = 10 : i32, message = "zqk,zkd->zqd"}> : () -> ()
    %cst_48 = arith.constant dense<0.000000e+00> : vector<8x8x8xf32>
    %68 = tpu.matmul %67, %51, %cst_48 {dimension_numbers = #tpu.dot_dimension_numbers<[2], [1], [1], [2], [0, 0, 0, 1, 1, 2], [0], [0]>} : vector<8x8x8xbf16>, vector<8x8x8xbf16>, vector<8x8x8xf32> -> vector<8x8x8xf32>
    "tpu.trace_stop"() : () -> ()
    %69 = vector.shape_cast %68 : vector<8x8x8xf32> to vector<2x4x8x8xf32>
    %70 = tpu.transpose %69, [0, 2, 1, 3] : vector<2x4x8x8xf32> -> vector<2x8x4x8xf32>
    %71 = vector.shape_cast %70 : vector<2x8x4x8xf32> to vector<16x32xf32>
    %72 = arith.truncf %71 : vector<16x32xf32> to vector<16x32xbf16>
    %cst_49 = arith.constant dense<0.000000e+00> : vector<16x32xf32>
    %73 = tpu.matmul %72, %16, %cst_49 {dimension_numbers = #tpu.dot_dimension_numbers<[1], [0], [0], [1], [0, 0, 1, 1], [], []>} : vector<16x32xbf16>, vector<32x32xbf16>, vector<16x32xf32> -> vector<16x32xf32>
    %74 = vector.broadcast %18 : vector<1x32xf32> to vector<16x32xf32>
    %75 = arith.addf %73, %74 : vector<16x32xf32>
    %76 = arith.addf %27, %75 : vector<16x32xf32>
    %cst_50 = arith.constant dense<0.000000e+00> : vector<16xf32>
    %77 = vector.multi_reduction <add>, %76, %cst_50 [1] : vector<16x32xf32> to vector<16xf32>
    %78 = vector.shape_cast %77 : vector<16xf32> to vector<16x1xf32>
    %cst_51 = arith.constant 3.200000e+01 : f32
    %79 = vector.broadcast %cst_51 : f32 to vector<16x1xf32>
    %80 = arith.divf %78, %79 : vector<16x1xf32>
    %81 = vector.broadcast %80 : vector<16x1xf32> to vector<16x32xf32>
    %82 = arith.subf %76, %81 : vector<16x32xf32>
    %83 = vector.broadcast %80 : vector<16x1xf32> to vector<16x32xf32>
    %84 = arith.subf %76, %83 : vector<16x32xf32>
    %85 = arith.mulf %82, %84 : vector<16x32xf32>
    %cst_52 = arith.constant dense<0.000000e+00> : vector<16xf32>
    %86 = vector.multi_reduction <add>, %85, %cst_52 [1] : vector<16x32xf32> to vector<16xf32>
    %87 = vector.shape_cast %86 : vector<16xf32> to vector<16x1xf32>
    %cst_53 = arith.constant 3.200000e+01 : f32
    %88 = vector.broadcast %cst_53 : f32 to vector<16x1xf32>
    %89 = arith.divf %87, %88 : vector<16x1xf32>
    %90 = vector.broadcast %80 : vector<16x1xf32> to vector<16x32xf32>
    %91 = arith.subf %76, %90 : vector<16x32xf32>
    %cst_54 = arith.constant 9.99999974E-6 : f32
    %92 = vector.broadcast %cst_54 : f32 to vector<16x1xf32>
    %93 = arith.addf %89, %92 : vector<16x1xf32>
    %94 = math.rsqrt %93 : vector<16x1xf32>
    %95 = vector.broadcast %94 : vector<16x1xf32> to vector<16x32xf32>
    %96 = arith.mulf %91, %95 : vector<16x32xf32>
    %97 = vector.broadcast %20 : vector<1x32xf32> to vector<16x32xf32>
    %98 = arith.mulf %96, %97 : vector<16x32xf32>
    %99 = vector.broadcast %22 : vector<1x32xf32> to vector<16x32xf32>
    %100 = arith.addf %98, %99 : vector<16x32xf32>
    %c0_55 = arith.constant 0 : index
    %c0_56 = arith.constant 0 : index
    %101 = vector.load %arg2[%c0_55, %c0_56] : memref<16x32xf32, #tpu.memory_space<vmem>>, vector<16x32xf32>
    %c0_57 = arith.constant 0 : index
    %c0_58 = arith.constant 0 : index
    %c0_59 = arith.constant 0 : index
    %102 = vector.load %arg4[%c0_57, %c0_58, %c0_59] : memref<8x8x8xf32, #tpu.memory_space<vmem>>, vector<8x8x8xf32>
    %103 = arith.truncf %100 : vector<16x32xf32> to vector<16x32xbf16>
    %104 = arith.truncf %101 : vector<16x32xf32> to vector<16x32xbf16>
    %cst_60 = arith.constant dense<0.000000e+00> : vector<16x32xf32>
    %105 = tpu.matmul %103, %4, %cst_60 {dimension_numbers = #tpu.dot_dimension_numbers<[1], [0], [0], [1], [0, 0, 1, 1], [], []>} : vector<16x32xbf16>, vector<32x32xbf16>, vector<16x32xf32> -> vector<16x32xf32>
    %106 = vector.broadcast %6 : vector<1x32xf32> to vector<16x32xf32>
    %107 = arith.addf %105, %106 : vector<16x32xf32>
    %cst_61 = arith.constant dense<0.000000e+00> : vector<16x32xf32>
    %108 = tpu.matmul %104, %8, %cst_61 {dimension_numbers = #tpu.dot_dimension_numbers<[1], [0], [0], [1], [0, 0, 1, 1], [], []>} : vector<16x32xbf16>, vector<32x32xbf16>, vector<16x32xf32> -> vector<16x32xf32>
    %109 = vector.broadcast %10 : vector<1x32xf32> to vector<16x32xf32>
    %110 = arith.addf %108, %109 : vector<16x32xf32>
    %cst_62 = arith.constant dense<0.000000e+00> : vector<16x32xf32>
    %111 = tpu.matmul %104, %12, %cst_62 {dimension_numbers = #tpu.dot_dimension_numbers<[1], [0], [0], [1], [0, 0, 1, 1], [], []>} : vector<16x32xbf16>, vector<32x32xbf16>, vector<16x32xf32> -> vector<16x32xf32>
    %112 = vector.broadcast %14 : vector<1x32xf32> to vector<16x32xf32>
    %113 = arith.addf %111, %112 : vector<16x32xf32>
    %114 = vector.shape_cast %107 : vector<16x32xf32> to vector<2x8x4x8xf32>
    %115 = tpu.transpose %114, [0, 2, 1, 3] : vector<2x8x4x8xf32> -> vector<2x4x8x8xf32>
    %116 = vector.shape_cast %115 : vector<2x4x8x8xf32> to vector<8x8x8xf32>
    %117 = arith.truncf %116 : vector<8x8x8xf32> to vector<8x8x8xbf16>
    %118 = vector.shape_cast %110 : vector<16x32xf32> to vector<2x8x4x8xf32>
    %119 = tpu.transpose %118, [0, 2, 1, 3] : vector<2x8x4x8xf32> -> vector<2x4x8x8xf32>
    %120 = vector.shape_cast %119 : vector<2x4x8x8xf32> to vector<8x8x8xf32>
    %121 = arith.truncf %120 : vector<8x8x8xf32> to vector<8x8x8xbf16>
    %122 = vector.shape_cast %113 : vector<16x32xf32> to vector<2x8x4x8xf32>
    %123 = tpu.transpose %122, [0, 2, 1, 3] : vector<2x8x4x8xf32> -> vector<2x4x8x8xf32>
    %124 = vector.shape_cast %123 : vector<2x4x8x8xf32> to vector<8x8x8xf32>
    %125 = arith.truncf %124 : vector<8x8x8xf32> to vector<8x8x8xbf16>
    "tpu.trace_start"() <{level = 10 : i32, message = "zqd,zkd->zqk"}> : () -> ()
    %cst_63 = arith.constant dense<0.000000e+00> : vector<8x8x8xf32>
    %126 = tpu.matmul %117, %121, %cst_63 {dimension_numbers = #tpu.dot_dimension_numbers<[2], [2], [1], [1], [0, 0, 0, 1, 1, 1], [0], [0]>} : vector<8x8x8xbf16>, vector<8x8x8xbf16>, vector<8x8x8xf32> -> vector<8x8x8xf32>
    %cst_64 = arith.constant 5.000000e-01 : f32
    "tpu.trace_stop"() : () -> ()
    %127 = vector.broadcast %cst_64 : f32 to vector<8x8x8xf32>
    %128 = arith.cmpf ogt, %102, %127 : vector<8x8x8xf32>
    %cst_65 = arith.constant -1.000000e+30 : f32
    %129 = vector.broadcast %cst_65 : f32 to vector<8x8x8xf32>
    %130 = arith.select %128, %129, %126 : vector<8x8x8xi1>, vector<8x8x8xf32>
    %cst_66 = arith.constant dense<0xFF800000> : vector<8x8xf32>
    %131 = vector.multi_reduction <maximumf>, %130, %cst_66 [2] : vector<8x8x8xf32> to vector<8x8xf32>
    %132 = vector.shape_cast %131 : vector<8x8xf32> to vector<8x8x1xf32>
    %133 = vector.broadcast %132 : vector<8x8x1xf32> to vector<8x8x8xf32>
    %134 = arith.subf %130, %133 : vector<8x8x8xf32>
    %135 = math.exp %134 : vector<8x8x8xf32>
    %cst_67 = arith.constant dense<0.000000e+00> : vector<8x8xf32>
    %136 = vector.multi_reduction <add>, %135, %cst_67 [2] : vector<8x8x8xf32> to vector<8x8xf32>
    %137 = vector.shape_cast %136 : vector<8x8xf32> to vector<8x8x1xf32>
    %138 = tpu.reciprocal %137 {approx = true} : vector<8x8x1xf32> -> vector<8x8x1xf32>
    %139 = vector.broadcast %138 : vector<8x8x1xf32> to vector<8x8x8xf32>
    %140 = arith.mulf %135, %139 : vector<8x8x8xf32>
    %141 = arith.truncf %140 : vector<8x8x8xf32> to vector<8x8x8xbf16>
    "tpu.trace_start"() <{level = 10 : i32, message = "zqk,zkd->zqd"}> : () -> ()
    %cst_68 = arith.constant dense<0.000000e+00> : vector<8x8x8xf32>
    %142 = tpu.matmul %141, %125, %cst_68 {dimension_numbers = #tpu.dot_dimension_numbers<[2], [1], [1], [2], [0, 0, 0, 1, 1, 2], [0], [0]>} : vector<8x8x8xbf16>, vector<8x8x8xbf16>, vector<8x8x8xf32> -> vector<8x8x8xf32>
    "tpu.trace_stop"() : () -> ()
    %143 = vector.shape_cast %142 : vector<8x8x8xf32> to vector<2x4x8x8xf32>
    %144 = tpu.transpose %143, [0, 2, 1, 3] : vector<2x4x8x8xf32> -> vector<2x8x4x8xf32>
    %145 = vector.shape_cast %144 : vector<2x8x4x8xf32> to vector<16x32xf32>
    %146 = arith.truncf %145 : vector<16x32xf32> to vector<16x32xbf16>
    %cst_69 = arith.constant dense<0.000000e+00> : vector<16x32xf32>
    %147 = tpu.matmul %146, %16, %cst_69 {dimension_numbers = #tpu.dot_dimension_numbers<[1], [0], [0], [1], [0, 0, 1, 1], [], []>} : vector<16x32xbf16>, vector<32x32xbf16>, vector<16x32xf32> -> vector<16x32xf32>
    %148 = vector.broadcast %18 : vector<1x32xf32> to vector<16x32xf32>
    %149 = arith.addf %147, %148 : vector<16x32xf32>
    %150 = arith.addf %100, %149 : vector<16x32xf32>
    %cst_70 = arith.constant dense<0.000000e+00> : vector<16xf32>
    %151 = vector.multi_reduction <add>, %150, %cst_70 [1] : vector<16x32xf32> to vector<16xf32>
    %152 = vector.shape_cast %151 : vector<16xf32> to vector<16x1xf32>
    %cst_71 = arith.constant 3.200000e+01 : f32
    %153 = vector.broadcast %cst_71 : f32 to vector<16x1xf32>
    %154 = arith.divf %152, %153 : vector<16x1xf32>
    %155 = vector.broadcast %154 : vector<16x1xf32> to vector<16x32xf32>
    %156 = arith.subf %150, %155 : vector<16x32xf32>
    %157 = vector.broadcast %154 : vector<16x1xf32> to vector<16x32xf32>
    %158 = arith.subf %150, %157 : vector<16x32xf32>
    %159 = arith.mulf %156, %158 : vector<16x32xf32>
    %cst_72 = arith.constant dense<0.000000e+00> : vector<16xf32>
    %160 = vector.multi_reduction <add>, %159, %cst_72 [1] : vector<16x32xf32> to vector<16xf32>
    %161 = vector.shape_cast %160 : vector<16xf32> to vector<16x1xf32>
    %cst_73 = arith.constant 3.200000e+01 : f32
    %162 = vector.broadcast %cst_73 : f32 to vector<16x1xf32>
    %163 = arith.divf %161, %162 : vector<16x1xf32>
    %164 = vector.broadcast %154 : vector<16x1xf32> to vector<16x32xf32>
    %165 = arith.subf %150, %164 : vector<16x32xf32>
    %cst_74 = arith.constant 9.99999974E-6 : f32
    %166 = vector.broadcast %cst_74 : f32 to vector<16x1xf32>
    %167 = arith.addf %163, %166 : vector<16x1xf32>
    %168 = math.rsqrt %167 : vector<16x1xf32>
    %169 = vector.broadcast %168 : vector<16x1xf32> to vector<16x32xf32>
    %170 = arith.mulf %165, %169 : vector<16x32xf32>
    %171 = vector.broadcast %20 : vector<1x32xf32> to vector<16x32xf32>
    %172 = arith.mulf %170, %171 : vector<16x32xf32>
    %173 = vector.broadcast %22 : vector<1x32xf32> to vector<16x32xf32>
    %174 = arith.addf %172, %173 : vector<16x32xf32>
    %c0_75 = arith.constant 0 : index
    %c0_76 = arith.constant 0 : index
    %c0_77 = arith.constant 0 : index
    %c0_78 = arith.constant 0 : index
    %175 = vector.load %arg15[%c0_75, %c0_76, %c0_77, %c0_78] : memref<1x8x32x64xbf16, #tpu.memory_space<vmem>>, vector<1x8x32x64xbf16>
    %176 = vector.shape_cast %175 : vector<1x8x32x64xbf16> to vector<8x32x64xbf16>
    %c0_79 = arith.constant 0 : index
    %c0_80 = arith.constant 0 : index
    %c0_81 = arith.constant 0 : index
    %177 = vector.load %arg16[%c0_79, %c0_80, %c0_81] : memref<1x8x64xf32, #tpu.memory_space<vmem>>, vector<1x8x64xf32>
    %178 = vector.shape_cast %177 : vector<1x8x64xf32> to vector<8x64xf32>
    %c0_82 = arith.constant 0 : index
    %c0_83 = arith.constant 0 : index
    %c0_84 = arith.constant 0 : index
    %c0_85 = arith.constant 0 : index
    %179 = vector.load %arg17[%c0_82, %c0_83, %c0_84, %c0_85] : memref<1x8x64x32xbf16, #tpu.memory_space<vmem>>, vector<1x8x64x32xbf16>
    %180 = vector.shape_cast %179 : vector<1x8x64x32xbf16> to vector<8x64x32xbf16>
    %c0_86 = arith.constant 0 : index
    %c0_87 = arith.constant 0 : index
    %c0_88 = arith.constant 0 : index
    %181 = vector.load %arg18[%c0_86, %c0_87, %c0_88] : memref<1x8x32xf32, #tpu.memory_space<vmem>>, vector<1x8x32xf32>
    %182 = vector.shape_cast %181 : vector<1x8x32xf32> to vector<8x32xf32>
    %183 = vector.shape_cast %174 : vector<16x32xf32> to vector<2x8x32xf32>
    %184 = tpu.transpose %183, [1, 0, 2] : vector<2x8x32xf32> -> vector<8x2x32xf32>
    %185 = arith.truncf %184 : vector<8x2x32xf32> to vector<8x2x32xbf16>
    "tpu.trace_start"() <{level = 10 : i32, message = "sbe,sef->sbf"}> : () -> ()
    %cst_89 = arith.constant dense<0.000000e+00> : vector<8x2x64xf32>
    %186 = tpu.matmul %185, %176, %cst_89 {dimension_numbers = #tpu.dot_dimension_numbers<[2], [1], [1], [2], [0, 0, 0, 1, 1, 2], [0], [0]>} : vector<8x2x32xbf16>, vector<8x32x64xbf16>, vector<8x2x64xf32> -> vector<8x2x64xf32>
    "tpu.trace_stop"() : () -> ()
    %187 = vector.shape_cast %178 : vector<8x64xf32> to vector<8x1x64xf32>
    %188 = vector.broadcast %187 : vector<8x1x64xf32> to vector<8x2x64xf32>
    %189 = arith.addf %186, %188 : vector<8x2x64xf32>
    %190 = arith.truncf %189 : vector<8x2x64xf32> to vector<8x2x64xbf16>
    "tpu.trace_start"() <{level = 10 : i32, message = "sbf,sfe->sbe"}> : () -> ()
    %cst_90 = arith.constant dense<0.000000e+00> : vector<8x2x32xf32>
    %191 = tpu.matmul %190, %180, %cst_90 {dimension_numbers = #tpu.dot_dimension_numbers<[2], [1], [1], [2], [0, 0, 0, 1, 1, 2], [0], [0]>} : vector<8x2x64xbf16>, vector<8x64x32xbf16>, vector<8x2x32xf32> -> vector<8x2x32xf32>
    "tpu.trace_stop"() : () -> ()
    %192 = vector.shape_cast %182 : vector<8x32xf32> to vector<8x1x32xf32>
    %193 = vector.broadcast %192 : vector<8x1x32xf32> to vector<8x2x32xf32>
    %194 = arith.addf %191, %193 : vector<8x2x32xf32>
    %195 = tpu.transpose %194, [1, 0, 2] : vector<8x2x32xf32> -> vector<2x8x32xf32>
    %196 = vector.shape_cast %195 : vector<2x8x32xf32> to vector<16x32xf32>
    %197 = arith.addf %196, %174 : vector<16x32xf32>
    %cst_91 = arith.constant dense<0.000000e+00> : vector<16xf32>
    %198 = vector.multi_reduction <add>, %197, %cst_91 [1] : vector<16x32xf32> to vector<16xf32>
    %199 = vector.shape_cast %198 : vector<16xf32> to vector<16x1xf32>
    %cst_92 = arith.constant 3.200000e+01 : f32
    %200 = vector.broadcast %cst_92 : f32 to vector<16x1xf32>
    %201 = arith.divf %199, %200 : vector<16x1xf32>
    %202 = vector.broadcast %201 : vector<16x1xf32> to vector<16x32xf32>
    %203 = arith.subf %197, %202 : vector<16x32xf32>
    %204 = vector.broadcast %201 : vector<16x1xf32> to vector<16x32xf32>
    %205 = arith.subf %197, %204 : vector<16x32xf32>
    %206 = arith.mulf %203, %205 : vector<16x32xf32>
    %cst_93 = arith.constant dense<0.000000e+00> : vector<16xf32>
    %207 = vector.multi_reduction <add>, %206, %cst_93 [1] : vector<16x32xf32> to vector<16xf32>
    %208 = vector.shape_cast %207 : vector<16xf32> to vector<16x1xf32>
    %cst_94 = arith.constant 3.200000e+01 : f32
    %209 = vector.broadcast %cst_94 : f32 to vector<16x1xf32>
    %210 = arith.divf %208, %209 : vector<16x1xf32>
    %211 = vector.broadcast %201 : vector<16x1xf32> to vector<16x32xf32>
    %212 = arith.subf %197, %211 : vector<16x32xf32>
    %cst_95 = arith.constant 9.99999974E-6 : f32
    %213 = vector.broadcast %cst_95 : f32 to vector<16x1xf32>
    %214 = arith.addf %210, %213 : vector<16x1xf32>
    %215 = math.rsqrt %214 : vector<16x1xf32>
    %216 = vector.broadcast %215 : vector<16x1xf32> to vector<16x32xf32>
    %217 = arith.mulf %212, %216 : vector<16x32xf32>
    %218 = vector.broadcast %24 : vector<1x32xf32> to vector<16x32xf32>
    %219 = arith.mulf %217, %218 : vector<16x32xf32>
    %220 = vector.broadcast %26 : vector<1x32xf32> to vector<16x32xf32>
    %221 = arith.addf %219, %220 : vector<16x32xf32>
    %c0_96 = arith.constant 0 : index
    %c0_97 = arith.constant 0 : index
    %222 = vector.load %arg22[%c0_96, %c0_97] : memref<16x32xf32, #tpu.memory_space<vmem>>, vector<16x32xf32>
    tpu.vector_store %arg22[%c0_96, %c0_97], %221 {strides = array<i32>} : memref<16x32xf32, #tpu.memory_space<vmem>>, vector<16x32xf32>,
    %c1_i32 = arith.constant 1 : i32
    %223 = arith.cmpi eq, %arg0, %c1_i32 : i32
    %224 = arith.extui %223 : i1 to i32
    %c0_i32_98 = arith.constant 0 : i32
    %225 = arith.cmpi ne, %224, %c0_i32_98 : i32
    scf.if %225 {
      %226 = vector.shape_cast %221 : vector<16x32xf32> to vector<2x8x32xf32>
      %c0_99 = arith.constant 0 : index
      %c0_100 = arith.constant 0 : index
      %c0_101 = arith.constant 0 : index
      %227 = vector.load %arg21[%c0_99, %c0_100, %c0_101] : memref<2x8x32xf32, #tpu.memory_space<vmem>>, vector<2x8x32xf32>
      tpu.vector_store %arg21[%c0_99, %c0_100, %c0_101], %226 {strides = array<i32>} : memref<2x8x32xf32, #tpu.memory_space<vmem>>, vector<2x8x32xf32>,
    } else {
    }
    return
  }
  func.func @transform_0(%arg0: i32) -> (i32, i32) {
    %c0_i32 = arith.constant 0 : i32
    %c0_i32_0 = arith.constant 0 : i32
    %c0_i32_1 = arith.constant 0 : i32
    return %c0_i32, %c0_i32_0 : i32, i32
  }
  func.func @transform_1(%arg0: i32) -> (i32, i32) {
    %c0_i32 = arith.constant 0 : i32
    %c0_i32_0 = arith.constant 0 : i32
    %c0_i32_1 = arith.constant 0 : i32
    return %c0_i32, %c0_i32_0 : i32, i32
  }
  func.func @transform_2(%arg0: i32) -> (i32, i32, i32) {
    %c0_i32 = arith.constant 0 : i32
    %c0_i32_0 = arith.constant 0 : i32
    %c0_i32_1 = arith.constant 0 : i32
    %c0_i32_2 = arith.constant 0 : i32
    return %c0_i32, %c0_i32_0, %c0_i32_1 : i32, i32, i32
  }
  func.func @transform_3(%arg0: i32) -> (i32, i32, i32) {
    %c0_i32 = arith.constant 0 : i32
    %c0_i32_0 = arith.constant 0 : i32
    %c0_i32_1 = arith.constant 0 : i32
    %c0_i32_2 = arith.constant 0 : i32
    return %c0_i32, %c0_i32_0, %c0_i32_1 : i32, i32, i32
  }
  func.func @transform_4(%arg0: i32) -> (i32, i32, i32) {
    %c0_i32 = arith.constant 0 : i32
    %c0_i32_0 = arith.constant 0 : i32
    %c0_i32_1 = arith.constant 0 : i32
    return %arg0, %c0_i32, %c0_i32_0 : i32, i32, i32
  }
  func.func @transform_5(%arg0: i32) -> (i32, i32, i32) {
    %c0_i32 = arith.constant 0 : i32
    %c0_i32_0 = arith.constant 0 : i32
    %c0_i32_1 = arith.constant 0 : i32
    return %arg0, %c0_i32, %c0_i32_0 : i32, i32, i32
  }
  func.func @transform_6(%arg0: i32) -> (i32, i32, i32) {
    %c0_i32 = arith.constant 0 : i32
    %c0_i32_0 = arith.constant 0 : i32
    %c0_i32_1 = arith.constant 0 : i32
    return %arg0, %c0_i32, %c0_i32_0 : i32, i32, i32
  }
  func.func @transform_7(%arg0: i32) -> (i32, i32, i32) {
    %c0_i32 = arith.constant 0 : i32
    %c0_i32_0 = arith.constant 0 : i32
    %c0_i32_1 = arith.constant 0 : i32
    return %arg0, %c0_i32, %c0_i32_0 : i32, i32, i32
  }
  func.func @transform_8(%arg0: i32) -> (i32, i32, i32) {
    %c0_i32 = arith.constant 0 : i32
    %c0_i32_0 = arith.constant 0 : i32
    %c0_i32_1 = arith.constant 0 : i32
    return %arg0, %c0_i32, %c0_i32_0 : i32, i32, i32
  }
  func.func @transform_9(%arg0: i32) -> (i32, i32, i32) {
    %c0_i32 = arith.constant 0 : i32
    %c0_i32_0 = arith.constant 0 : i32
    %c0_i32_1 = arith.constant 0 : i32
    return %arg0, %c0_i32, %c0_i32_0 : i32, i32, i32
  }
  func.func @transform_10(%arg0: i32) -> (i32, i32, i32) {
    %c0_i32 = arith.constant 0 : i32
    %c0_i32_0 = arith.constant 0 : i32
    %c0_i32_1 = arith.constant 0 : i32
    return %arg0, %c0_i32, %c0_i32_0 : i32, i32, i32
  }
  func.func @transform_11(%arg0: i32) -> (i32, i32, i32) {
    %c0_i32 = arith.constant 0 : i32
    %c0_i32_0 = arith.constant 0 : i32
    %c0_i32_1 = arith.constant 0 : i32
    return %arg0, %c0_i32, %c0_i32_0 : i32, i32, i32
  }
  func.func @transform_12(%arg0: i32) -> (i32, i32, i32) {
    %c0_i32 = arith.constant 0 : i32
    %c0_i32_0 = arith.constant 0 : i32
    %c0_i32_1 = arith.constant 0 : i32
    return %arg0, %c0_i32, %c0_i32_0 : i32, i32, i32
  }
  func.func @transform_13(%arg0: i32) -> (i32, i32, i32) {
    %c0_i32 = arith.constant 0 : i32
    %c0_i32_0 = arith.constant 0 : i32
    %c0_i32_1 = arith.constant 0 : i32
    return %arg0, %c0_i32, %c0_i32_0 : i32, i32, i32
  }
  func.func @transform_14(%arg0: i32) -> (i32, i32, i32, i32) {
    %c0_i32 = arith.constant 0 : i32
    %c0_i32_0 = arith.constant 0 : i32
    %c0_i32_1 = arith.constant 0 : i32
    %c0_i32_2 = arith.constant 0 : i32
    return %arg0, %c0_i32, %c0_i32_0, %c0_i32_1 : i32, i32, i32, i32
  }
  func.func @transform_15(%arg0: i32) -> (i32, i32, i32) {
    %c0_i32 = arith.constant 0 : i32
    %c0_i32_0 = arith.constant 0 : i32
    %c0_i32_1 = arith.constant 0 : i32
    return %arg0, %c0_i32, %c0_i32_0 : i32, i32, i32
  }
  func.func @transform_16(%arg0: i32) -> (i32, i32, i32, i32) {
    %c0_i32 = arith.constant 0 : i32
    %c0_i32_0 = arith.constant 0 : i32
    %c0_i32_1 = arith.constant 0 : i32
    %c0_i32_2 = arith.constant 0 : i32
    return %arg0, %c0_i32, %c0_i32_0, %c0_i32_1 : i32, i32, i32, i32
  }
  func.func @transform_17(%arg0: i32) -> (i32, i32, i32) {
    %c0_i32 = arith.constant 0 : i32
    %c0_i32_0 = arith.constant 0 : i32
    %c0_i32_1 = arith.constant 0 : i32
    return %arg0, %c0_i32, %c0_i32_0 : i32, i32, i32
  }
  func.func @transform_18(%arg0: i32) -> (i32, i32, i32) {
    %c0_i32 = arith.constant 0 : i32
    %c0_i32_0 = arith.constant 0 : i32
    %c0_i32_1 = arith.constant 0 : i32
    return %arg0, %c0_i32, %c0_i32_0 : i32, i32, i32
  }
  func.func @transform_19(%arg0: i32) -> (i32, i32, i32) {
    %c0_i32 = arith.constant 0 : i32
    %c0_i32_0 = arith.constant 0 : i32
    %c0_i32_1 = arith.constant 0 : i32
    return %arg0, %c0_i32, %c0_i32_0 : i32, i32, i32
  }
  func.func @transform_20(%arg0: i32) -> (i32, i32, i32) {
    %c0_i32 = arith.constant 0 : i32
    %c0_i32_0 = arith.constant 0 : i32
    %c0_i32_1 = arith.constant 0 : i32
    %c0_i32_2 = arith.constant 0 : i32
    return %c0_i32, %c0_i32_0, %c0_i32_1 : i32, i32, i32
  }
}

</mosaic_0001>

<bundles_post_ra>
// kernel: tpu_custom_call.1
= control target key start
LH: loop header
LB: loop body
LE: loop exit
PB: predicated region body
PF: predicated region fallthrough
CT: control target
= control target key end

     0   :  { %s9529_s0 = inlined_call_operand.vmem [shape: f32[16,32], index: 0, kind: input, shape index: {}]   ;;  %s9530_s1 = inlined_call_operand.vmem [shape: f32[16,32], index: 1, kind: input, shape index: {}]   ;;  %s9531_s2 = inlined_call_operand.vmem [shape: f32[8,8,8], index: 2, kind: input, shape index: {}]   ;;  %s9532_s3 = inlined_call_operand.vmem [shape: f32[8,8,8], index: 3, kind: input, shape index: {}]   ;;  %s9533_s4 = inlined_call_operand.vmem [shape: bf16[2,32,32], index: 4, kind: input, shape index: {}]   ;;  %s9534_s5 = inlined_call_operand.vmem [shape: f32[2,1,32], index: 5, kind: input, shape index: {}]   ;;  %s9535_s6 = inlined_call_operand.vmem [shape: bf16[2,32,32], index: 6, kind: input, shape index: {}]   ;;  %s9536_s7 = inlined_call_operand.vmem [shape: f32[2,1,32], index: 7, kind: input, shape index: {}]   ;;  %s9537_s8 = inlined_call_operand.vmem [shape: bf16[2,32,32], index: 8, kind: input, shape index: {}]   ;;  %s9538_s9 = inlined_call_operand.vmem [shape: f32[2,1,32], index: 9, kind: input, shape index: {}]   ;;  %s9539_s10 = inlined_call_operand.vmem [shape: bf16[2,32,32], index: 10, kind: input, shape index: {}]   ;;  %s9540_s11 = inlined_call_operand.vmem [shape: f32[2,1,32], index: 11, kind: input, shape index: {}]   ;;  %s9541_s12 = inlined_call_operand.vmem [shape: f32[2,1,32], index: 12, kind: input, shape index: {}]   ;;  %s9542_s13 = inlined_call_operand.vmem [shape: f32[2,1,32], index: 13, kind: input, shape index: {}]   ;;  %s9543_s14 = inlined_call_operand.vmem [shape: bf16[2,8,32,64], index: 14, kind: input, shape index: {}]   ;;  %s9544_s15 = inlined_call_operand.vmem [shape: f32[2,8,64], index: 15, kind: input, shape index: {}]   ;;  %s9545_s16 = inlined_call_operand.vmem [shape: bf16[2,8,64,32], index: 16, kind: input, shape index: {}]   ;;  %s9546_s17 = inlined_call_operand.vmem [shape: f32[2,8,32], index: 17, kind: input, shape index: {}]   ;;  %s9547_s18 = inlined_call_operand.vmem [shape: f32[2,1,32], index: 18, kind: input, shape index: {}]   ;;  %s9548_s19 = inlined_call_operand.vmem [shape: f32[2,1,32], index: 19, kind: input, shape index: {}]   ;;  %s9549_s20 = inlined_call_operand.hbm [shape: f32[2,8,32], index: 20, kind: output, shape index: {}]  }
   0x1   :  { %9558 = sst [smem:[#allocation10_spill]] %s9529_s0 }
   0x2   :  { %9559 = sst [smem:[#allocation11_spill]] %s9530_s1 }
   0x3   :  { %9560 = sst [smem:[#allocation12_spill]] %s9531_s2 }
   0x4   :  { %9561 = sst [smem:[#allocation13_spill]] %s9532_s3 }
   0x5   :  { %9562 = sst [smem:[#allocation14_spill]] %s9533_s4 }
   0x6   :  { %9563 = sst [smem:[#allocation15_spill]] %s9534_s5 }
   0x7   :  { %9564 = sst [smem:[#allocation16_spill]] %s9535_s6 }
   0x8   :  { %9565 = sst [smem:[#allocation17_spill]] %s9536_s7 }
   0x9   :  { %9566 = sst [smem:[#allocation18_spill]] %s9537_s8 }
   0xa   :  { %9567 = sst [smem:[#allocation19_spill]] %s9538_s9 }
   0xb   :  { %9568 = sst [smem:[#allocation20_spill]] %s9539_s10 }
   0xc   :  { %9569 = sst [smem:[#allocation21_spill]] %s9540_s11 }
   0xd   :  { %9570 = sst [smem:[#allocation22_spill]] %s9541_s12 }
   0xe   :  { %9571 = sst [smem:[#allocation23_spill]] %s9542_s13 }
   0xf   :  { %9572 = sst [smem:[#allocation24_spill]] %s9543_s14 }
  0x10   :  { %9573 = sst [smem:[#allocation25_spill]] %s9549_s20 }
  0x11   :  { %25 = vsyncpa [#allocation4], 0  ;;  %s8272_s1 = smov 0  }
  0x12 LB: > { %9574 = sst [smem:[#allocation6_spill]] %s8152_s1  ;;  %s8278_s22 = sadd.s32 4294967295, %s8152_s1   ;;  %s8152_s1 = sphi %s8272_s1, %s31_s1  }
  0x13   : > { %p7164_p0 = scmp.ge.s32.totalorder %s8152_s1, 1  ;;  %p690_p1 = scmp.lt.s32.totalorder %s8152_s1, 3 }
  0x15   : > { %p691_p2 = pnand %p7164_p0, %p690_p1 }
  0x17   : > { %694 = sbr.rel (%p691_p2) target bundleno = 4442 (0x115a), region = 100 }
  0x1c   : > { %p800_p3 = scmp.lt.s32.totalorder %s8278_s22, 1  ;;  %s9575_s5 = sld [smem:[#allocation15_spill]] }
  0x1d   : > { %s9577_s28 = sld [smem:[#allocation14_spill]]  ;;  %p7179_p4 = scmp.ne.s32.totalorder %s8278_s22, 0 }
  0x1e   : > { %s8284_s23 = scalar_select %p800_p3, %s8278_s22, 1 }
  0x1f   : > { %s9578_s6 = sld [smem:[#allocation16_spill]] }
  0x20   : > { %s7337_s24 = sshll.u32 %s8284_s23, 4  ;;  %s9579_s7 = sld [smem:[#allocation17_spill]] }
  0x21   : > { %s9581_s8 = sld [smem:[#allocation18_spill]]  ;;  %s7341_s27 = sshll.u32 %s8284_s23, 7 }
  0x22   : > { %s8291_s3 = scalar_lea.vmem %s9575_s5, %s8284_s23  ;;  %s9582_s9 = sld [smem:[#allocation19_spill]] }
  0x23   : > { %9576 = sst [smem:[#allocation7_spill]] %s8291_s3  ;;  %s8296_s4 = scalar_lea.vmem %s9577_s28, %s7337_s24 }
  0x24   : > { %s9583_s10 = sld [smem:[#allocation20_spill]]  ;;  %s7175_s30 = sshll.u32 %s8284_s23, 3 }
  0x25   : > { %s8301_s0 = scalar_lea.vmem %s9578_s6, %s7337_s24  ;;  %s9584_s11 = sld [smem:[#allocation21_spill]] }
  0x26   : > { %s8307_s20 = scalar_lea.vmem %s9579_s7, %s8284_s23  ;;  %s9585_s12 = sld [smem:[#allocation22_spill]] }
  0x27   : > { %9580 = sst [smem:[#allocation8_spill]] %s8307_s20  ;;  %s8312_s5 = scalar_lea.vmem %s9581_s8, %s7337_s24 }
  0x28   : > { %s8318_s28 = scalar_lea.vmem %s9582_s9, %s8284_s23  ;;  %s9586_s13 = sld [smem:[#allocation23_spill]] }
  0x29   : > { %s9587_s14 = sld [smem:[#allocation24_spill]]  ;;  %s7342_s7 = sshll.u32 %s8284_s23, 8 }
  0x2a   : > { %s8323_s6 = scalar_lea.vmem %s9583_s10, %s7337_s24  ;;  %s8353_s10 = scalar_lea.vmem %s9544_s15, %s7175_s30 }
  0x2b   : > { %s8329_s21 = scalar_lea.vmem %s9584_s11, %s8284_s23 }
  0x2c   : > { %s8335_s2 = scalar_lea.vmem %s9585_s12, %s8284_s23  ;;  %s8359_s12 = scalar_lea.vmem %s9545_s16, %s7342_s7 }
  0x2d   : > { %866 = sbr.rel (%p7179_p4) target bundleno = 53 (0x35), region = 104  ;;  %s9589_s7 = sld [smem:[#allocation10_spill]] (!%p7179_p4) }
  0x2e   : > { %s8341_s26 = scalar_lea.vmem %s9586_s13, %s8284_s23  ;;  %s8364_s13 = scalar_lea.vmem %s9546_s17, %s7175_s30 }
  0x2f   : > { %s8347_s24 = scalar_lea.vmem %s9587_s14, %s7341_s27 }
  0x30   : > { %9588 = sst [smem:[#allocation9_spill]] %s8347_s24 }
  0x32   : > { %vm869_vm0 = vcmask 261120  }
  0x33   : > { %v867_v0 = vld [vmem:[%s9589_s7] sm:$0xff]  ;;  %v868_v1 = vld [vmem:[%s9589_s7 + $0x8] sm:$0xff] }
  0x34   : > { %870 = vst.msk [vmem:[#allocation2] sm:$0xff] %vm869_vm0, %v867_v0  ;;  %871 = vst.msk [vmem:[#allocation2 + $0x8] sm:$0xff] %vm869_vm0, %v868_v1 }
  0x35 PF: > { %v7968_v2 = vld [vmem:[%s8301_s0 + $0x8] sm:$0xff]   ;;  %v8154_v3 = vmov 0.0   ;;  %v7970_v5 = vld [vmem:[%s8301_s0] sm:$0xff]   ;;  %vm8155_vm1 = vmmov 0   ;;  %vm925_vm2 = vcmask 261120   ;;  %s9590_s14 = sld [smem:[#allocation8_spill]]  ;;  %v1113_v34 = vlaneseq }
  0x36   : > { %7503 = vmatprep.subr.bf16.mxu1 %v8154_v3  ;;  %7495 = vmatprep.subr.bf16.mxu0 %v8154_v3  ;;  %v7969_v4 = vld [vmem:[%s8296_s4 + $0x8] sm:$0xff]   ;;  %v7971_v6 = vld [vmem:[%s8296_s4] sm:$0xff]   ;;  %s9591_s24 = sld [smem:[#allocation7_spill]]  ;;  %s8156_s30 = smov 104   ;;  %v8159_v32 = vmov 1983009808  }
  0x37   : > { %7504 = vmatpush3.bf16.msra.mxu1 %v7968_v2  ;;  %7507 = vmatprep.mubr.msk.bf16.mxu1 %vm8155_vm1, %v8154_v3  ;;  %v7972_v10 = vld [vmem:[%s8312_s5 + $0x8] sm:$0xff]   ;;  %v7973_v11 = vld [vmem:[%s8312_s5] sm:$0xff]   ;;  %s8157_s25 = smov 120   ;;  %s8158_s9 = smov 112   ;;  %v1111_v33 = vunpack.c.l.s4 %v8159_v32  ;;  %v8160_v35 = vmov 1934713408  }
  0x38   : > { %7496 = vmatpush3.bf16.msra.mxu0 %v7969_v4  ;;  %7505 = vmatprep.subr.bf16.mxu1 %v8154_v3  ;;  %v8438_v26 = vld [vmem:[%s8318_s28] ss:$0 sm:$0xff]  ;;  %v1143_v36 = vunpack.c.l.s4 %v8160_v35  ;;  %v8447_v38 = vshrl.u32 %v1113_v34, 7  ;;  %vm1988_vm3 = vcmask 64512   ;;  %s9592_s11 = sld [smem:[#allocation12_spill]]  ;;  %vm2472_vm12 = vcmask 1043456  }
  0x39   : > { %7497 = vmatprep.subr.bf16.mxu0 %v8154_v3  ;;  %7499 = vmatprep.mubr.msk.bf16.mxu0 %vm8155_vm1, %v8154_v3  ;;  %v1112_v37 = vunpack.c.0.s8 %v1111_v33  ;;  %s8162_s20 = smov 8   ;;  %s8163_s3 = smov 24   ;;  %vm3136_vm13 = vcmask 130048   ;;  %vm3139_vm14 = vcmask 195584  }
  0x3a   : > { %v1144_v41 = vunpack.c.0.s8 %v1143_v36  ;;  %s9593_s27 = sld [smem:[#allocation11_spill]]  ;;  %p7332_p5 = scmp.ne.s32.totalorder %s8278_s22, 1 }
  0x3b   : > { %v896_v7 = vld [vmem:[#allocation2] sm:$0xff]  ;;  %v897_v8 = vld [vmem:[#allocation2 + $0x8] sm:$0xff]  ;;  %7506 = vmatpush3.bf16.msra.mxu1 %v7970_v5  ;;  %v8450_v42 = vsub.s32 %v1112_v37, %v8447_v38 }
  0x3c   : > { %v906_v9 = vpack.c.bf16 %v897_v8, %v896_v7  ;;  %7498 = vmatpush3.bf16.msra.mxu0 %v7971_v6  ;;  %7519 = vmatprep.subr.bf16.mxu1 %v8154_v3  ;;  %v7184_v12 = vld [vmem:[%s9590_s14] ss:$0 sm:$0xff]  ;;  %v8453_v49 = vsub.s32 %v1144_v41, %v8447_v38 }
  0x3d   : > { %7511 = vmatprep.subr.bf16.mxu0 %v8154_v3  ;;  %v7180_v14 = vld [vmem:[%s9591_s24] ss:$0 sm:$0xff] }
  0x3e   : > { %7508 = vmatmul.mubr.msk.bf16.vlgmr.msra.gmra.mxu1 %vm925_vm2, %v906_v9 }
  0x3f   : > { %7500 = vmatmul.mubr.msk.bf16.vlgmr.msra.gmra.mxu0 %vm925_vm2, %v906_v9  ;;  %7521 = vmatprep.mubr.msk.bf16.mxu1 %vm8155_vm1, %v8154_v3 }
  0x40   : > { %7515 = vmatprep.mubr.msk.bf16.mxu0 %vm8155_vm1, %v8154_v3  ;;  %7512 = vmatpush3.bf16.msra.mxu0 %v7972_v10 }
  0x41   : > { %7513 = vmatprep.subr.bf16.mxu0 %v8154_v3 }
  0x44   : > { %7514 = vmatpush3.bf16.msra.mxu0 %v7973_v11 }
  0x45   : > { %7525 = vmatprep.subr.bf16.mxu0 %v8154_v3 }
  0x47   : > { %7516 = vmatmul.mubr.msk.bf16.vlgmr.msra.gmra.mxu0 %vm925_vm2, %v906_v9 }
  0x48   : > { %7527 = vmatprep.mubr.msk.bf16.mxu0 %vm8155_vm1, %v8154_v3 }
  0xfe   : > { %v1022_v13 = vpop.f32.mrf.mxu1 }
  0xff   : > { %v1023_v15 = vadd.f32 %v7184_v12, %v1022_v13  ;;  %v963_v16 = vpop.f32.mrf.mxu0 }
 0x100   : > { %v7509_v17 = vpop.f32.mrf.mxu1  ;;  %v8412_v18 = vadd.f32 %v7180_v14, %v963_v16 }
 0x101   : > { %1402 = vrot.lane.b32.xlu1 %v1023_v15, %s8156_s30  ;;  %1390 = vrot.lane.b32.xlu0 %v1023_v15, %s8157_s25  ;;  %v7501_v19 = vpop.f32.mrf.mxu0 }
 0x102   : > { %v1025_v20 = vpop.f32.mrf.mxu1 }
 0x103   : > { %v966_v21 = vpop.f32.mrf.mxu0  ;;  %v8421_v24 = vadd.f32 %v7184_v12, %v1025_v20 }
 0x104   : > { %v7510_v22 = vpop.f32.mrf.mxu1  ;;  %v8427_v25 = vadd.f32 %v7180_v14, %v966_v21 }
 0x105   : > { %1396 = vrot.lane.b32.xlu0 %v1023_v15, %s8158_s9  ;;  %1090 = vrot.lane.b32.xlu1 %v8412_v18, %s8157_s25  ;;  %v7502_v23 = vpop.f32.mrf.mxu0 }
 0x107   : > { %v1081_v27 = vpop.f32.mrf.mxu0 }
 0x108   : > { %v8441_v28 = vadd.f32 %v8438_v26, %v1081_v27 }
 0x109   : > { %1096 = vrot.lane.b32.xlu0 %v8412_v18, %s8158_s9  ;;  %1102 = vrot.lane.b32.xlu1 %v8412_v18, %s8156_s30  ;;  %v7517_v29 = vpop.f32.mrf.mxu0 }
 0x10b   : > { %v8445_v30 = vpop.f32.mrf.mxu0 }
 0x10d   : > { %1392 = vrot.lane.b32.xlu0 %v8421_v24, %s8157_s25  ;;  %1398 = vrot.lane.b32.xlu1 %v8421_v24, %s8158_s9  ;;  %v7518_v31 = vpop.f32.mrf.mxu0 }
 0x111   : > { %1404 = vrot.lane.b32.xlu0 %v8421_v24, %s8156_s30  ;;  %1092 = vrot.lane.b32.xlu1 %v8427_v25, %s8157_s25 }
 0x115   : > { %1098 = vrot.lane.b32.xlu0 %v8427_v25, %s8158_s9  ;;  %1104 = vrot.lane.b32.xlu1 %v8427_v25, %s8156_s30 }
 0x119   : > { %1690 = vrot.lane.b32.xlu1 %v8441_v28, %s8157_s25 }
 0x173   : > { %v1403_v39 = vpop.permute.xlu1 %1402  ;;  %v1391_v40 = vpop.permute.xlu0 %1390 }
 0x174   : > { %v1424_v43 = vcombine.low %v1391_v40, %v1403_v39  ;;  %v1425_v44 = vcombine.high %v1391_v40, %v1403_v39 }
 0x176   : > { %v1432_v50 = vrot.slane %v1424_v43, %v8450_v42  ;;  %v1439_v51 = vrot.slane %v1425_v44, %v8450_v42 }
 0x177   : > { %v1397_v45 = vpop.permute.xlu0 %1396  ;;  %v1091_v46 = vpop.permute.xlu1 %1090 }
 0x178   : > { %v1408_v47 = vcombine.low %v1023_v15, %v1397_v45  ;;  %v1409_v48 = vcombine.high %v1023_v15, %v1397_v45 }
 0x17a   : > { %v1416_v52 = vrot.slane %v1408_v47, %v8450_v42  ;;  %v1423_v53 = vrot.slane %v1409_v48, %v8450_v42 }
 0x17b   : > { %v1097_v54 = vpop.permute.xlu0 %1096  ;;  %v1103_v55 = vpop.permute.xlu1 %1102 }
 0x17c   : > { %v1440_v56 = vcombine.low %v1416_v52, %v1432_v50  ;;  %v1441_v57 = vcombine.high %v1416_v52, %v1432_v50  ;;  %v1456_v58 = vcombine.low %v1423_v53, %v1439_v51  ;;  %v1457_v59 = vcombine.high %v1423_v53, %v1439_v51 }
 0x17d   : > { %v1108_v60 = vcombine.low %v8412_v18, %v1097_v54  ;;  %v1109_v61 = vcombine.high %v8412_v18, %v1097_v54  ;;  %v1124_v62 = vcombine.low %v1091_v46, %v1103_v55  ;;  %v1125_v63 = vcombine.high %v1091_v46, %v1103_v55 }
 0x17e   : > { %v1448_v0 = vrot.slane %v1440_v56, %v8453_v49  ;;  %v1455_v1 = vrot.slane %v1441_v57, %v8453_v49  ;;  %v1464_v2 = vrot.slane %v1456_v58, %v8453_v49  ;;  %v1471_v4 = vrot.slane %v1457_v59, %v8453_v49 }
 0x17f   : > { %v1116_v5 = vrot.slane %v1108_v60, %v8450_v42  ;;  %v1123_v6 = vrot.slane %v1109_v61, %v8450_v42  ;;  %v1132_v7 = vrot.slane %v1124_v62, %v8450_v42  ;;  %v1139_v8 = vrot.slane %v1125_v63, %v8450_v42  ;;  %v1393_v9 = vpop.permute.xlu0 %1392  ;;  %v1399_v10 = vpop.permute.xlu1 %1398 }
 0x180   : > { %v1544_v15 = vcombine.low %v1448_v0, %v1455_v1  ;;  %v7196_v16 = vcombine.high %v1448_v0, %v1455_v1  ;;  %v1560_v17 = vcombine.low %v1464_v2, %v1471_v4  ;;  %v7197_v18 = vcombine.high %v1464_v2, %v1471_v4 }
 0x181   : > { %v1140_v11 = vcombine.low %v1116_v5, %v1132_v7  ;;  %v1141_v12 = vcombine.high %v1116_v5, %v1132_v7  ;;  %v1156_v13 = vcombine.low %v1123_v6, %v1139_v8  ;;  %v1157_v14 = vcombine.high %v1123_v6, %v1139_v8 }
 0x182   : > { %v1476_v29 = vcombine.low %v8421_v24, %v1399_v10  ;;  %v1477_v31 = vcombine.high %v8421_v24, %v1399_v10  ;;  %v1551_v50 = vrot.slane %v1544_v15, %v8450_v42  ;;  %v1559_v51 = vrot.slane %v7196_v16, %v8450_v42 }
 0x183   : > { %v1148_v19 = vrot.slane %v1140_v11, %v8453_v49  ;;  %v1155_v20 = vrot.slane %v1141_v12, %v8453_v49  ;;  %v1164_v21 = vrot.slane %v1156_v13, %v8453_v49  ;;  %v1171_v22 = vrot.slane %v1157_v14, %v8453_v49  ;;  %v1405_v23 = vpop.permute.xlu0 %1404  ;;  %v1093_v27 = vpop.permute.xlu1 %1092 }
 0x184   : > { %v1492_v32 = vcombine.low %v1393_v9, %v1405_v23  ;;  %v1493_v33 = vcombine.high %v1393_v9, %v1405_v23  ;;  %v1484_v39 = vrot.slane %v1476_v29, %v8450_v42  ;;  %v1491_v40 = vrot.slane %v1477_v31, %v8450_v42 }
 0x185   : > { %v1244_v34 = vcombine.low %v1148_v19, %v1155_v20  ;;  %v7192_v35 = vcombine.high %v1148_v19, %v1155_v20  ;;  %v1260_v36 = vcombine.low %v1164_v21, %v1171_v22  ;;  %v7193_v37 = vcombine.high %v1164_v21, %v1171_v22 }
 0x186   : > { %v1500_v41 = vrot.slane %v1492_v32, %v8450_v42  ;;  %v1507_v43 = vrot.slane %v1493_v33, %v8450_v42  ;;  %v1567_v52 = vrot.slane %v1560_v17, %v8450_v42  ;;  %v1575_v53 = vrot.slane %v7197_v18, %v8450_v42 }
 0x187   : > { %v1099_v48 = vpop.permute.xlu0 %1098  ;;  %v1105_v24 = vpop.permute.xlu1 %1104  ;;  %v8484_v54 = vrot.slane %v1244_v34, %v8450_v42  ;;  %v8487_v55 = vrot.slane %v7192_v35, %v8450_v42  ;;  %v8490_v56 = vrot.slane %v1260_v36, %v8450_v42  ;;  %v8493_v57 = vrot.slane %v7193_v37, %v8450_v42 }
 0x188   : > { %v1508_v44 = vcombine.low %v1484_v39, %v1500_v41  ;;  %v1509_v45 = vcombine.high %v1484_v39, %v1500_v41  ;;  %v1524_v46 = vcombine.low %v1491_v40, %v1507_v43  ;;  %v1525_v47 = vcombine.high %v1491_v40, %v1507_v43 }
 0x189   : > { %v1176_v58 = vcombine.low %v8427_v25, %v1099_v48  ;;  %v1177_v59 = vcombine.high %v8427_v25, %v1099_v48  ;;  %v1192_v60 = vcombine.low %v1093_v27, %v1105_v24  ;;  %v1193_v61 = vcombine.high %v1093_v27, %v1105_v24 }
 0x18a   : > { %v1516_v62 = vrot.slane %v1508_v44, %v8453_v49  ;;  %v1523_v63 = vrot.slane %v1509_v45, %v8453_v49  ;;  %v1532_v0 = vrot.slane %v1524_v46, %v8453_v49  ;;  %v1539_v1 = vrot.slane %v1525_v47, %v8453_v49 }
 0x18b   : > { %v1184_v2 = vrot.slane %v1176_v58, %v8450_v42  ;;  %v1191_v4 = vrot.slane %v1177_v59, %v8450_v42  ;;  %v1200_v5 = vrot.slane %v1192_v60, %v8450_v42  ;;  %v1207_v6 = vrot.slane %v1193_v61, %v8450_v42 }
 0x18c   : > { %v1276_v25 = vcombine.low %v8484_v54, %v8487_v55  ;;  %v1292_v7 = vcombine.low %v8490_v56, %v8493_v57  ;;  %v1612_v10 = vcombine.low %v1516_v62, %v1523_v63  ;;  %v7198_v11 = vcombine.high %v1516_v62, %v1523_v63 }
 0x18d   : > { %v1208_v8 = vcombine.low %v1184_v2, %v1200_v5  ;;  %v1209_v9 = vcombine.high %v1184_v2, %v1200_v5  ;;  %v1576_v12 = vcombine.low %v1551_v50, %v1559_v51  ;;  %v1592_v13 = vcombine.low %v1567_v52, %v1575_v53 }
 0x18e   : > { %v1628_v14 = vcombine.low %v1532_v0, %v1539_v1  ;;  %v7199_v15 = vcombine.high %v1532_v0, %v1539_v1  ;;  %v1224_v16 = vcombine.low %v1191_v4, %v1207_v6  ;;  %v1225_v17 = vcombine.high %v1191_v4, %v1207_v6 }
 0x18f   : > { %v1277_v18 = vcombine.high %v8484_v54, %v8487_v55  ;;  %v1293_v19 = vcombine.high %v8490_v56, %v8493_v57  ;;  %v1584_v20 = vrot.slane %v1576_v12, %v8453_v49  ;;  %v1600_v21 = vrot.slane %v1592_v13, %v8453_v49 }
 0x190   : > { %v1216_v22 = vrot.slane %v1208_v8, %v8453_v49  ;;  %v1223_v23 = vrot.slane %v1209_v9, %v8453_v49  ;;  %v1284_v27 = vrot.slane %v1276_v25, %v8453_v49  ;;  %v1300_v29 = vrot.slane %v1292_v7, %v8453_v49 }
 0x191   : > { %v8520_v31 = vrot.slane %v1612_v10, %v8450_v42  ;;  %v1627_v32 = vrot.slane %v7198_v11, %v8450_v42  ;;  %v1608_v33 = vcombine.low %v1584_v20, %v1600_v21  ;;  %v1609_v34 = vcombine.high %v1584_v20, %v1600_v21 }
 0x192   : > { %v1635_v35 = vrot.slane %v1628_v14, %v8450_v42  ;;  %v1643_v36 = vrot.slane %v7199_v15, %v8450_v42  ;;  %v1232_v37 = vrot.slane %v1224_v16, %v8453_v49  ;;  %v1239_v39 = vrot.slane %v1225_v17, %v8453_v49 }
 0x193   : > { %v1680_v40 = vpack.c.bf16 %v1608_v33, %v1608_v33  ;;  %v1681_v41 = vpack.c.bf16 %v1609_v34, %v1609_v34  ;;  %v1577_v43 = vcombine.high %v1551_v50, %v1559_v51  ;;  %v1593_v44 = vcombine.high %v1567_v52, %v1575_v53 }
 0x194   : > { %v1312_v45 = vcombine.low %v1216_v22, %v1223_v23  ;;  %v7194_v46 = vcombine.high %v1216_v22, %v1223_v23  ;;  %v1308_v47 = vcombine.low %v1284_v27, %v1300_v29  ;;  %v1309_v48 = vcombine.high %v1284_v27, %v1300_v29 }
 0x195   : > { %v1993_v24 = vsel %vm1988_vm3, %v1680_v40, 0  ;;  %v2039_v54 = vsel %vm1988_vm3, %v1681_v41, 0  ;;  %v1591_v55 = vrot.slane %v1577_v43, %v8453_v49  ;;  %v1607_v56 = vrot.slane %v1593_v44, %v8453_v49 }
 0x196   : > { %v1328_v57 = vcombine.low %v1232_v37, %v1239_v39  ;;  %v7195_v58 = vcombine.high %v1232_v37, %v1239_v39  ;;  %7520 = vmatpush3.bf16.xpose.msra.mxu1 %v1993_v24  ;;  %7526 = vmatpush3.bf16.xpose.msra.mxu0 %v2039_v54  ;;  %v1644_v59 = vcombine.low %v8520_v31, %v1627_v32 }
 0x197   : > { %7531 = vmatprep.subr.bf16.mxu1 %v8154_v3  ;;  %7537 = vmatprep.subr.bf16.mxu0 %v8154_v3  ;;  %v1610_v50 = vcombine.low %v1591_v55, %v1607_v56  ;;  %v1611_v51 = vcombine.high %v1591_v55, %v1607_v56  ;;  %v1660_v52 = vcombine.low %v1635_v35, %v1643_v36  ;;  %v898_v56 = vld [vmem:[%s9592_s11] sm:$0xff] }
 0x198   : > { %v1652_v61 = vrot.slane %v1644_v59, %v8453_v49  ;;  %v1319_v63 = vrot.slane %v1312_v45, %v8450_v42  ;;  %v1327_v0 = vrot.slane %v7194_v46, %v8450_v42  ;;  %v1380_v1 = vpack.c.bf16 %v1308_v47, %v1308_v47 }
 0x199   : > { %v1682_v53 = vpack.c.bf16 %v1610_v50, %v1610_v50  ;;  %v1683_v60 = vpack.c.bf16 %v1611_v51, %v1611_v51  ;;  %v1668_v62 = vrot.slane %v1660_v52, %v8453_v49  ;;  %v1381_v2 = vpack.c.bf16 %v1309_v48, %v1309_v48 }
 0x19a   : > { %v1335_v4 = vrot.slane %v1328_v57, %v8450_v42  ;;  %v1343_v5 = vrot.slane %v7195_v58, %v8450_v42  ;;  %v1291_v6 = vrot.slane %v1277_v18, %v8453_v49  ;;  %v1307_v25 = vrot.slane %v1293_v19, %v8453_v49  ;;  %v899_v57 = vld [vmem:[%s9592_s11 + $0x8] sm:$0xff] }
 0x19b   : > { %v1645_v7 = vcombine.high %v8520_v31, %v1627_v32  ;;  %v1661_v8 = vcombine.high %v1635_v35, %v1643_v36  ;;  %v2085_v9 = vsel %vm1988_vm3, %v1682_v53, 0  ;;  %v2131_v10 = vsel %vm1988_vm3, %v1683_v60, 0 }
 0x19c   : > { %v1676_v11 = vcombine.low %v1652_v61, %v1668_v62  ;;  %v1677_v12 = vcombine.high %v1652_v61, %v1668_v62  ;;  %v1344_v13 = vcombine.low %v1319_v63, %v1327_v0  ;;  %v1360_v14 = vcombine.low %v1335_v4, %v1343_v5  ;;  %v900_v62 = vld [vmem:[%s9592_s11 + $0x10] sm:$0xff] }
 0x19d   : > { %7522 = vmatmul.mubr.msk.bf16.vlgmr.msra.gmra.mxu1 %vm1988_vm3, %v1380_v1  ;;  %7528 = vmatmul.mubr.msk.bf16.vlgmr.msra.gmra.mxu0 %vm1988_vm3, %v1381_v2  ;;  %v1310_v15 = vcombine.low %v1291_v6, %v1307_v25  ;;  %v1311_v16 = vcombine.high %v1291_v6, %v1307_v25  ;;  %v1659_v19 = vrot.slane %v1645_v7, %v8453_v49  ;;  %vm2357_vm4 = vcmp.gt.f32.partialorder %v898_v56, 0.5  ;;  %v901_v1 = vld [vmem:[%s9592_s11 + $0x18] sm:$0xff] }
 0x19e   : > { %7532 = vmatpush3.bf16.xpose.msra.mxu1 %v2085_v9  ;;  %7538 = vmatpush3.bf16.xpose.msra.mxu0 %v2131_v10  ;;  %v1684_v17 = vpack.c.bf16 %v1676_v11, %v1676_v11  ;;  %v1685_v18 = vpack.c.bf16 %v1677_v12, %v1677_v12  ;;  %v1675_v20 = vrot.slane %v1661_v8, %v8453_v49  ;;  %vm2358_vm5 = vcmp.gt.f32.partialorder %v899_v57, 0.5  ;;  %v902_v11 = vld [vmem:[%s9592_s11 + $0x20] sm:$0xff]  ;;  %v903_v12 = vld [vmem:[%s9592_s11 + $0x28] sm:$0xff] }
 0x19f   : > { %7533 = vmatprep.mubr.msk.bf16.mxu1 %vm8155_vm1, %v8154_v3  ;;  %7539 = vmatprep.mubr.msk.bf16.mxu0 %vm8155_vm1, %v8154_v3  ;;  %v1382_v21 = vpack.c.bf16 %v1310_v15, %v1310_v15  ;;  %v1383_v22 = vpack.c.bf16 %v1311_v16, %v1311_v16  ;;  %v1352_v23 = vrot.slane %v1344_v13, %v8453_v49  ;;  %vm2359_vm6 = vcmp.gt.f32.partialorder %v900_v62, 0.5 }
 0x1a0   : > { %7543 = vmatprep.subr.bf16.mxu1 %v8154_v3  ;;  %7549 = vmatprep.subr.bf16.mxu0 %v8154_v3  ;;  %v1368_v27 = vrot.slane %v1360_v14, %v8453_v49  ;;  %v2177_v29 = vsel %vm1988_vm3, %v1684_v17, 0  ;;  %v2223_v31 = vsel %vm1988_vm3, %v1685_v18, 0  ;;  %v1678_v32 = vcombine.low %v1659_v19, %v1675_v20 }
 0x1a1   : > { %v1679_v33 = vcombine.high %v1659_v19, %v1675_v20  ;;  %v1345_v34 = vcombine.high %v1319_v63, %v1327_v0  ;;  %v1361_v35 = vcombine.high %v1335_v4, %v1343_v5  ;;  %vm2360_vm7 = vcmp.gt.f32.partialorder %v901_v1, 0.5 }
 0x1a2   : > { %v1376_v36 = vcombine.low %v1352_v23, %v1368_v27  ;;  %v1377_v37 = vcombine.high %v1352_v23, %v1368_v27  ;;  %v1686_v39 = vpack.c.bf16 %v1678_v32, %v1678_v32  ;;  %vm2361_vm8 = vcmp.gt.f32.partialorder %v902_v11, 0.5  ;;  %v905_v32 = vld [vmem:[%s9592_s11 + $0x38] sm:$0xff] }
 0x1a3   : > { %v1687_v40 = vpack.c.bf16 %v1679_v33, %v1679_v33  ;;  %v1359_v44 = vrot.slane %v1345_v34, %v8453_v49  ;;  %v1375_v45 = vrot.slane %v1361_v35, %v8453_v49  ;;  %vm2362_vm9 = vcmp.gt.f32.partialorder %v903_v12, 0.5 }
 0x1a4   : > { %v1384_v41 = vpack.c.bf16 %v1376_v36, %v1376_v36  ;;  %v1385_v43 = vpack.c.bf16 %v1377_v37, %v1377_v37  ;;  %v2269_v46 = vsel %vm1988_vm3, %v1686_v39, 0  ;;  %vm2364_vm11 = vcmp.gt.f32.partialorder %v905_v32, 0.5 }
 0x1a5   : > { %7534 = vmatmul.mubr.msk.bf16.vlgmr.msra.gmra.mxu1 %vm1988_vm3, %v1382_v21  ;;  %7540 = vmatmul.mubr.msk.bf16.vlgmr.msra.gmra.mxu0 %vm1988_vm3, %v1383_v22  ;;  %v2315_v47 = vsel %vm1988_vm3, %v1687_v40, 0  ;;  %v1378_v48 = vcombine.low %v1359_v44, %v1375_v45  ;;  %v1379_v24 = vcombine.high %v1359_v44, %v1375_v45 }
 0x1a6   : > { %7544 = vmatpush3.bf16.xpose.msra.mxu1 %v2177_v29  ;;  %7550 = vmatpush3.bf16.xpose.msra.mxu0 %v2223_v31  ;;  %v904_v31 = vld [vmem:[%s9592_s11 + $0x30] sm:$0xff] }
 0x1a7   : > { %7545 = vmatprep.mubr.msk.bf16.mxu1 %vm8155_vm1, %v8154_v3  ;;  %7551 = vmatprep.mubr.msk.bf16.mxu0 %vm8155_vm1, %v8154_v3  ;;  %v1386_v54 = vpack.c.bf16 %v1378_v48, %v1378_v48  ;;  %v1387_v55 = vpack.c.bf16 %v1379_v24, %v1379_v24  ;;  %vm2363_vm10 = vcmp.gt.f32.partialorder %v904_v31, 0.5 }
 0x1a8   : > { %7555 = vmatprep.subr.bf16.mxu1 %v8154_v3  ;;  %7561 = vmatprep.subr.bf16.mxu0 %v8154_v3 }
 0x1ad   : > { %7546 = vmatmul.mubr.msk.bf16.vlgmr.msra.gmra.mxu1 %vm1988_vm3, %v1384_v41  ;;  %7552 = vmatmul.mubr.msk.bf16.vlgmr.msra.gmra.mxu0 %vm1988_vm3, %v1385_v43 }
 0x1ae   : > { %7556 = vmatpush3.bf16.xpose.msra.mxu1 %v2269_v46  ;;  %7562 = vmatpush3.bf16.xpose.msra.mxu0 %v2315_v47 }
 0x1af   : > { %7557 = vmatprep.mubr.msk.bf16.mxu1 %vm8155_vm1, %v8154_v3  ;;  %7563 = vmatprep.mubr.msk.bf16.mxu0 %vm8155_vm1, %v8154_v3 }
 0x1b0   : > { %7567 = vmatprep.subr.bf16.mxu1 %v8154_v3  ;;  %7573 = vmatprep.subr.bf16.mxu0 %v8154_v3 }
 0x1b5   : > { %7558 = vmatmul.mubr.msk.bf16.vlgmr.msra.gmra.mxu1 %vm1988_vm3, %v1386_v54  ;;  %7564 = vmatmul.mubr.msk.bf16.vlgmr.msra.gmra.mxu0 %vm1988_vm3, %v1387_v55  ;;  %v1691_v55 = vpop.permute.xlu1 %1690 }
 0x1b6   : > { %7569 = vmatprep.mubr.msk.bf16.mxu1 %vm8155_vm1, %v8154_v3  ;;  %7575 = vmatprep.mubr.msk.bf16.mxu0 %vm8155_vm1, %v8154_v3 }
 0x25d   : > { %v2029_v58 = vpop.f32.mrf.mxu1  ;;  %v2075_v59 = vpop.f32.mrf.mxu0 }
 0x25e   : > { %v8591_v50 = vsel %vm2357_vm4, -1e+30, %v2029_v58  ;;  %v8593_v51 = vsel %vm2358_vm5, -1e+30, %v2075_v59 }
 0x25f   : > { %v7523_v52 = vpop.f32.mrf.mxu1  ;;  %v7529_v53 = vpop.f32.mrf.mxu0  ;;  %v2373_v60 = vsel %vm1988_vm3, %v8591_v50, -inf  ;;  %v2376_v61 = vsel %vm1988_vm3, %v8593_v51, -inf }
 0x260   : > { %2374 = vmax.xlane.f32.xlu0 %v2373_v60  ;;  %2377 = vmax.xlane.f32.xlu1 %v2376_v61 }
 0x261   : > { %v2032_v63 = vpop.f32.mrf.mxu1  ;;  %v2078_v0 = vpop.f32.mrf.mxu0 }
 0x263   : > { %v7524_v2 = vpop.f32.mrf.mxu1  ;;  %v7530_v4 = vpop.f32.mrf.mxu0 }
 0x265   : > { %v2121_v5 = vpop.f32.mrf.mxu1  ;;  %v2167_v6 = vpop.f32.mrf.mxu0 }
 0x266   : > { %v2367_v25 = vsel %vm2359_vm6, -1e+30, %v2121_v5  ;;  %v2368_v10 = vsel %vm2360_vm7, -1e+30, %v2167_v6 }
 0x267   : > { %v7535_v7 = vpop.f32.mrf.mxu1  ;;  %v7541_v8 = vpop.f32.mrf.mxu0  ;;  %v2379_v9 = vsel %vm1988_vm3, %v2367_v25, -inf  ;;  %v2382_v17 = vsel %vm1988_vm3, %v2368_v10, -inf }
 0x268   : > { %2380 = vmax.xlane.f32.xlu0 %v2379_v9 }
 0x269   : > { %v2124_v13 = vpop.f32.mrf.mxu1  ;;  %v2170_v14 = vpop.f32.mrf.mxu0 }
 0x26b   : > { %v7536_v15 = vpop.f32.mrf.mxu1  ;;  %v7542_v16 = vpop.f32.mrf.mxu0 }
 0x26c   : > { %2383 = vmax.xlane.f32.xlu0 %v2382_v17 }
 0x26d   : > { %v2213_v18 = vpop.f32.mrf.mxu1  ;;  %v2259_v19 = vpop.f32.mrf.mxu0 }
 0x26e   : > { %v2369_v20 = vsel %vm2361_vm8, -1e+30, %v2213_v18  ;;  %v8613_v21 = vsel %vm2362_vm9, -1e+30, %v2259_v19 }
 0x26f   : > { %v7547_v22 = vpop.f32.mrf.mxu1  ;;  %v7553_v23 = vpop.f32.mrf.mxu0  ;;  %v2385_v27 = vsel %vm1988_vm3, %v2369_v20, -inf  ;;  %v2388_v29 = vsel %vm1988_vm3, %v8613_v21, -inf }
 0x270   : > { %2386 = vmax.xlane.f32.xlu1 %v2385_v27  ;;  %2389 = vmax.xlane.f32.xlu0 %v2388_v29 }
 0x271   : > { %v2216_v33 = vpop.f32.mrf.mxu1  ;;  %v2262_v34 = vpop.f32.mrf.mxu0 }
 0x273   : > { %v7548_v35 = vpop.f32.mrf.mxu1  ;;  %v7554_v36 = vpop.f32.mrf.mxu0 }
 0x275   : > { %v2305_v37 = vpop.f32.mrf.mxu1  ;;  %v2351_v39 = vpop.f32.mrf.mxu0 }
 0x276   : > { %v8624_v40 = vsel %vm2363_vm10, -1e+30, %v2305_v37  ;;  %v8626_v41 = vsel %vm2364_vm11, -1e+30, %v2351_v39 }
 0x277   : > { %v7559_v43 = vpop.f32.mrf.mxu1  ;;  %v7565_v44 = vpop.f32.mrf.mxu0  ;;  %v2391_v45 = vsel %vm1988_vm3, %v8624_v40, -inf  ;;  %v2394_v46 = vsel %vm1988_vm3, %v8626_v41, -inf }
 0x278   : > { %2392 = vmax.xlane.f32.xlu1 %v2391_v45  ;;  %2395 = vmax.xlane.f32.xlu0 %v2394_v46 }
 0x279   : > { %v2308_v47 = vpop.f32.mrf.mxu1  ;;  %v2354_v48 = vpop.f32.mrf.mxu0 }
 0x27b   : > { %v7560_v24 = vpop.f32.mrf.mxu1  ;;  %v7566_v54 = vpop.f32.mrf.mxu0 }
 0x289   : > { %1702 = vrot.lane.b32.xlu1 %v8441_v28, %s8156_s30 }
 0x28e   : > { %1696 = vrot.lane.b32.xlu0 %v8441_v28, %s8158_s9 }
 0x2e9   : > { %v2375_v56 = vpop.xlane.xlu0 %2374  ;;  %v2378_v57 = vpop.xlane.xlu1 %2377 }
 0x2ea   : > { %v2397_v58 = vsub.f32 %v8591_v50, %v2375_v56  ;;  %v2398_v59 = vsub.f32 %v8593_v51, %v2378_v57 }
 0x2ec   : > { %v2405_v52 = vmul.f32 1.442695, %v2397_v58  ;;  %v2407_v53 = vmul.f32 1.442695, %v2398_v59  ;;  %v8680_v59 = vadd.f32 %v8438_v26, %v8445_v30 }
 0x2ee   : > { %8026 = vpow2.f32 %v2405_v52 }
 0x2ef   : > { %8028 = vpow2.f32 %v2407_v53 }
 0x2f1   : > { %v2381_v60 = vpop.xlane.xlu0 %2380 }
 0x2f2   : > { %v2399_v61 = vsub.f32 %v2367_v25, %v2381_v60 }
 0x2f4   : > { %v2409_v62 = vmul.f32 1.442695, %v2399_v61 }
 0x2f5   : > { %v2384_v63 = vpop.xlane.xlu0 %2383 }
 0x2f6   : > { %8030 = vpow2.f32 %v2409_v62  ;;  %v2400_v0 = vsub.f32 %v2368_v10, %v2384_v63 }
 0x2f8   : > { %v2411_v1 = vmul.f32 1.442695, %v2400_v0 }
 0x2f9   : > { %v2387_v2 = vpop.xlane.xlu1 %2386  ;;  %v8644_v7 = vpop.xlane.xlu0 %2389 }
 0x2fa   : > { %8032 = vpow2.f32 %v2411_v1  ;;  %v2401_v4 = vsub.f32 %v2369_v20, %v2387_v2 }
 0x2fb   : > { %v8638_v5 = vpop.eup %8026 }
 0x2fc   : > { %v8640_v6 = vpop.eup %8028  ;;  %v2413_v50 = vmul.f32 1.442695, %v2401_v4  ;;  %v2421_v51 = vsel %vm1988_vm3, %v8638_v5, 0.0 }
 0x2fd   : > { %2422 = vadd.xlane.f32.xlu1 %v2421_v51  ;;  %v2424_v25 = vsel %vm1988_vm3, %v8640_v6, 0.0 }
 0x2fe   : > { %8034 = vpow2.f32 %v2413_v50  ;;  %2425 = vadd.xlane.f32.xlu0 %v2424_v25  ;;  %v2402_v50 = vsub.f32 %v8613_v21, %v8644_v7 }
 0x300   : > { %v2415_v51 = vmul.f32 1.442695, %v2402_v50 }
 0x301   : > { %v8648_v8 = vpop.xlane.xlu1 %2392  ;;  %v8650_v9 = vpop.xlane.xlu0 %2395 }
 0x302   : > { %8036 = vpow2.f32 %v2415_v51  ;;  %v2403_v25 = vsub.f32 %v8624_v40, %v8648_v8  ;;  %v2404_v40 = vsub.f32 %v8626_v41, %v8650_v9 }
 0x303   : > { %v8652_v10 = vpop.eup %8030 }
 0x304   : > { %v2427_v11 = vsel %vm1988_vm3, %v8652_v10, 0.0  ;;  %v2419_v7 = vmul.f32 1.442695, %v2404_v40 }
 0x305   : > { %2428 = vadd.xlane.f32.xlu1 %v2427_v11  ;;  %v1703_v12 = vpop.permute.xlu1 %1702  ;;  %v1697_v13 = vpop.permute.xlu0 %1696  ;;  %v2417_v11 = vmul.f32 1.442695, %v2403_v25 }
 0x306   : > { %v1724_v14 = vcombine.low %v1691_v55, %v1703_v12  ;;  %v1725_v15 = vcombine.high %v1691_v55, %v1703_v12  ;;  %v1708_v16 = vcombine.low %v8441_v28, %v1697_v13  ;;  %v1709_v18 = vcombine.high %v8441_v28, %v1697_v13 }
 0x307   : > { %v8657_v17 = vpop.eup %8032  ;;  %8038 = vpow2.f32 %v2417_v11 }
 0x308   : > { %v1732_v19 = vrot.slane %v1724_v14, %v8450_v42  ;;  %v1739_v20 = vrot.slane %v1725_v15, %v8450_v42  ;;  %v1716_v22 = vrot.slane %v1708_v16, %v8450_v42  ;;  %v2430_v23 = vsel %vm1988_vm3, %v8657_v17, 0.0 }
 0x309   : > { %v1723_v27 = vrot.slane %v1709_v18, %v8450_v42  ;;  %2431 = vadd.xlane.f32.xlu0 %v2430_v23  ;;  %8040 = vpow2.f32 %v2419_v7 }
 0x30a   : > { %v1740_v29 = vcombine.low %v1716_v22, %v1732_v19  ;;  %v1741_v31 = vcombine.high %v1716_v22, %v1732_v19 }
 0x30b   : > { %v8666_v32 = vpop.eup %8034  ;;  %v1756_v33 = vcombine.low %v1723_v27, %v1739_v20  ;;  %v1757_v34 = vcombine.high %v1723_v27, %v1739_v20 }
 0x30c   : > { %v1748_v28 = vrot.slane %v1740_v29, %v8453_v49  ;;  %v1755_v35 = vrot.slane %v1741_v31, %v8453_v49  ;;  %v2433_v36 = vsel %vm1988_vm3, %v8666_v32, 0.0 }
 0x30d   : > { %v1764_v37 = vrot.slane %v1756_v33, %v8453_v49  ;;  %v1771_v39 = vrot.slane %v1757_v34, %v8453_v49  ;;  %2434 = vadd.xlane.f32.xlu0 %v2433_v36 }
 0x30e   : > { %v1844_v43 = vcombine.low %v1748_v28, %v1755_v35  ;;  %v7200_v44 = vcombine.high %v1748_v28, %v1755_v35 }
 0x30f   : > { %v1860_v45 = vcombine.low %v1764_v37, %v1771_v39  ;;  %v7201_v46 = vcombine.high %v1764_v37, %v1771_v39  ;;  %v8698_v12 = vpop.eup %8036 }
 0x310   : > { %v1851_v47 = vrot.slane %v1844_v43, %v8450_v42  ;;  %v1859_v48 = vrot.slane %v7200_v44, %v8450_v42  ;;  %v2436_v13 = vsel %vm1988_vm3, %v8698_v12, 0.0 }
 0x311   : > { %v1867_v24 = vrot.slane %v1860_v45, %v8450_v42  ;;  %v1875_v54 = vrot.slane %v7201_v46, %v8450_v42 }
 0x312   : > { %v1876_v55 = vcombine.low %v1851_v47, %v1859_v48  ;;  %v1877_v56 = vcombine.high %v1851_v47, %v1859_v48 }
 0x313   : > { %v1892_v57 = vcombine.low %v1867_v24, %v1875_v54  ;;  %v1893_v58 = vcombine.high %v1867_v24, %v1875_v54 }
 0x314   : > { %v1884_v52 = vrot.slane %v1876_v55, %v8453_v49  ;;  %v1891_v53 = vrot.slane %v1877_v56, %v8453_v49  ;;  %v8702_v14 = vpop.eup %8038 }
 0x315   : > { %v1900_v60 = vrot.slane %v1892_v57, %v8453_v49  ;;  %v1907_v61 = vrot.slane %v1893_v58, %v8453_v49  ;;  %v2439_v21 = vsel %vm1988_vm3, %v8702_v14, 0.0 }
 0x316   : > { %1698 = vrot.lane.b32.xlu1 %v8680_v59, %s8158_s9  ;;  %v8710_v8 = vpop.eup %8040 }
 0x317   : > { %v1908_v62 = vcombine.low %v1884_v52, %v1900_v60  ;;  %v1909_v63 = vcombine.high %v1884_v52, %v1900_v60  ;;  %v1910_v0 = vcombine.low %v1891_v53, %v1907_v61  ;;  %v1911_v1 = vcombine.high %v1891_v53, %v1907_v61 }
 0x318   : > { %v2442_v15 = vsel %vm1988_vm3, %v8710_v8, 0.0 }
 0x319   : > { %v1980_v2 = vpack.c.bf16 %v1908_v62, %v1908_v62  ;;  %v1981_v4 = vpack.c.bf16 %v1909_v63, %v1909_v63  ;;  %v1982_v9 = vpack.c.bf16 %v1910_v0, %v1910_v0  ;;  %v1983_v29 = vpack.c.bf16 %v1911_v1, %v1911_v1 }
 0x31b   : > { %v2474_v26 = vsel %vm2472_vm12, %v1980_v2, 0  ;;  %v2520_v30 = vsel %vm2472_vm12, %v1981_v4, 0  ;;  %v2566_v34 = vsel %vm2472_vm12, %v1982_v9, 0  ;;  %v2612_v28 = vsel %vm2472_vm12, %v1983_v29, 0 }
 0x31c   : > { %7568 = vmatpush3.bf16.msra.mxu1 %v2474_v26  ;;  %7574 = vmatpush3.bf16.msra.mxu0 %v2520_v30 }
 0x31d   : > { %7579 = vmatprep.subr.bf16.mxu1 %v8154_v3  ;;  %7585 = vmatprep.subr.bf16.mxu0 %v8154_v3 }
 0x323   : > { %1692 = vrot.lane.b32.xlu0 %v8680_v59, %s8157_s25 }
 0x33a   : > { %2437 = vadd.xlane.f32.xlu1 %v2436_v13 }
 0x342   : > { %2440 = vadd.xlane.f32.xlu0 %v2439_v21 }
 0x34b   : > { %1704 = vrot.lane.b32.xlu1 %v8680_v59, %s8156_s30 }
 0x36f   : > { %2443 = vadd.xlane.f32.xlu1 %v2442_v15 }
 0x386   : > { %v2423_v16 = vpop.xlane.xlu1 %2422 }
 0x387   : > { %8042 = vrcp.f32 %v2423_v16  ;;  %v2426_v18 = vpop.xlane.xlu0 %2425 }
 0x388   : > { %8044 = vrcp.f32 %v2426_v18 }
 0x38e   : > { %v2429_v19 = vpop.xlane.xlu1 %2428 }
 0x38f   : > { %8046 = vrcp.f32 %v2429_v19 }
 0x392   : > { %v2432_v20 = vpop.xlane.xlu0 %2431  ;;  %v1699_v43 = vpop.permute.xlu1 %1698 }
 0x393   : > { %8048 = vrcp.f32 %v2432_v20  ;;  %v1776_v45 = vcombine.low %v8680_v59, %v1699_v43  ;;  %v1777_v46 = vcombine.high %v8680_v59, %v1699_v43 }
 0x394   : > { %v8043_v22 = vpop.eup %8042 }
 0x395   : > { %v8045_v23 = vpop.eup %8044  ;;  %v2453_v41 = vmul.f32 %v8043_v22, %v8638_v5  ;;  %v1784_v54 = vrot.slane %v1776_v45, %v8450_v42  ;;  %v1791_v55 = vrot.slane %v1777_v46, %v8450_v42  ;;  %v8102_v46 = vld [vmem:[%s8296_s4 + $0x8] sm:$0xff]  }
 0x396   : > { %v2454_v27 = vmul.f32 %v8045_v23, %v8640_v6  ;;  %v2435_v44 = vpop.xlane.xlu0 %2434 }
 0x397   : > { %v2461_v31 = vpack.c.bf16 %v2453_v41, %v2453_v41  ;;  %8050 = vrcp.f32 %v2435_v44 }
 0x398   : > { %v2462_v33 = vpack.c.bf16 %v2454_v27, %v2454_v27 }
 0x399   : > { %7570 = vmatmul.mubr.msk.bf16.vlgmr.msra.gmra.mxu1 %vm1988_vm3, %v2461_v31 }
 0x39a   : > { %7576 = vmatmul.mubr.msk.bf16.vlgmr.msra.gmra.mxu0 %vm1988_vm3, %v2462_v33  ;;  %7580 = vmatpush3.bf16.msra.mxu1 %v2566_v34  ;;  %v1693_v47 = vpop.permute.xlu0 %1692 }
 0x39b   : > { %7586 = vmatpush3.bf16.msra.mxu0 %v2612_v28  ;;  %7581 = vmatprep.mubr.msk.bf16.mxu1 %vm8155_vm1, %v8154_v3 }
 0x39c   : > { %v8047_v5 = vpop.eup %8046  ;;  %7587 = vmatprep.mubr.msk.bf16.mxu0 %vm8155_vm1, %v8154_v3  ;;  %7591 = vmatprep.subr.bf16.mxu1 %v8154_v3 }
 0x39d   : > { %v2455_v6 = vmul.f32 %v8047_v5, %v8652_v10  ;;  %7597 = vmatprep.subr.bf16.mxu0 %v8154_v3 }
 0x39f   : > { %v2463_v35 = vpack.c.bf16 %v2455_v6, %v2455_v6 }
 0x3a0   : > { %v8049_v36 = vpop.eup %8048 }
 0x3a1   : > { %7582 = vmatmul.mubr.msk.bf16.vlgmr.msra.gmra.mxu1 %vm1988_vm3, %v2463_v35  ;;  %v2456_v37 = vmul.f32 %v8049_v36, %v8657_v17 }
 0x3a2   : > { %7593 = vmatprep.mubr.msk.bf16.mxu1 %vm8155_vm1, %v8154_v3 }
 0x3a3   : > { %v2464_v39 = vpack.c.bf16 %v2456_v37, %v2456_v37 }
 0x3a4   : > { %v8051_v7 = vpop.eup %8050 }
 0x3a5   : > { %7588 = vmatmul.mubr.msk.bf16.vlgmr.msra.gmra.mxu0 %vm1988_vm3, %v2464_v39  ;;  %v2457_v31 = vmul.f32 %v8051_v7, %v8666_v32 }
 0x3a6   : > { %7599 = vmatprep.mubr.msk.bf16.mxu0 %vm8155_vm1, %v8154_v3 }
 0x3a7   : > { %v2465_v36 = vpack.c.bf16 %v2457_v31, %v2457_v31 }
 0x3c3   : > { %v2438_v10 = vpop.xlane.xlu1 %2437 }
 0x3c4   : > { %8052 = vrcp.f32 %v2438_v10 }
 0x3c7   : > { %v1705_v48 = vpop.permute.xlu1 %1704 }
 0x3c8   : > { %v1792_v24 = vcombine.low %v1693_v47, %v1705_v48  ;;  %v1793_v17 = vcombine.high %v1693_v47, %v1705_v48  ;;  %v8103_v47 = vld [vmem:[%s8296_s4] sm:$0xff]   ;;  %s8161_s4 = smov 16  }
 0x3ca   : > { %v1800_v56 = vrot.slane %v1792_v24, %v8450_v42  ;;  %v1807_v57 = vrot.slane %v1793_v17, %v8450_v42 }
 0x3cb   : > { %v2441_v0 = vpop.xlane.xlu0 %2440 }
 0x3cc   : > { %v1808_v58 = vcombine.low %v1784_v54, %v1800_v56  ;;  %v1809_v52 = vcombine.high %v1784_v54, %v1800_v56  ;;  %v1824_v53 = vcombine.low %v1791_v55, %v1807_v57  ;;  %v1825_v60 = vcombine.high %v1791_v55, %v1807_v57 }
 0x3cd   : > { %8054 = vrcp.f32 %v2441_v0 }
 0x3ce   : > { %v1816_v59 = vrot.slane %v1808_v58, %v8453_v49  ;;  %v1823_v61 = vrot.slane %v1809_v52, %v8453_v49  ;;  %v1832_v62 = vrot.slane %v1824_v53, %v8453_v49  ;;  %v1839_v63 = vrot.slane %v1825_v60, %v8453_v49 }
 0x3d0   : > { %v1912_v1 = vcombine.low %v1816_v59, %v1823_v61  ;;  %v7202_v2 = vcombine.high %v1816_v59, %v1823_v61  ;;  %v1928_v4 = vcombine.low %v1832_v62, %v1839_v63  ;;  %v7203_v26 = vcombine.high %v1832_v62, %v1839_v63 }
 0x3d1   : > { %v8053_v20 = vpop.eup %8052 }
 0x3d2   : > { %v1919_v30 = vrot.slane %v1912_v1, %v8450_v42  ;;  %v1927_v50 = vrot.slane %v7202_v2, %v8450_v42  ;;  %v1935_v51 = vrot.slane %v1928_v4, %v8450_v42  ;;  %v1943_v25 = vrot.slane %v7203_v26, %v8450_v42 }
 0x3d3   : > { %v2458_v33 = vmul.f32 %v8053_v20, %v8698_v12 }
 0x3d4   : > { %v1944_v11 = vcombine.low %v1919_v30, %v1927_v50  ;;  %v1960_v13 = vcombine.low %v1935_v51, %v1943_v25  ;;  %v1945_v21 = vcombine.high %v1919_v30, %v1927_v50  ;;  %v1961_v40 = vcombine.high %v1935_v51, %v1943_v25 }
 0x3d5   : > { %v2466_v37 = vpack.c.bf16 %v2458_v33, %v2458_v33 }
 0x3d6   : > { %v1952_v15 = vrot.slane %v1944_v11, %v8453_v49  ;;  %v1968_v16 = vrot.slane %v1960_v13, %v8453_v49  ;;  %v1959_v18 = vrot.slane %v1945_v21, %v8453_v49  ;;  %v1975_v19 = vrot.slane %v1961_v40, %v8453_v49 }
 0x3d8   : > { %v1976_v22 = vcombine.low %v1952_v15, %v1968_v16  ;;  %v1977_v23 = vcombine.high %v1952_v15, %v1968_v16  ;;  %v1978_v41 = vcombine.low %v1959_v18, %v1975_v19  ;;  %v1979_v9 = vcombine.high %v1959_v18, %v1975_v19 }
 0x3da   : > { %v1984_v27 = vpack.c.bf16 %v1976_v22, %v1976_v22  ;;  %v1985_v29 = vpack.c.bf16 %v1977_v23, %v1977_v23  ;;  %v1986_v5 = vpack.c.bf16 %v1978_v41, %v1978_v41  ;;  %v1987_v6 = vpack.c.bf16 %v1979_v9, %v1979_v9  ;;  %v8055_v35 = vpop.eup %8054 }
 0x3db   : > { %v2459_v39 = vmul.f32 %v8055_v35, %v8702_v14 }
 0x3dc   : > { %v2658_v34 = vsel %vm2472_vm12, %v1984_v27, 0  ;;  %v2704_v28 = vsel %vm2472_vm12, %v1985_v29, 0  ;;  %v2750_v32 = vsel %vm2472_vm12, %v1986_v5, 0  ;;  %v2796_v12 = vsel %vm2472_vm12, %v1987_v6, 0 }
 0x3dd   : > { %7592 = vmatpush3.bf16.msra.mxu1 %v2658_v34  ;;  %7598 = vmatpush3.bf16.msra.mxu0 %v2704_v28  ;;  %v2467_v43 = vpack.c.bf16 %v2459_v39, %v2459_v39 }
 0x3de   : > { %7603 = vmatprep.subr.bf16.mxu1 %v8154_v3  ;;  %7609 = vmatprep.subr.bf16.mxu0 %v8154_v3 }
 0x3e0   : > { %7594 = vmatmul.mubr.msk.bf16.vlgmr.msra.gmra.mxu1 %vm1988_vm3, %v2465_v36  ;;  %7600 = vmatmul.mubr.msk.bf16.vlgmr.msra.gmra.mxu0 %vm1988_vm3, %v2466_v37 }
 0x3e1   : > { %7604 = vmatpush3.bf16.msra.mxu1 %v2750_v32  ;;  %7610 = vmatpush3.bf16.msra.mxu0 %v2796_v12 }
 0x3e2   : > { %7605 = vmatprep.mubr.msk.bf16.mxu1 %vm8155_vm1, %v8154_v3  ;;  %7611 = vmatprep.mubr.msk.bf16.mxu0 %vm8155_vm1, %v8154_v3 }
 0x3e3   : > { %7615 = vmatprep.subr.bf16.mxu1 %v8154_v3  ;;  %7623 = vmatprep.subr.bf16.mxu0 %v8154_v3 }
 0x3e8   : > { %7606 = vmatmul.mubr.msk.bf16.vlgmr.msra.gmra.mxu1 %vm1988_vm3, %v2467_v43 }
 0x3e9   : > { %7619 = vmatprep.mubr.msk.bf16.mxu1 %vm8155_vm1, %v8154_v3 }
 0x3f8   : > { %v2444_v44 = vpop.xlane.xlu1 %2443 }
 0x3f9   : > { %8056 = vrcp.f32 %v2444_v44 }
 0x406   : > { %v8057_v10 = vpop.eup %8056 }
 0x407   : > { %v2460_v45 = vmul.f32 %v8057_v10, %v8710_v8 }
 0x409   : > { %v2468_v14 = vpack.c.bf16 %v2460_v45, %v2460_v45 }
 0x40b   : > { %7612 = vmatmul.mubr.msk.bf16.vlgmr.msra.gmra.mxu0 %vm1988_vm3, %v2468_v14 }
 0x40c   : > { %7624 = vmatpush3.bf16.msra.mxu0 %v8102_v46  ;;  %7627 = vmatprep.mubr.msk.bf16.mxu0 %vm8155_vm1, %v8154_v3 }
 0x40d   : > { %7625 = vmatprep.subr.bf16.mxu0 %v8154_v3 }
 0x410   : > { %7626 = vmatpush3.bf16.msra.mxu0 %v8103_v47 }
 0x411   : > { %7639 = vmatprep.subr.bf16.mxu0 %v8154_v3 }
 0x459   : > { %v2510_v48 = vpop.f32.mrf.mxu1 }
 0x45a   : > { %v2556_v24 = vpop.f32.mrf.mxu0 }
 0x45b   : > { %v7571_v17 = vpop.f32.mrf.mxu1 }
 0x45c   : > { %v7577_v54 = vpop.f32.mrf.mxu0 }
 0x45d   : > { %v2513_v55 = vpop.f32.mrf.mxu1 }
 0x45e   : > { %v2559_v8 = vpop.f32.mrf.mxu0 }
 0x45f   : > { %v7572_v56 = vpop.f32.mrf.mxu1 }
 0x460   : > { %v7578_v57 = vpop.f32.mrf.mxu0 }
 0x461   : > { %v2602_v58 = vpop.f32.mrf.mxu1 }
 0x462   : > { %v2838_v52 = vcombine.low %v2510_v48, %v2602_v58  ;;  %v2839_v53 = vcombine.high %v2510_v48, %v2602_v58 }
 0x463   : > { %v7583_v60 = vpop.f32.mrf.mxu1 }
 0x464   : > { %v2846_v2 = vrot.slane %v2838_v52, %v8450_v42  ;;  %v2853_v4 = vrot.slane %v2839_v53, %v8450_v42 }
 0x465   : > { %v2605_v59 = vpop.f32.mrf.mxu1  ;;  %v2648_v61 = vpop.f32.mrf.mxu0 }
 0x466   : > { %v2854_v62 = vcombine.low %v2556_v24, %v2648_v61  ;;  %v2855_v63 = vcombine.high %v2556_v24, %v2648_v61 }
 0x467   : > { %v7584_v0 = vpop.f32.mrf.mxu1  ;;  %v7589_v1 = vpop.f32.mrf.mxu0 }
 0x468   : > { %v2862_v26 = vrot.slane %v2854_v62, %v8450_v42  ;;  %v2869_v30 = vrot.slane %v2855_v63, %v8450_v42 }
 0x469   : > { %v2651_v50 = vpop.f32.mrf.mxu0 }
 0x46a   : > { %v2870_v51 = vcombine.low %v2846_v2, %v2862_v26  ;;  %v2871_v25 = vcombine.high %v2846_v2, %v2862_v26  ;;  %v2886_v11 = vcombine.low %v2853_v4, %v2869_v30  ;;  %v2887_v13 = vcombine.high %v2853_v4, %v2869_v30 }
 0x46b   : > { %v7590_v21 = vpop.f32.mrf.mxu0 }
 0x46c   : > { %v2878_v40 = vrot.slane %v2870_v51, %v8453_v49  ;;  %v2885_v7 = vrot.slane %v2871_v25, %v8453_v49  ;;  %v2894_v15 = vrot.slane %v2886_v11, %v8453_v49  ;;  %v2901_v16 = vrot.slane %v2887_v13, %v8453_v49 }
 0x46e   : > { %v2974_v18 = vcombine.low %v2878_v40, %v2885_v7  ;;  %v7220_v19 = vcombine.high %v2878_v40, %v2885_v7  ;;  %v2990_v20 = vcombine.low %v2894_v15, %v2901_v16  ;;  %v7221_v22 = vcombine.high %v2894_v15, %v2901_v16  ;;  %v7974_v40 = vld [vmem:[%s8323_s6 + $0x8] sm:$0xff]  }
 0x46f   : > { %7616 = vmatpush3.bf16.msra.mxu1 %v7974_v40 }
 0x470   : > { %v2981_v23 = vrot.slane %v2974_v18, %v8450_v42  ;;  %v2989_v41 = vrot.slane %v7220_v19, %v8450_v42  ;;  %v2997_v9 = vrot.slane %v2990_v20, %v8450_v42  ;;  %v3005_v27 = vrot.slane %v7221_v22, %v8450_v42  ;;  %7617 = vmatprep.subr.bf16.mxu1 %v8154_v3 }
 0x472   : > { %v3007_v29 = vcombine.high %v2981_v23, %v2989_v41  ;;  %v3023_v31 = vcombine.high %v2997_v9, %v3005_v27  ;;  %v3006_v33 = vcombine.low %v2981_v23, %v2989_v41  ;;  %v3022_v34 = vcombine.low %v2997_v9, %v3005_v27 }
 0x474   : > { %v8793_v28 = vrot.slane %v3007_v29, %v8453_v49  ;;  %v8796_v5 = vrot.slane %v3023_v31, %v8453_v49  ;;  %v8799_v6 = vrot.slane %v3006_v33, %v8453_v49  ;;  %v8802_v35 = vrot.slane %v3022_v34, %v8453_v49  ;;  %v7975_v31 = vld [vmem:[%s8323_s6] sm:$0xff]  }
 0x475   : > { %7618 = vmatpush3.bf16.msra.mxu1 %v7975_v31 }
 0x476   : > { %v3040_v36 = vcombine.low %v8793_v28, %v8796_v5  ;;  %v3038_v37 = vcombine.low %v8799_v6, %v8802_v35  ;;  %v3039_v32 = vcombine.high %v8799_v6, %v8802_v35  ;;  %v3041_v12 = vcombine.high %v8793_v28, %v8796_v5  ;;  %7631 = vmatprep.subr.bf16.mxu1 %v8154_v3  ;;  %v8104_v35 = vld [vmem:[%s8301_s0 + $0x8] sm:$0xff]  }
 0x4a0   : > { %v2694_v39 = vpop.f32.mrf.mxu1  ;;  %v2740_v43 = vpop.f32.mrf.mxu0 }
 0x4a2   : > { %v7595_v44 = vpop.f32.mrf.mxu1  ;;  %v7601_v10 = vpop.f32.mrf.mxu0 }
 0x4a4   : > { %v2697_v45 = vpop.f32.mrf.mxu1  ;;  %v2743_v14 = vpop.f32.mrf.mxu0 }
 0x4a6   : > { %v7596_v46 = vpop.f32.mrf.mxu1  ;;  %v7602_v47 = vpop.f32.mrf.mxu0 }
 0x4a8   : > { %v2786_v48 = vpop.f32.mrf.mxu1 }
 0x4a9   : > { %v2906_v55 = vcombine.low %v2694_v39, %v2786_v48  ;;  %v2907_v8 = vcombine.high %v2694_v39, %v2786_v48 }
 0x4aa   : > { %v7607_v24 = vpop.f32.mrf.mxu1 }
 0x4ab   : > { %v2914_v53 = vrot.slane %v2906_v55, %v8450_v42  ;;  %v2921_v60 = vrot.slane %v2907_v8, %v8450_v42 }
 0x4ac   : > { %v2789_v17 = vpop.f32.mrf.mxu1 }
 0x4ae   : > { %v7608_v54 = vpop.f32.mrf.mxu1 }
 0x4cb   : > { %v2832_v56 = vpop.f32.mrf.mxu0 }
 0x4cc   : > { %v2922_v57 = vcombine.low %v2740_v43, %v2832_v56  ;;  %v2923_v58 = vcombine.high %v2740_v43, %v2832_v56 }
 0x4cd   : > { %v7613_v52 = vpop.f32.mrf.mxu0 }
 0x4ce   : > { %v2930_v59 = vrot.slane %v2922_v57, %v8450_v42  ;;  %v2937_v61 = vrot.slane %v2923_v58, %v8450_v42  ;;  %v7224_v57 = vld [vmem:[%s8329_s21] ss:$0 sm:$0xff] }
 0x4cf   : > { %v2835_v62 = vpop.f32.mrf.mxu0 }
 0x4d0   : > { %v2938_v63 = vcombine.low %v2914_v53, %v2930_v59  ;;  %v2939_v0 = vcombine.high %v2914_v53, %v2930_v59  ;;  %v2954_v1 = vcombine.low %v2921_v60, %v2937_v61  ;;  %v2955_v2 = vcombine.high %v2921_v60, %v2937_v61  ;;  %v8106_v60 = vld [vmem:[#allocation2] sm:$0xff] }
 0x4d1   : > { %v7614_v4 = vpop.f32.mrf.mxu0 }
 0x4d2   : > { %v2946_v26 = vrot.slane %v2938_v63, %v8453_v49  ;;  %v2953_v30 = vrot.slane %v2939_v0, %v8453_v49  ;;  %v2962_v50 = vrot.slane %v2954_v1, %v8453_v49  ;;  %v2969_v51 = vrot.slane %v2955_v2, %v8453_v49  ;;  %v8107_v1 = vld [vmem:[#allocation2 + $0x8] sm:$0xff] }
 0x4d4   : > { %v3042_v25 = vcombine.low %v2946_v26, %v2953_v30  ;;  %v7222_v11 = vcombine.high %v2946_v26, %v2953_v30  ;;  %v3058_v13 = vcombine.low %v2962_v50, %v2969_v51  ;;  %v7223_v21 = vcombine.high %v2962_v50, %v2969_v51  ;;  %v3250_v26 = vld [vmem:[%s9593_s27] sm:$0xff]  ;;  %v3251_v30 = vld [vmem:[%s9593_s27 + $0x8] sm:$0xff] }
 0x4d5   : > { %v3261_v50 = vpack.c.bf16 %v3251_v30, %v3250_v26 }
 0x4d6   : > { %v3049_v7 = vrot.slane %v3042_v25, %v8450_v42  ;;  %v3057_v15 = vrot.slane %v7222_v11, %v8450_v42  ;;  %v3065_v16 = vrot.slane %v3058_v13, %v8450_v42  ;;  %v3073_v18 = vrot.slane %v7223_v21, %v8450_v42 }
 0x4d8   : > { %v3075_v19 = vcombine.high %v3049_v7, %v3057_v15  ;;  %v3091_v20 = vcombine.high %v3065_v16, %v3073_v18  ;;  %v3074_v22 = vcombine.low %v3049_v7, %v3057_v15  ;;  %v3090_v23 = vcombine.low %v3065_v16, %v3073_v18 }
 0x4da   : > { %v3089_v41 = vrot.slane %v3075_v19, %v8453_v49  ;;  %v3105_v9 = vrot.slane %v3091_v20, %v8453_v49  ;;  %v3082_v27 = vrot.slane %v3074_v22, %v8453_v49  ;;  %v3098_v29 = vrot.slane %v3090_v23, %v8453_v49  ;;  %v8869_v20 = vld [vmem:[%s9590_s14] ss:$0 sm:$0xff]  ;;  %s9594_s14 = sld [smem:[#allocation13_spill]] }
 0x4dc   : > { %v3108_v33 = vcombine.low %v3089_v41, %v3105_v9  ;;  %v3107_v34 = vcombine.high %v3082_v27, %v3098_v29  ;;  %v3106_v39 = vcombine.low %v3082_v27, %v3098_v29  ;;  %v3109_v10 = vcombine.high %v3089_v41, %v3105_v9 }
 0x4de   : > { %v7943_v43 = vpack.i.bf16 %v3108_v33, %v3040_v36  ;;  %v7938_v44 = vpack.i.bf16 %v3107_v34, %v3039_v32  ;;  %v7948_v45 = vpack.i.bf16 %v3109_v10, %v3041_v12  ;;  %v7228_v10 = vld [vmem:[%s8335_s2] ss:$0 sm:$0xff] }
 0x4e0   : > { %7944 = vrot.lane.b32.xlu1 %v7943_v43, %s8161_s4  ;;  %7939 = vrot.lane.b32.xlu0 %v7938_v44, %s8162_s20 }
 0x4e4   : > { %7949 = vrot.lane.b32.xlu0 %v7948_v45, %s8163_s3 }
 0x552   : > { %v7945_v14 = vpop.permute.xlu1 %7944  ;;  %v7940_v46 = vpop.permute.xlu0 %7939 }
 0x553   : > { %v7942_v47 = vunpack.i.h.bf16 %v7940_v46  ;;  %v7941_v48 = vunpack.i.l.bf16 %v7940_v46  ;;  %v7947_v36 = vunpack.i.h.bf16 %v7945_v14  ;;  %v7946_v32 = vunpack.i.l.bf16 %v7945_v14 }
 0x555   : > { %v3134_v24 = vsel %vm1988_vm3, %v3038_v37, %v7941_v48  ;;  %v3135_v17 = vsel %vm1988_vm3, %v3106_v39, %v7942_v47  ;;  %v8105_v37 = vld [vmem:[%s8301_s0] sm:$0xff]  }
 0x556   : > { %v7950_v28 = vpop.permute.xlu0 %7949  ;;  %v3137_v54 = vsel %vm3136_vm13, %v3134_v24, %v7946_v32  ;;  %v3138_v55 = vsel %vm3136_vm13, %v3135_v17, %v7947_v36  ;;  %v7229_v47 = vld [vmem:[%s8341_s26] ss:$0 sm:$0xff]  ;;  %v8109_v17 = vld [vmem:[%s8312_s5 + $0x8] sm:$0xff]  }
 0x557   : > { %v7952_v5 = vunpack.i.h.bf16 %v7950_v28  ;;  %v7951_v12 = vunpack.i.l.bf16 %v7950_v28  ;;  %v8110_v28 = vld [vmem:[%s8312_s5] sm:$0xff]  }
 0x559   : > { %v3140_v8 = vsel %vm3139_vm14, %v3137_v54, %v7951_v12  ;;  %v3141_v56 = vsel %vm3139_vm14, %v3138_v55, %v7952_v5 }
 0x55a   : > { %v3142_v6 = vpack.c.bf16 %v3141_v56, %v3140_v8 }
 0x55c   : > { %7620 = vmatmul.mubr.msk.bf16.vlgmr.msra.gmra.mxu1 %vm925_vm2, %v3142_v6 }
 0x55d   : > { %7632 = vmatpush3.bf16.msra.mxu1 %v8104_v35  ;;  %7635 = vmatprep.mubr.msk.bf16.mxu1 %vm8155_vm1, %v8154_v3 }
 0x55e   : > { %7633 = vmatprep.subr.bf16.mxu1 %v8154_v3 }
 0x561   : > { %7634 = vmatpush3.bf16.msra.mxu1 %v8105_v37 }
 0x562   : > { %7647 = vmatprep.subr.bf16.mxu1 %v8154_v3 }
 0x564   : > { %7636 = vmatmul.mubr.msk.bf16.vlgmr.msra.gmra.mxu1 %vm925_vm2, %v3261_v50 }
 0x565   : > { %7649 = vmatprep.mubr.msk.bf16.mxu1 %vm8155_vm1, %v8154_v3 }
 0x61c   : > { %v3198_v58 = vpop.f32.mrf.mxu1 }
 0x61d   : > { %v3199_v52 = vadd.f32 %v7224_v57, %v3198_v58 }
 0x61e   : > { %v7621_v53 = vpop.f32.mrf.mxu1 }
 0x61f   : > { %v3205_v59 = vadd.f32 %v8106_v60, %v3199_v52 }
 0x620   : > { %v3201_v61 = vpop.f32.mrf.mxu1 }
 0x621   : > { %v3202_v62 = vadd.f32 %v7224_v57, %v3201_v61  ;;  %v3207_v63 = vsel %vm925_vm2, %v3205_v59, 0.0 }
 0x622   : > { %3208 = vadd.xlane.f32.xlu1 %v3207_v63  ;;  %v7622_v0 = vpop.f32.mrf.mxu1 }
 0x623   : > { %v3206_v2 = vadd.f32 %v8107_v1, %v3202_v62 }
 0x624   : > { %v3343_v19 = vpop.f32.mrf.mxu1 }
 0x625   : > { %v3210_v4 = vsel %vm925_vm2, %v3206_v2, 0.0  ;;  %v3344_v22 = vadd.f32 %v8869_v20, %v3343_v19 }
 0x626   : > { %3211 = vadd.xlane.f32.xlu0 %v3210_v4  ;;  %v7637_v23 = vpop.f32.mrf.mxu1 }
 0x628   : > { %v8874_v41 = vpop.f32.mrf.mxu1 }
 0x62a   : > { %v7638_v9 = vpop.f32.mrf.mxu1 }
 0x6ab   : > { %v3209_v51 = vpop.xlane.xlu1 %3208 }
 0x6ac   : > { %v3214_v25 = vmul.f32 0.03125, %v3209_v51 }
 0x6ae   : > { %v3216_v11 = vsub.f32 %v3205_v59, %v3214_v25 }
 0x6af   : > { %v3212_v13 = vpop.xlane.xlu0 %3211 }
 0x6b0   : > { %v3215_v21 = vmul.f32 0.03125, %v3212_v13  ;;  %v3218_v40 = vmul.f32 %v3216_v11, %v3216_v11 }
 0x6b2   : > { %v3217_v7 = vsub.f32 %v3206_v2, %v3215_v21  ;;  %v3220_v15 = vsel %vm925_vm2, %v3218_v40, 0.0 }
 0x6b3   : > { %3221 = vadd.xlane.f32.xlu0 %v3220_v15 }
 0x6b4   : > { %v3219_v16 = vmul.f32 %v3217_v7, %v3217_v7 }
 0x6b6   : > { %v3223_v18 = vsel %vm925_vm2, %v3219_v16, 0.0 }
 0x6b7   : > { %3224 = vadd.xlane.f32.xlu1 %v3223_v18 }
 0x6c8   : > { %3699 = vrot.lane.b32.xlu1 %v3344_v22, %s8158_s9 }
 0x6c9   : > { %3693 = vrot.lane.b32.xlu0 %v3344_v22, %s8157_s25 }
 0x6cc   : > { %3705 = vrot.lane.b32.xlu1 %v3344_v22, %s8156_s30 }
 0x73c   : > { %v3222_v27 = vpop.xlane.xlu0 %3221 }
 0x73d   : > { %v3226_v29 = vmul.f32 0.03125, %v3222_v27 }
 0x73f   : > { %v3228_v31 = vadd.f32 1e-05, %v3226_v29 }
 0x740   : > { %v3225_v33 = vpop.xlane.xlu1 %3224  ;;  %v3694_v54 = vpop.permute.xlu0 %3693 }
 0x741   : > { %8058 = vrsqrt.f32 %v3228_v31  ;;  %v3227_v34 = vmul.f32 0.03125, %v3225_v33 }
 0x743   : > { %v3229_v39 = vadd.f32 1e-05, %v3227_v34 }
 0x744   : > { %v3700_v5 = vpop.permute.xlu1 %3699 }
 0x745   : > { %8060 = vrsqrt.f32 %v3229_v39  ;;  %v3711_v55 = vcombine.low %v3344_v22, %v3700_v5  ;;  %v3712_v8 = vcombine.high %v3344_v22, %v3700_v5  ;;  %v8111_v39 = vld [vmem:[%s9591_s24] ss:$0 sm:$0xff] }
 0x747   : > { %v3719_v35 = vrot.slane %v3711_v55, %v8450_v42  ;;  %v3726_v37 = vrot.slane %v3712_v8, %v8450_v42 }
 0x748   : > { %v3706_v12 = vpop.permute.xlu1 %3705 }
 0x749   : > { %v3727_v56 = vcombine.low %v3694_v54, %v3706_v12  ;;  %v3728_v6 = vcombine.high %v3694_v54, %v3706_v12 }
 0x74b   : > { %v3735_v57 = vrot.slane %v3727_v56, %v8450_v42  ;;  %v3742_v58 = vrot.slane %v3728_v6, %v8450_v42 }
 0x74d   : > { %v3743_v52 = vcombine.low %v3719_v35, %v3735_v57  ;;  %v3744_v53 = vcombine.high %v3719_v35, %v3735_v57  ;;  %v3759_v60 = vcombine.low %v3726_v37, %v3742_v58  ;;  %v3760_v59 = vcombine.high %v3726_v37, %v3742_v58 }
 0x74e   : > { %v8059_v43 = vpop.eup %8058 }
 0x74f   : > { %v3232_v44 = vmul.f32 %v8059_v43, %v3216_v11  ;;  %v3751_v61 = vrot.slane %v3743_v52, %v8453_v49  ;;  %v3758_v62 = vrot.slane %v3744_v53, %v8453_v49  ;;  %v3767_v63 = vrot.slane %v3759_v60, %v8453_v49 }
 0x750   : > { %v3774_v0 = vrot.slane %v3760_v59, %v8453_v49 }
 0x751   : > { %v3240_v46 = vmul.f32 %v7228_v10, %v3232_v44  ;;  %v3847_v1 = vcombine.low %v3751_v61, %v3758_v62  ;;  %v7237_v2 = vcombine.high %v3751_v61, %v3758_v62 }
 0x752   : > { %v8061_v45 = vpop.eup %8060  ;;  %v3863_v4 = vcombine.low %v3767_v63, %v3774_v0  ;;  %v7238_v26 = vcombine.high %v3767_v63, %v3774_v0 }
 0x753   : > { %v3233_v14 = vmul.f32 %v8061_v45, %v3217_v7  ;;  %v8879_v36 = vadd.f32 %v7229_v47, %v3240_v46  ;;  %v3854_v30 = vrot.slane %v3847_v1, %v8450_v42  ;;  %v3347_v45 = vadd.f32 %v8869_v20, %v8874_v41 }
 0x754   : > { %v3870_v51 = vrot.slane %v3863_v4, %v8450_v42  ;;  %v3878_v25 = vrot.slane %v7238_v26, %v8450_v42 }
 0x755   : > { %v3241_v48 = vmul.f32 %v7228_v10, %v3233_v14 }
 0x756   : > { %v3895_v13 = vcombine.low %v3870_v51, %v3878_v25  ;;  %v3896_v40 = vcombine.high %v3870_v51, %v3878_v25 }
 0x757   : > { %v8881_v32 = vadd.f32 %v7229_v47, %v3241_v48 }
 0x758   : > { %v3903_v15 = vrot.slane %v3895_v13, %v8453_v49  ;;  %v3910_v18 = vrot.slane %v3896_v40, %v8453_v49 }
 0x759   : > { %v3260_v24 = vpack.c.bf16 %v8881_v32, %v8879_v36 }
 0x75b   : > { %7628 = vmatmul.mubr.msk.bf16.vlgmr.msra.gmra.mxu0 %vm925_vm2, %v3260_v24 }
 0x75c   : > { %7640 = vmatpush3.bf16.msra.mxu0 %v8109_v17  ;;  %7643 = vmatprep.mubr.msk.bf16.mxu0 %vm8155_vm1, %v8154_v3 }
 0x75d   : > { %7641 = vmatprep.subr.bf16.mxu0 %v8154_v3 }
 0x760   : > { %7642 = vmatpush3.bf16.msra.mxu0 %v8110_v28 }
 0x761   : > { %7653 = vmatprep.subr.bf16.mxu0 %v8154_v3 }
 0x763   : > { %7644 = vmatmul.mubr.msk.bf16.vlgmr.msra.gmra.mxu0 %vm925_vm2, %v3261_v50  ;;  %v3862_v50 = vrot.slane %v7237_v2, %v8450_v42 }
 0x764   : > { %7655 = vmatprep.mubr.msk.bf16.mxu0 %vm8155_vm1, %v8154_v3 }
 0x765   : > { %v3879_v11 = vcombine.low %v3854_v30, %v3862_v50  ;;  %v3880_v21 = vcombine.high %v3854_v30, %v3862_v50 }
 0x767   : > { %v3887_v7 = vrot.slane %v3879_v11, %v8453_v49  ;;  %v3894_v16 = vrot.slane %v3880_v21, %v8453_v49 }
 0x769   : > { %v3911_v19 = vcombine.low %v3887_v7, %v3903_v15  ;;  %v3912_v22 = vcombine.high %v3887_v7, %v3903_v15  ;;  %v8911_v23 = vcombine.low %v3894_v16, %v3910_v18  ;;  %v8913_v9 = vcombine.high %v3894_v16, %v3910_v18 }
 0x76b   : > { %v3983_v27 = vpack.c.bf16 %v3911_v19, %v3911_v19  ;;  %v3984_v29 = vpack.c.bf16 %v3912_v22, %v3912_v22 }
 0x76d   : > { %v4295_v31 = vsel %vm1988_vm3, %v3983_v27, 0  ;;  %v4341_v33 = vsel %vm1988_vm3, %v3984_v29, 0 }
 0x76e   : > { %7648 = vmatpush3.bf16.xpose.msra.mxu1 %v4295_v31  ;;  %7654 = vmatpush3.bf16.xpose.msra.mxu0 %v4341_v33 }
 0x76f   : > { %7659 = vmatprep.subr.bf16.mxu1 %v8154_v3  ;;  %7665 = vmatprep.subr.bf16.mxu0 %v8154_v3 }
 0x81b   : > { %v3299_v34 = vpop.f32.mrf.mxu0 }
 0x81c   : > { %v3300_v43 = vadd.f32 %v8111_v39, %v3299_v34 }
 0x81d   : > { %v7629_v44 = vpop.f32.mrf.mxu0 }
 0x81e   : > { %3399 = vrot.lane.b32.xlu1 %v3300_v43, %s8158_s9  ;;  %3393 = vrot.lane.b32.xlu0 %v3300_v43, %s8157_s25 }
 0x81f   : > { %v3302_v10 = vpop.f32.mrf.mxu0 }
 0x820   : > { %v8928_v46 = vadd.f32 %v8111_v39, %v3302_v10 }
 0x821   : > { %v7630_v14 = vpop.f32.mrf.mxu0 }
 0x822   : > { %3695 = vrot.lane.b32.xlu1 %v3347_v45, %s8157_s25  ;;  %3405 = vrot.lane.b32.xlu0 %v3300_v43, %s8156_s30 }
 0x823   : > { %v8936_v20 = vpop.f32.mrf.mxu0 }
 0x825   : > { %v7645_v41 = vpop.f32.mrf.mxu0 }
 0x826   : > { %3707 = vrot.lane.b32.xlu1 %v3347_v45, %s8156_s30  ;;  %3701 = vrot.lane.b32.xlu0 %v3347_v45, %s8158_s9  ;;  %v3985_v41 = vpack.c.bf16 %v8911_v23, %v8911_v23 }
 0x827   : > { %v8938_v47 = vpop.f32.mrf.mxu0 }
 0x829   : > { %v7646_v48 = vpop.f32.mrf.mxu0 }
 0x82a   : > { %3401 = vrot.lane.b32.xlu1 %v8928_v46, %s8158_s9  ;;  %3395 = vrot.lane.b32.xlu0 %v8928_v46, %s8157_s25  ;;  %v3986_v48 = vpack.c.bf16 %v8913_v9, %v8913_v9 }
 0x82e   : > { %3407 = vrot.lane.b32.xlu0 %v8928_v46, %s8156_s30 }
 0x890   : > { %v3400_v24 = vpop.permute.xlu1 %3399  ;;  %v3394_v17 = vpop.permute.xlu0 %3393 }
 0x891   : > { %v3411_v28 = vcombine.low %v3300_v43, %v3400_v24  ;;  %v3412_v5 = vcombine.high %v3300_v43, %v3400_v24 }
 0x893   : > { %v3419_v56 = vrot.slane %v3411_v28, %v8450_v42  ;;  %v3426_v6 = vrot.slane %v3412_v5, %v8450_v42 }
 0x894   : > { %v3696_v12 = vpop.permute.xlu1 %3695  ;;  %v3406_v54 = vpop.permute.xlu0 %3405 }
 0x895   : > { %v3427_v55 = vcombine.low %v3394_v17, %v3406_v54  ;;  %v3428_v8 = vcombine.high %v3394_v17, %v3406_v54 }
 0x897   : > { %v3435_v35 = vrot.slane %v3427_v55, %v8450_v42  ;;  %v3442_v37 = vrot.slane %v3428_v8, %v8450_v42 }
 0x898   : > { %v3708_v57 = vpop.permute.xlu1 %3707  ;;  %v3702_v58 = vpop.permute.xlu0 %3701 }
 0x899   : > { %v3443_v52 = vcombine.low %v3419_v56, %v3435_v35  ;;  %v3444_v53 = vcombine.high %v3419_v56, %v3435_v35  ;;  %v3459_v60 = vcombine.low %v3426_v6, %v3442_v37  ;;  %v3460_v59 = vcombine.high %v3426_v6, %v3442_v37 }
 0x89a   : > { %v3795_v61 = vcombine.low %v3696_v12, %v3708_v57  ;;  %v3796_v62 = vcombine.high %v3696_v12, %v3708_v57  ;;  %v3779_v63 = vcombine.low %v3347_v45, %v3702_v58  ;;  %v3780_v0 = vcombine.high %v3347_v45, %v3702_v58 }
 0x89b   : > { %v3451_v1 = vrot.slane %v3443_v52, %v8453_v49  ;;  %v3458_v2 = vrot.slane %v3444_v53, %v8453_v49  ;;  %v3467_v4 = vrot.slane %v3459_v60, %v8453_v49  ;;  %v3474_v26 = vrot.slane %v3460_v59, %v8453_v49 }
 0x89c   : > { %v3803_v30 = vrot.slane %v3795_v61, %v8450_v42  ;;  %v3810_v50 = vrot.slane %v3796_v62, %v8450_v42  ;;  %v3787_v51 = vrot.slane %v3779_v63, %v8450_v42  ;;  %v3794_v25 = vrot.slane %v3780_v0, %v8450_v42  ;;  %v3396_v11 = vpop.permute.xlu0 %3395  ;;  %v3402_v44 = vpop.permute.xlu1 %3401 }
 0x89d   : > { %v3547_v13 = vcombine.low %v3451_v1, %v3458_v2  ;;  %v7233_v21 = vcombine.high %v3451_v1, %v3458_v2  ;;  %v3563_v40 = vcombine.low %v3467_v4, %v3474_v26  ;;  %v7234_v7 = vcombine.high %v3467_v4, %v3474_v26 }
 0x89e   : > { %v3811_v15 = vcombine.low %v3787_v51, %v3803_v30  ;;  %v3812_v16 = vcombine.high %v3787_v51, %v3803_v30  ;;  %v3827_v18 = vcombine.low %v3794_v25, %v3810_v50  ;;  %v3828_v19 = vcombine.high %v3794_v25, %v3810_v50 }
 0x89f   : > { %v3554_v22 = vrot.slane %v3547_v13, %v8450_v42  ;;  %v3562_v27 = vrot.slane %v7233_v21, %v8450_v42  ;;  %v3570_v29 = vrot.slane %v3563_v40, %v8450_v42  ;;  %v3578_v31 = vrot.slane %v7234_v7, %v8450_v42 }
 0x8a0   : > { %v3819_v33 = vrot.slane %v3811_v15, %v8453_v49  ;;  %v3826_v34 = vrot.slane %v3812_v16, %v8453_v49  ;;  %v3835_v39 = vrot.slane %v3827_v18, %v8453_v49  ;;  %v3842_v43 = vrot.slane %v3828_v19, %v8453_v49  ;;  %v3408_v10 = vpop.permute.xlu0 %3407 }
 0x8a1   : > { %v3579_v45 = vcombine.low %v3554_v22, %v3562_v27  ;;  %v3580_v14 = vcombine.high %v3554_v22, %v3562_v27  ;;  %v3595_v24 = vcombine.low %v3570_v29, %v3578_v31  ;;  %v3596_v17 = vcombine.high %v3570_v29, %v3578_v31 }
 0x8a2   : > { %v3915_v28 = vcombine.low %v3819_v33, %v3826_v34  ;;  %v7239_v5 = vcombine.high %v3819_v33, %v3826_v34  ;;  %v3479_v12 = vcombine.low %v8928_v46, %v3402_v44  ;;  %v3480_v54 = vcombine.high %v8928_v46, %v3402_v44 }
 0x8a3   : > { %v3495_v55 = vcombine.low %v3396_v11, %v3408_v10  ;;  %v3496_v8 = vcombine.high %v3396_v11, %v3408_v10  ;;  %v3931_v35 = vcombine.low %v3835_v39, %v3842_v43  ;;  %v7240_v37 = vcombine.high %v3835_v39, %v3842_v43 }
 0x8a4   : > { %v3922_v56 = vrot.slane %v3915_v28, %v8450_v42  ;;  %v3930_v6 = vrot.slane %v7239_v5, %v8450_v42  ;;  %v3487_v23 = vrot.slane %v3479_v12, %v8450_v42  ;;  %v3494_v9 = vrot.slane %v3480_v54, %v8450_v42 }
 0x8a5   : > { %v3503_v57 = vrot.slane %v3495_v55, %v8450_v42  ;;  %v3510_v58 = vrot.slane %v3496_v8, %v8450_v42  ;;  %v3587_v52 = vrot.slane %v3579_v45, %v8453_v49  ;;  %v3603_v46 = vrot.slane %v3595_v24, %v8453_v49 }
 0x8a6   : > { %v3594_v53 = vrot.slane %v3580_v14, %v8453_v49  ;;  %v3610_v60 = vrot.slane %v3596_v17, %v8453_v49  ;;  %v3938_v0 = vrot.slane %v3931_v35, %v8450_v42  ;;  %v3946_v1 = vrot.slane %v7240_v37, %v8450_v42 }
 0x8a7   : > { %v3511_v59 = vcombine.low %v3487_v23, %v3503_v57  ;;  %v3512_v61 = vcombine.high %v3487_v23, %v3503_v57  ;;  %v3527_v62 = vcombine.low %v3494_v9, %v3510_v58  ;;  %v3528_v63 = vcombine.high %v3494_v9, %v3510_v58 }
 0x8a8   : > { %v3611_v2 = vcombine.low %v3587_v52, %v3603_v46  ;;  %v3612_v4 = vcombine.high %v3587_v52, %v3603_v46  ;;  %v4387_v13 = vsel %vm1988_vm3, %v3985_v41, 0  ;;  %v3613_v21 = vcombine.low %v3594_v53, %v3610_v60 }
 0x8a9   : > { %v3519_v26 = vrot.slane %v3511_v59, %v8453_v49  ;;  %v3526_v30 = vrot.slane %v3512_v61, %v8453_v49  ;;  %v3535_v50 = vrot.slane %v3527_v62, %v8453_v49  ;;  %v3542_v51 = vrot.slane %v3528_v63, %v8453_v49 }
 0x8aa   : > { %v3683_v25 = vpack.c.bf16 %v3611_v2, %v3611_v2  ;;  %v3684_v11 = vpack.c.bf16 %v3612_v4, %v3612_v4  ;;  %v4433_v18 = vsel %vm1988_vm3, %v3986_v48, 0  ;;  %v3947_v19 = vcombine.low %v3922_v56, %v3930_v6 }
 0x8ab   : > { %v3615_v40 = vcombine.low %v3519_v26, %v3526_v30  ;;  %v7235_v7 = vcombine.high %v3519_v26, %v3526_v30  ;;  %v3631_v15 = vcombine.low %v3535_v50, %v3542_v51  ;;  %v7236_v16 = vcombine.high %v3535_v50, %v3542_v51  ;;  %v3252_v26 = vld [vmem:[%s9594_s14] sm:$0xff]  ;;  %v3253_v30 = vld [vmem:[%s9594_s14 + $0x8] sm:$0xff] }
 0x8ac   : > { %7650 = vmatmul.mubr.msk.bf16.vlgmr.msra.gmra.mxu1 %vm1988_vm3, %v3683_v25  ;;  %7656 = vmatmul.mubr.msk.bf16.vlgmr.msra.gmra.mxu0 %vm1988_vm3, %v3684_v11  ;;  %v3963_v22 = vcombine.low %v3938_v0, %v3946_v1  ;;  %v3948_v27 = vcombine.high %v3922_v56, %v3930_v6  ;;  %v3955_v39 = vrot.slane %v3947_v19, %v8453_v49  ;;  %vm4659_vm15 = vcmp.gt.f32.partialorder %v3252_v26, 0.5  ;;  %v3255_v19 = vld [vmem:[%s9594_s14 + $0x18] sm:$0xff] }
 0x8ad   : > { %v3622_v29 = vrot.slane %v3615_v40, %v8450_v42  ;;  %v3630_v31 = vrot.slane %v7235_v7, %v8450_v42  ;;  %v3638_v33 = vrot.slane %v3631_v15, %v8450_v42  ;;  %v3646_v34 = vrot.slane %v7236_v16, %v8450_v42  ;;  %7660 = vmatpush3.bf16.xpose.msra.mxu1 %v4387_v13  ;;  %v3254_v15 = vld [vmem:[%s9594_s14 + $0x10] sm:$0xff] }
 0x8ae   : > { %7666 = vmatpush3.bf16.xpose.msra.mxu0 %v4433_v18  ;;  %7661 = vmatprep.mubr.msk.bf16.mxu1 %vm8155_vm1, %v8154_v3  ;;  %v3971_v43 = vrot.slane %v3963_v22, %v8453_v49  ;;  %v3614_v45 = vcombine.high %v3594_v53, %v3610_v60  ;;  %v3962_v14 = vrot.slane %v3948_v27, %v8453_v49  ;;  %vm4660_vm0 = vcmp.gt.f32.partialorder %v3253_v30, 0.5 }
 0x8af   : > { %v3647_v44 = vcombine.low %v3622_v29, %v3630_v31  ;;  %v3663_v10 = vcombine.low %v3638_v33, %v3646_v34  ;;  %7667 = vmatprep.mubr.msk.bf16.mxu0 %vm8155_vm1, %v8154_v3  ;;  %7671 = vmatprep.subr.bf16.mxu1 %v8154_v3  ;;  %v3964_v24 = vcombine.high %v3938_v0, %v3946_v1  ;;  %vm4661_vm4 = vcmp.gt.f32.partialorder %v3254_v15, 0.5 }
 0x8b0   : > { %7677 = vmatprep.subr.bf16.mxu0 %v8154_v3  ;;  %v3979_v41 = vcombine.low %v3955_v39, %v3971_v43  ;;  %v3980_v48 = vcombine.high %v3955_v39, %v3971_v43  ;;  %v3685_v17 = vpack.c.bf16 %v3613_v21, %v3613_v21  ;;  %v3686_v8 = vpack.c.bf16 %v3614_v45, %v3614_v45  ;;  %v3256_v45 = vld [vmem:[%s9594_s14 + $0x20] sm:$0xff] }
 0x8b1   : > { %v3655_v28 = vrot.slane %v3647_v44, %v8453_v49  ;;  %v3671_v54 = vrot.slane %v3663_v10, %v8453_v49  ;;  %v3978_v55 = vrot.slane %v3964_v24, %v8453_v49  ;;  %v3648_v23 = vcombine.high %v3622_v29, %v3630_v31 }
 0x8b2   : > { %v3987_v5 = vpack.c.bf16 %v3979_v41, %v3979_v41  ;;  %v3988_v12 = vpack.c.bf16 %v3980_v48, %v3980_v48  ;;  %v3664_v9 = vcombine.high %v3638_v33, %v3646_v34  ;;  %vm4662_vm5 = vcmp.gt.f32.partialorder %v3255_v19, 0.5  ;;  %v3257_v41 = vld [vmem:[%s9594_s14 + $0x28] sm:$0xff] }
 0x8b3   : > { %v3981_v6 = vcombine.low %v3962_v14, %v3978_v55  ;;  %v3982_v37 = vcombine.high %v3962_v14, %v3978_v55  ;;  %v3679_v57 = vcombine.low %v3655_v28, %v3671_v54  ;;  %v3680_v58 = vcombine.high %v3655_v28, %v3671_v54 }
 0x8b4   : > { %7662 = vmatmul.mubr.msk.bf16.vlgmr.msra.gmra.mxu1 %vm1988_vm3, %v3685_v17  ;;  %v4479_v56 = vsel %vm1988_vm3, %v3987_v5, 0  ;;  %v4525_v35 = vsel %vm1988_vm3, %v3988_v12, 0  ;;  %v3662_v60 = vrot.slane %v3648_v23, %v8453_v49  ;;  %v3678_v59 = vrot.slane %v3664_v9, %v8453_v49 }
 0x8b5   : > { %7668 = vmatmul.mubr.msk.bf16.vlgmr.msra.gmra.mxu0 %vm1988_vm3, %v3686_v8  ;;  %7672 = vmatpush3.bf16.xpose.msra.mxu1 %v4479_v56  ;;  %v3989_v52 = vpack.c.bf16 %v3981_v6, %v3981_v6  ;;  %v3990_v46 = vpack.c.bf16 %v3982_v37, %v3982_v37  ;;  %v3687_v53 = vpack.c.bf16 %v3679_v57, %v3679_v57  ;;  %vm4663_vm6 = vcmp.gt.f32.partialorder %v3256_v45, 0.5 }
 0x8b6   : > { %7678 = vmatpush3.bf16.xpose.msra.mxu0 %v4525_v35  ;;  %7673 = vmatprep.mubr.msk.bf16.mxu1 %vm8155_vm1, %v8154_v3  ;;  %v3688_v61 = vpack.c.bf16 %v3680_v58, %v3680_v58  ;;  %v3681_v0 = vcombine.low %v3662_v60, %v3678_v59  ;;  %v3682_v1 = vcombine.high %v3662_v60, %v3678_v59  ;;  %vm4664_vm7 = vcmp.gt.f32.partialorder %v3257_v41, 0.5  ;;  %v3258_v35 = vld [vmem:[%s9594_s14 + $0x30] sm:$0xff] }
 0x8b7   : > { %7679 = vmatprep.mubr.msk.bf16.mxu0 %vm8155_vm1, %v8154_v3  ;;  %7683 = vmatprep.subr.bf16.mxu1 %v8154_v3  ;;  %v4571_v62 = vsel %vm1988_vm3, %v3989_v52, 0  ;;  %v4617_v63 = vsel %vm1988_vm3, %v3990_v46, 0  ;;  %vm4665_vm8 = vcmp.gt.f32.partialorder %v3258_v35, 0.5 }
 0x8b8   : > { %7689 = vmatprep.subr.bf16.mxu0 %v8154_v3  ;;  %v3689_v2 = vpack.c.bf16 %v3681_v0, %v3681_v0  ;;  %v3690_v4 = vpack.c.bf16 %v3682_v1, %v3682_v1  ;;  %v8112_v1 = vld [vmem:[%s8318_s28] ss:$0 sm:$0xff] }
 0x8bc   : > { %7674 = vmatmul.mubr.msk.bf16.vlgmr.msra.gmra.mxu1 %vm1988_vm3, %v3687_v53 }
 0x8bd   : > { %7680 = vmatmul.mubr.msk.bf16.vlgmr.msra.gmra.mxu0 %vm1988_vm3, %v3688_v61  ;;  %7684 = vmatpush3.bf16.xpose.msra.mxu1 %v4571_v62 }
 0x8be   : > { %7690 = vmatpush3.bf16.xpose.msra.mxu0 %v4617_v63  ;;  %7685 = vmatprep.mubr.msk.bf16.mxu1 %vm8155_vm1, %v8154_v3 }
 0x8bf   : > { %7691 = vmatprep.mubr.msk.bf16.mxu0 %vm8155_vm1, %v8154_v3  ;;  %7695 = vmatprep.subr.bf16.mxu1 %v8154_v3 }
 0x8c0   : > { %7701 = vmatprep.subr.bf16.mxu0 %v8154_v3 }
 0x8c4   : > { %7686 = vmatmul.mubr.msk.bf16.vlgmr.msra.gmra.mxu1 %vm1988_vm3, %v3689_v2  ;;  %v3385_v2 = vadd.f32 %v8112_v1, %v8936_v20 }
 0x8c5   : > { %7692 = vmatmul.mubr.msk.bf16.vlgmr.msra.gmra.mxu0 %vm1988_vm3, %v3690_v4  ;;  %7697 = vmatprep.mubr.msk.bf16.mxu1 %vm8155_vm1, %v8154_v3  ;;  %v3259_v4 = vld [vmem:[%s9594_s14 + $0x38] sm:$0xff] }
 0x8c6   : > { %7703 = vmatprep.mubr.msk.bf16.mxu0 %vm8155_vm1, %v8154_v3  ;;  %vm4666_vm9 = vcmp.gt.f32.partialorder %v3259_v4, 0.5 }
 0x96c   : > { %v4331_v50 = vpop.f32.mrf.mxu1  ;;  %v4377_v51 = vpop.f32.mrf.mxu0 }
 0x96d   : > { %v9036_v25 = vsel %vm4659_vm15, -1e+30, %v4331_v50  ;;  %v9038_v11 = vsel %vm4660_vm0, -1e+30, %v4377_v51  ;;  %v9086_v50 = vadd.f32 %v8112_v1, %v8938_v47 }
 0x96e   : > { %v7651_v13 = vpop.f32.mrf.mxu1  ;;  %v7657_v21 = vpop.f32.mrf.mxu0  ;;  %v4675_v40 = vsel %vm1988_vm3, %v9036_v25, -inf  ;;  %v4678_v7 = vsel %vm1988_vm3, %v9038_v11, -inf }
 0x96f   : > { %4676 = vmax.xlane.f32.xlu1 %v4675_v40  ;;  %4679 = vmax.xlane.f32.xlu0 %v4678_v7 }
 0x970   : > { %v4334_v16 = vpop.f32.mrf.mxu1  ;;  %v4380_v18 = vpop.f32.mrf.mxu0 }
 0x972   : > { %v7652_v22 = vpop.f32.mrf.mxu1  ;;  %v7658_v27 = vpop.f32.mrf.mxu0 }
 0x974   : > { %v4423_v29 = vpop.f32.mrf.mxu1 }
 0x975   : > { %v9050_v31 = vsel %vm4661_vm4, -1e+30, %v4423_v29  ;;  %v4469_v33 = vpop.f32.mrf.mxu0 }
 0x976   : > { %v9052_v34 = vsel %vm4662_vm5, -1e+30, %v4469_v33  ;;  %v7663_v39 = vpop.f32.mrf.mxu1  ;;  %v4681_v43 = vsel %vm1988_vm3, %v9050_v31, -inf }
 0x977   : > { %v7669_v44 = vpop.f32.mrf.mxu0  ;;  %4682 = vmax.xlane.f32.xlu0 %v4681_v43  ;;  %v4684_v10 = vsel %vm1988_vm3, %v9052_v34, -inf }
 0x978   : > { %4685 = vmax.xlane.f32.xlu1 %v4684_v10  ;;  %v4426_v14 = vpop.f32.mrf.mxu1 }
 0x979   : > { %v4472_v48 = vpop.f32.mrf.mxu0 }
 0x97a   : > { %v7664_v24 = vpop.f32.mrf.mxu1 }
 0x97b   : > { %v7670_v17 = vpop.f32.mrf.mxu0 }
 0x97c   : > { %v4515_v28 = vpop.f32.mrf.mxu1 }
 0x97d   : > { %v4671_v5 = vsel %vm4663_vm6, -1e+30, %v4515_v28  ;;  %v4561_v12 = vpop.f32.mrf.mxu0 }
 0x97e   : > { %v4672_v54 = vsel %vm4664_vm7, -1e+30, %v4561_v12  ;;  %v7675_v55 = vpop.f32.mrf.mxu1  ;;  %v4687_v8 = vsel %vm1988_vm3, %v4671_v5, -inf }
 0x97f   : > { %v7681_v56 = vpop.f32.mrf.mxu0  ;;  %4688 = vmax.xlane.f32.xlu0 %v4687_v8  ;;  %v4690_v6 = vsel %vm1988_vm3, %v4672_v54, -inf }
 0x980   : > { %4691 = vmax.xlane.f32.xlu1 %v4690_v6  ;;  %v4518_v37 = vpop.f32.mrf.mxu1 }
 0x981   : > { %v4564_v23 = vpop.f32.mrf.mxu0 }
 0x982   : > { %v7676_v9 = vpop.f32.mrf.mxu1 }
 0x983   : > { %v7682_v57 = vpop.f32.mrf.mxu0 }
 0x984   : > { %v4607_v58 = vpop.f32.mrf.mxu1 }
 0x985   : > { %v9069_v52 = vsel %vm4665_vm8, -1e+30, %v4607_v58  ;;  %v4653_v46 = vpop.f32.mrf.mxu0 }
 0x986   : > { %v7687_v53 = vpop.f32.mrf.mxu1  ;;  %v4693_v60 = vsel %vm1988_vm3, %v9069_v52, -inf  ;;  %v9081_v26 = vsel %vm4666_vm9, -1e+30, %v4653_v46 }
 0x987   : > { %v7693_v59 = vpop.f32.mrf.mxu0  ;;  %4694 = vmax.xlane.f32.xlu0 %v4693_v60  ;;  %v4696_v30 = vsel %vm1988_vm3, %v9081_v26, -inf }
 0x988   : > { %v4610_v61 = vpop.f32.mrf.mxu1 }
 0x989   : > { %v4656_v62 = vpop.f32.mrf.mxu0 }
 0x98a   : > { %v7688_v63 = vpop.f32.mrf.mxu1 }
 0x98b   : > { %v7694_v0 = vpop.f32.mrf.mxu0 }
 0x991   : > { %3999 = vrot.lane.b32.xlu1 %v3385_v2, %s8158_s9 }
 0x995   : > { %4005 = vrot.lane.b32.xlu1 %v3385_v2, %s8156_s30 }
 0x99d   : > { %3993 = vrot.lane.b32.xlu0 %v3385_v2, %s8157_s25 }
 0x9b9   : > { %4697 = vmax.xlane.f32.xlu1 %v4696_v30 }
 0x9ca   : > { %3995 = vrot.lane.b32.xlu1 %v9086_v50, %s8157_s25 }
 0x9f8   : > { %v4677_v20 = vpop.xlane.xlu1 %4676  ;;  %v4680_v51 = vpop.xlane.xlu0 %4679 }
 0x9f9   : > { %v4699_v13 = vsub.f32 %v9036_v25, %v4677_v20  ;;  %v4700_v21 = vsub.f32 %v9038_v11, %v4680_v51 }
 0x9fb   : > { %v4707_v40 = vmul.f32 1.442695, %v4699_v13  ;;  %v4709_v7 = vmul.f32 1.442695, %v4700_v21 }
 0x9fd   : > { %8062 = vpow2.f32 %v4707_v40 }
 0x9fe   : > { %8064 = vpow2.f32 %v4709_v7 }
 0xa00   : > { %v4683_v15 = vpop.xlane.xlu0 %4682 }
 0xa01   : > { %v4701_v16 = vsub.f32 %v9050_v31, %v4683_v15  ;;  %v4686_v18 = vpop.xlane.xlu1 %4685 }
 0xa02   : > { %v4702_v47 = vsub.f32 %v9052_v34, %v4686_v18 }
 0xa03   : > { %v4711_v19 = vmul.f32 1.442695, %v4701_v16 }
 0xa04   : > { %v4713_v22 = vmul.f32 1.442695, %v4702_v47 }
 0xa05   : > { %8066 = vpow2.f32 %v4711_v19 }
 0xa06   : > { %8068 = vpow2.f32 %v4713_v22 }
 0xa08   : > { %v4689_v27 = vpop.xlane.xlu0 %4688 }
 0xa09   : > { %v4703_v29 = vsub.f32 %v4671_v5, %v4689_v27  ;;  %v4692_v33 = vpop.xlane.xlu1 %4691 }
 0xa0a   : > { %v9094_v25 = vpop.eup %8062  ;;  %v4704_v11 = vsub.f32 %v4672_v54, %v4692_v33 }
 0xa0b   : > { %v9096_v39 = vpop.eup %8064  ;;  %v4715_v43 = vmul.f32 1.442695, %v4703_v29  ;;  %v4723_v44 = vsel %vm1988_vm3, %v9094_v25, 0.0 }
 0xa0c   : > { %v4717_v31 = vmul.f32 1.442695, %v4704_v11  ;;  %4724 = vadd.xlane.f32.xlu0 %v4723_v44  ;;  %v4726_v34 = vsel %vm1988_vm3, %v9096_v39, 0.0 }
 0xa0d   : > { %8070 = vpow2.f32 %v4715_v43  ;;  %4727 = vadd.xlane.f32.xlu1 %v4726_v34  ;;  %v4000_v10 = vpop.permute.xlu1 %3999 }
 0xa0e   : > { %8072 = vpow2.f32 %v4717_v31  ;;  %v4011_v48 = vcombine.low %v3385_v2, %v4000_v10  ;;  %v4012_v24 = vcombine.high %v3385_v2, %v4000_v10 }
 0xa10   : > { %v4695_v45 = vpop.xlane.xlu0 %4694  ;;  %v4019_v8 = vrot.slane %v4011_v48, %v8450_v42  ;;  %v4026_v56 = vrot.slane %v4012_v24, %v8450_v42 }
 0xa11   : > { %v4006_v28 = vpop.permute.xlu1 %4005  ;;  %v4705_v34 = vsub.f32 %v9069_v52, %v4695_v45 }
 0xa12   : > { %v9102_v14 = vpop.eup %8066 }
 0xa13   : > { %v9104_v41 = vpop.eup %8068  ;;  %v4729_v17 = vsel %vm1988_vm3, %v9102_v14, 0.0  ;;  %v4719_v10 = vmul.f32 1.442695, %v4705_v34 }
 0xa14   : > { %4730 = vadd.xlane.f32.xlu0 %v4729_v17  ;;  %v3994_v5 = vpop.permute.xlu0 %3993  ;;  %v4732_v12 = vsel %vm1988_vm3, %v9104_v41, 0.0 }
 0xa15   : > { %v4027_v54 = vcombine.low %v3994_v5, %v4006_v28  ;;  %v4028_v55 = vcombine.high %v3994_v5, %v4006_v28  ;;  %4733 = vadd.xlane.f32.xlu1 %v4732_v12  ;;  %8074 = vpow2.f32 %v4719_v10 }
 0xa17   : > { %v4035_v6 = vrot.slane %v4027_v54, %v8450_v42  ;;  %v4042_v35 = vrot.slane %v4028_v55, %v8450_v42 }
 0xa19   : > { %v4043_v37 = vcombine.low %v4019_v8, %v4035_v6  ;;  %v4044_v23 = vcombine.high %v4019_v8, %v4035_v6  ;;  %v4059_v9 = vcombine.low %v4026_v56, %v4042_v35  ;;  %v4060_v57 = vcombine.high %v4026_v56, %v4042_v35 }
 0xa1a   : > { %v9114_v58 = vpop.eup %8070 }
 0xa1b   : > { %v4051_v46 = vrot.slane %v4043_v37, %v8453_v49  ;;  %v4058_v53 = vrot.slane %v4044_v23, %v8453_v49  ;;  %v4067_v60 = vrot.slane %v4059_v9, %v8453_v49  ;;  %v4074_v59 = vrot.slane %v4060_v57, %v8453_v49  ;;  %v9122_v62 = vpop.eup %8072 }
 0xa1c   : > { %v4735_v61 = vsel %vm1988_vm3, %v9114_v58, 0.0  ;;  %v4738_v13 = vsel %vm1988_vm3, %v9122_v62, 0.0 }
 0xa1d   : > { %v4147_v63 = vcombine.low %v4051_v46, %v4058_v53  ;;  %v7241_v0 = vcombine.high %v4051_v46, %v4058_v53  ;;  %v4163_v1 = vcombine.low %v4067_v60, %v4074_v59  ;;  %v7242_v2 = vcombine.high %v4067_v60, %v4074_v59  ;;  %4736 = vadd.xlane.f32.xlu0 %v4735_v61 }
 0xa1f   : > { %v4154_v4 = vrot.slane %v4147_v63, %v8450_v42  ;;  %v4162_v30 = vrot.slane %v7241_v0, %v8450_v42  ;;  %v4170_v20 = vrot.slane %v4163_v1, %v8450_v42  ;;  %v4178_v51 = vrot.slane %v7242_v2, %v8450_v42 }
 0xa21   : > { %4739 = vadd.xlane.f32.xlu0 %v4738_v13  ;;  %v4179_v21 = vcombine.low %v4154_v4, %v4162_v30  ;;  %v4195_v40 = vcombine.low %v4170_v20, %v4178_v51  ;;  %v4180_v7 = vcombine.high %v4154_v4, %v4162_v30  ;;  %v4196_v15 = vcombine.high %v4170_v20, %v4178_v51 }
 0xa22   : > { %v9144_v28 = vpop.eup %8074 }
 0xa23   : > { %v4187_v16 = vrot.slane %v4179_v21, %v8453_v49  ;;  %v4203_v18 = vrot.slane %v4195_v40, %v8453_v49  ;;  %v4194_v47 = vrot.slane %v4180_v7, %v8453_v49  ;;  %v4210_v19 = vrot.slane %v4196_v15, %v8453_v49 }
 0xa24   : > { %v4741_v5 = vsel %vm1988_vm3, %v9144_v28, 0.0 }
 0xa25   : > { %v4211_v22 = vcombine.low %v4187_v16, %v4203_v18  ;;  %v4212_v27 = vcombine.high %v4187_v16, %v4203_v18  ;;  %v4213_v29 = vcombine.low %v4194_v47, %v4210_v19  ;;  %v4214_v33 = vcombine.high %v4194_v47, %v4210_v19 }
 0xa26   : > { %4007 = vrot.lane.b32.xlu1 %v9086_v50, %s8156_s30 }
 0xa27   : > { %v4283_v11 = vpack.c.bf16 %v4211_v22, %v4211_v22  ;;  %v4284_v43 = vpack.c.bf16 %v4212_v27, %v4212_v27  ;;  %v4285_v37 = vpack.c.bf16 %v4213_v29, %v4213_v29  ;;  %v4286_v9 = vpack.c.bf16 %v4214_v33, %v4214_v33 }
 0xa29   : > { %v4775_v44 = vsel %vm2472_vm12, %v4283_v11, 0  ;;  %v4821_v31 = vsel %vm2472_vm12, %v4284_v43, 0  ;;  %v4867_v60 = vsel %vm2472_vm12, %v4285_v37, 0  ;;  %v4913_v61 = vsel %vm2472_vm12, %v4286_v9, 0 }
 0xa2a   : > { %7696 = vmatpush3.bf16.msra.mxu1 %v4775_v44  ;;  %7702 = vmatpush3.bf16.msra.mxu0 %v4821_v31 }
 0xa2b   : > { %7707 = vmatprep.subr.bf16.mxu1 %v8154_v3  ;;  %7713 = vmatprep.subr.bf16.mxu0 %v8154_v3 }
 0xa37   : > { %4001 = vrot.lane.b32.xlu0 %v9086_v50, %s8158_s9 }
 0xa42   : > { %v4698_v48 = vpop.xlane.xlu1 %4697 }
 0xa43   : > { %v4706_v24 = vsub.f32 %v9081_v26, %v4698_v48 }
 0xa45   : > { %v4721_v17 = vmul.f32 1.442695, %v4706_v24 }
 0xa46   : > { %v3996_v45 = vpop.permute.xlu1 %3995 }
 0xa47   : > { %8076 = vpow2.f32 %v4721_v17 }
 0xa4a   : > { %4742 = vadd.xlane.f32.xlu1 %v4741_v5 }
 0xa54   : > { %v9148_v12 = vpop.eup %8076 }
 0xa55   : > { %v4744_v52 = vsel %vm1988_vm3, %v9148_v12, 0.0 }
 0xa56   : > { %4745 = vadd.xlane.f32.xlu0 %v4744_v52 }
 0xa95   : > { %v4725_v54 = vpop.xlane.xlu0 %4724 }
 0xa96   : > { %8078 = vrcp.f32 %v4725_v54  ;;  %v4728_v55 = vpop.xlane.xlu1 %4727 }
 0xa97   : > { %8080 = vrcp.f32 %v4728_v55 }
 0xa9d   : > { %v4731_v26 = vpop.xlane.xlu0 %4730 }
 0xa9e   : > { %8082 = vrcp.f32 %v4731_v26  ;;  %v4734_v8 = vpop.xlane.xlu1 %4733 }
 0xa9f   : > { %8084 = vrcp.f32 %v4734_v8 }
 0xaa2   : > { %v4008_v59 = vpop.permute.xlu1 %4007 }
 0xaa3   : > { %v8079_v56 = vpop.eup %8078  ;;  %v4095_v0 = vcombine.low %v3996_v45, %v4008_v59  ;;  %v4096_v2 = vcombine.high %v3996_v45, %v4008_v59 }
 0xaa4   : > { %v8081_v6 = vpop.eup %8080  ;;  %v4755_v35 = vmul.f32 %v8079_v56, %v9094_v25 }
 0xaa5   : > { %v4756_v23 = vmul.f32 %v8081_v6, %v9096_v39  ;;  %v4103_v40 = vrot.slane %v4095_v0, %v8450_v42  ;;  %v4110_v7 = vrot.slane %v4096_v2, %v8450_v42 }
 0xaa6   : > { %v4737_v57 = vpop.xlane.xlu0 %4736  ;;  %v4763_v46 = vpack.c.bf16 %v4755_v35, %v4755_v35 }
 0xaa7   : > { %v4764_v53 = vpack.c.bf16 %v4756_v23, %v4756_v23  ;;  %8086 = vrcp.f32 %v4737_v57 }
 0xaa8   : > { %7698 = vmatmul.mubr.msk.bf16.vlgmr.msra.gmra.mxu1 %vm1988_vm3, %v4763_v46 }
 0xaa9   : > { %7704 = vmatmul.mubr.msk.bf16.vlgmr.msra.gmra.mxu0 %vm1988_vm3, %v4764_v53  ;;  %7708 = vmatpush3.bf16.msra.mxu1 %v4867_v60 }
 0xaaa   : > { %7714 = vmatpush3.bf16.msra.mxu0 %v4913_v61  ;;  %v4740_v63 = vpop.xlane.xlu0 %4739  ;;  %7709 = vmatprep.mubr.msk.bf16.mxu1 %vm8155_vm1, %v8154_v3 }
 0xaab   : > { %v8083_v25 = vpop.eup %8082  ;;  %7715 = vmatprep.mubr.msk.bf16.mxu0 %vm8155_vm1, %v8154_v3  ;;  %7719 = vmatprep.subr.bf16.mxu1 %v8154_v3  ;;  %8088 = vrcp.f32 %v4740_v63 }
 0xaac   : > { %v8085_v39 = vpop.eup %8084  ;;  %v4757_v1 = vmul.f32 %v8083_v25, %v9102_v14  ;;  %7725 = vmatprep.subr.bf16.mxu0 %v8154_v3 }
 0xaad   : > { %v4758_v4 = vmul.f32 %v8085_v39, %v9104_v41 }
 0xaae   : > { %v4002_v30 = vpop.permute.xlu0 %4001  ;;  %v4765_v20 = vpack.c.bf16 %v4757_v1, %v4757_v1 }
 0xaaf   : > { %v4079_v51 = vcombine.low %v9086_v50, %v4002_v30  ;;  %v4080_v13 = vcombine.high %v9086_v50, %v4002_v30  ;;  %v4766_v21 = vpack.c.bf16 %v4758_v4, %v4758_v4  ;;  %v8113_v30 = vld [vmem:[%s8323_s6 + $0x8] sm:$0xff]  }
 0xab0   : > { %7710 = vmatmul.mubr.msk.bf16.vlgmr.msra.gmra.mxu1 %vm1988_vm3, %v4765_v20  ;;  %v8114_v20 = vld [vmem:[%s8323_s6] sm:$0xff]   ;;  %s9595_s6 = sld [smem:[#allocation9_spill]] }
 0xab1   : > { %v4087_v14 = vrot.slane %v4079_v51, %v8450_v42  ;;  %v4094_v15 = vrot.slane %v4080_v13, %v8450_v42  ;;  %7716 = vmatmul.mubr.msk.bf16.vlgmr.msra.gmra.mxu0 %vm1988_vm3, %v4766_v21  ;;  %7721 = vmatprep.mubr.msk.bf16.mxu1 %vm8155_vm1, %v8154_v3 }
 0xab2   : > { %7727 = vmatprep.mubr.msk.bf16.mxu0 %vm8155_vm1, %v8154_v3 }
 0xab3   : > { %v4111_v50 = vcombine.low %v4087_v14, %v4103_v40  ;;  %v4112_v41 = vcombine.high %v4087_v14, %v4103_v40  ;;  %v4127_v16 = vcombine.low %v4094_v15, %v4110_v7  ;;  %v4128_v18 = vcombine.high %v4094_v15, %v4110_v7 }
 0xab4   : > { %v8087_v52 = vpop.eup %8086 }
 0xab5   : > { %v4119_v47 = vrot.slane %v4111_v50, %v8453_v49  ;;  %v4126_v19 = vrot.slane %v4112_v41, %v8453_v49  ;;  %v4135_v22 = vrot.slane %v4127_v16, %v8453_v49  ;;  %v4142_v27 = vrot.slane %v4128_v18, %v8453_v49 }
 0xab6   : > { %v4759_v57 = vmul.f32 %v8087_v52, %v9114_v58 }
 0xab7   : > { %v4215_v29 = vcombine.low %v4119_v47, %v4126_v19  ;;  %v7243_v33 = vcombine.high %v4119_v47, %v4126_v19  ;;  %v4231_v11 = vcombine.low %v4135_v22, %v4142_v27  ;;  %v7244_v43 = vcombine.high %v4135_v22, %v4142_v27 }
 0xab8   : > { %v8089_v8 = vpop.eup %8088  ;;  %v4767_v63 = vpack.c.bf16 %v4759_v57, %v4759_v57 }
 0xab9   : > { %v4222_v44 = vrot.slane %v4215_v29, %v8450_v42  ;;  %v4230_v31 = vrot.slane %v7243_v33, %v8450_v42  ;;  %v4238_v34 = vrot.slane %v4231_v11, %v8450_v42  ;;  %v4246_v10 = vrot.slane %v7244_v43, %v8450_v42 }
 0xaba   : > { %v4760_v46 = vmul.f32 %v8089_v8, %v9122_v62 }
 0xabb   : > { %v4247_v48 = vcombine.low %v4222_v44, %v4230_v31  ;;  %v4263_v24 = vcombine.low %v4238_v34, %v4246_v10  ;;  %v4248_v17 = vcombine.high %v4222_v44, %v4230_v31  ;;  %v4264_v5 = vcombine.high %v4238_v34, %v4246_v10 }
 0xabc   : > { %v4768_v25 = vpack.c.bf16 %v4760_v46, %v4760_v46 }
 0xabd   : > { %v4255_v45 = vrot.slane %v4247_v48, %v8453_v49  ;;  %v4271_v54 = vrot.slane %v4263_v24, %v8453_v49  ;;  %v4262_v55 = vrot.slane %v4248_v17, %v8453_v49  ;;  %v4278_v26 = vrot.slane %v4264_v5, %v8453_v49 }
 0xabf   : > { %v4279_v56 = vcombine.low %v4255_v45, %v4271_v54  ;;  %v4280_v6 = vcombine.high %v4255_v45, %v4271_v54  ;;  %v4281_v35 = vcombine.low %v4262_v55, %v4278_v26  ;;  %v4282_v37 = vcombine.high %v4262_v55, %v4278_v26 }
 0xac1   : > { %v4287_v23 = vpack.c.bf16 %v4279_v56, %v4279_v56  ;;  %v4288_v9 = vpack.c.bf16 %v4280_v6, %v4280_v6  ;;  %v4289_v59 = vpack.c.bf16 %v4281_v35, %v4281_v35  ;;  %v4290_v61 = vpack.c.bf16 %v4282_v37, %v4282_v37 }
 0xac3   : > { %v4959_v53 = vsel %vm2472_vm12, %v4287_v23, 0  ;;  %v5005_v60 = vsel %vm2472_vm12, %v4288_v9, 0  ;;  %v5051_v58 = vsel %vm2472_vm12, %v4289_v59, 0  ;;  %v5097_v62 = vsel %vm2472_vm12, %v4290_v61, 0 }
 0xac4   : > { %7720 = vmatpush3.bf16.msra.mxu1 %v4959_v53  ;;  %7726 = vmatpush3.bf16.msra.mxu0 %v5005_v60 }
 0xac5   : > { %7731 = vmatprep.subr.bf16.mxu1 %v8154_v3  ;;  %7737 = vmatprep.subr.bf16.mxu0 %v8154_v3 }
 0xac7   : > { %7722 = vmatmul.mubr.msk.bf16.vlgmr.msra.gmra.mxu1 %vm1988_vm3, %v4767_v63  ;;  %7728 = vmatmul.mubr.msk.bf16.vlgmr.msra.gmra.mxu0 %vm1988_vm3, %v4768_v25 }
 0xac8   : > { %7732 = vmatpush3.bf16.msra.mxu1 %v5051_v58  ;;  %7738 = vmatpush3.bf16.msra.mxu0 %v5097_v62 }
 0xac9   : > { %7733 = vmatprep.mubr.msk.bf16.mxu1 %vm8155_vm1, %v8154_v3  ;;  %7739 = vmatprep.mubr.msk.bf16.mxu0 %vm8155_vm1, %v8154_v3 }
 0xaca   : > { %7743 = vmatprep.subr.bf16.mxu1 %v8154_v3  ;;  %7751 = vmatprep.subr.bf16.mxu0 %v8154_v3 }
 0xad3   : > { %v4743_v39 = vpop.xlane.xlu1 %4742 }
 0xad4   : > { %8090 = vrcp.f32 %v4743_v39 }
 0xadf   : > { %v4746_v0 = vpop.xlane.xlu0 %4745 }
 0xae0   : > { %8092 = vrcp.f32 %v4746_v0 }
 0xae1   : > { %v8091_v1 = vpop.eup %8090 }
 0xae2   : > { %v4761_v2 = vmul.f32 %v8091_v1, %v9144_v28 }
 0xae4   : > { %v4769_v4 = vpack.c.bf16 %v4761_v2, %v4761_v2 }
 0xae6   : > { %7734 = vmatmul.mubr.msk.bf16.vlgmr.msra.gmra.mxu1 %vm1988_vm3, %v4769_v4 }
 0xae7   : > { %7744 = vmatpush3.bf16.msra.mxu1 %v8113_v30  ;;  %7747 = vmatprep.mubr.msk.bf16.mxu1 %vm8155_vm1, %v8154_v3 }
 0xae8   : > { %7745 = vmatprep.subr.bf16.mxu1 %v8154_v3 }
 0xaeb   : > { %7746 = vmatpush3.bf16.msra.mxu1 %v8114_v20 }
 0xaec   : > { %7759 = vmatprep.subr.bf16.mxu1 %v8154_v3 }
 0xaed   : > { %v8093_v51 = vpop.eup %8092 }
 0xaee   : > { %v4762_v13 = vmul.f32 %v8093_v51, %v9148_v12 }
 0xaf0   : > { %v4770_v21 = vpack.c.bf16 %v4762_v13, %v4762_v13 }
 0xaf2   : > { %7740 = vmatmul.mubr.msk.bf16.vlgmr.msra.gmra.mxu0 %vm1988_vm3, %v4770_v21 }
 0xaf3   : > { %7755 = vmatprep.mubr.msk.bf16.mxu0 %vm8155_vm1, %v8154_v3 }
 0xb68   : > { %v4811_v28 = vpop.f32.mrf.mxu1 }
 0xb69   : > { %v4857_v40 = vpop.f32.mrf.mxu0 }
 0xb6a   : > { %v7699_v7 = vpop.f32.mrf.mxu1 }
 0xb6b   : > { %v7705_v14 = vpop.f32.mrf.mxu0 }
 0xb6c   : > { %v4814_v15 = vpop.f32.mrf.mxu1 }
 0xb6d   : > { %v4860_v50 = vpop.f32.mrf.mxu0 }
 0xb6e   : > { %v7700_v41 = vpop.f32.mrf.mxu1 }
 0xb6f   : > { %v7706_v16 = vpop.f32.mrf.mxu0 }
 0xb70   : > { %v4903_v18 = vpop.f32.mrf.mxu1 }
 0xb71   : > { %v5139_v47 = vcombine.low %v4811_v28, %v4903_v18  ;;  %v5140_v19 = vcombine.high %v4811_v28, %v4903_v18  ;;  %v4949_v22 = vpop.f32.mrf.mxu0 }
 0xb72   : > { %v5155_v27 = vcombine.low %v4857_v40, %v4949_v22  ;;  %v5156_v12 = vcombine.high %v4857_v40, %v4949_v22  ;;  %v7711_v29 = vpop.f32.mrf.mxu1 }
 0xb73   : > { %v5147_v33 = vrot.slane %v5139_v47, %v8450_v42  ;;  %v5154_v11 = vrot.slane %v5140_v19, %v8450_v42  ;;  %v7717_v43 = vpop.f32.mrf.mxu0 }
 0xb74   : > { %v5163_v44 = vrot.slane %v5155_v27, %v8450_v42  ;;  %v5170_v31 = vrot.slane %v5156_v12, %v8450_v42  ;;  %v4906_v34 = vpop.f32.mrf.mxu1 }
 0xb75   : > { %v4952_v10 = vpop.f32.mrf.mxu0 }
 0xb76   : > { %v5171_v48 = vcombine.low %v5147_v33, %v5163_v44  ;;  %v5172_v24 = vcombine.high %v5147_v33, %v5163_v44  ;;  %v5187_v17 = vcombine.low %v5154_v11, %v5170_v31  ;;  %v5188_v5 = vcombine.high %v5154_v11, %v5170_v31  ;;  %v7712_v52 = vpop.f32.mrf.mxu1 }
 0xb77   : > { %v7718_v45 = vpop.f32.mrf.mxu0 }
 0xb78   : > { %v5179_v54 = vrot.slane %v5171_v48, %v8453_v49  ;;  %v5186_v55 = vrot.slane %v5172_v24, %v8453_v49  ;;  %v5195_v26 = vrot.slane %v5187_v17, %v8453_v49  ;;  %v5202_v8 = vrot.slane %v5188_v5, %v8453_v49 }
 0xb7a   : > { %v5275_v56 = vcombine.low %v5179_v54, %v5186_v55  ;;  %v7261_v6 = vcombine.high %v5179_v54, %v5186_v55  ;;  %v5291_v35 = vcombine.low %v5195_v26, %v5202_v8  ;;  %v7262_v37 = vcombine.high %v5195_v26, %v5202_v8 }
 0xb7c   : > { %v5282_v23 = vrot.slane %v5275_v56, %v8450_v42  ;;  %v5290_v9 = vrot.slane %v7261_v6, %v8450_v42  ;;  %v5298_v57 = vrot.slane %v5291_v35, %v8450_v42  ;;  %v5306_v46 = vrot.slane %v7262_v37, %v8450_v42 }
 0xb7e   : > { %v5308_v53 = vcombine.high %v5282_v23, %v5290_v9  ;;  %v5324_v60 = vcombine.high %v5298_v57, %v5306_v46  ;;  %v5307_v59 = vcombine.low %v5282_v23, %v5290_v9  ;;  %v5323_v61 = vcombine.low %v5298_v57, %v5306_v46 }
 0xb80   : > { %v9231_v63 = vrot.slane %v5308_v53, %v8453_v49  ;;  %v9234_v25 = vrot.slane %v5324_v60, %v8453_v49  ;;  %v9237_v58 = vrot.slane %v5307_v59, %v8453_v49  ;;  %v9240_v62 = vrot.slane %v5323_v61, %v8453_v49 }
 0xb82   : > { %v5341_v39 = vcombine.low %v9231_v63, %v9234_v25  ;;  %v5339_v0 = vcombine.low %v9237_v58, %v9240_v62  ;;  %v5340_v1 = vcombine.high %v9237_v58, %v9240_v62  ;;  %v5342_v2 = vcombine.high %v9231_v63, %v9234_v25  ;;  %v8115_v62 = vld [vmem:[%s8329_s21] ss:$0 sm:$0xff] }
 0xb87   : > { %v4995_v4 = vpop.f32.mrf.mxu1  ;;  %v5041_v30 = vpop.f32.mrf.mxu0 }
 0xb89   : > { %v7723_v20 = vpop.f32.mrf.mxu1  ;;  %v7729_v51 = vpop.f32.mrf.mxu0 }
 0xb8b   : > { %v4998_v13 = vpop.f32.mrf.mxu1  ;;  %v5044_v21 = vpop.f32.mrf.mxu0 }
 0xb8d   : > { %v7724_v28 = vpop.f32.mrf.mxu1  ;;  %v7730_v40 = vpop.f32.mrf.mxu0 }
 0xba6   : > { %v5087_v7 = vpop.f32.mrf.mxu1 }
 0xba7   : > { %v5207_v41 = vcombine.low %v4995_v4, %v5087_v7  ;;  %v5208_v16 = vcombine.high %v4995_v4, %v5087_v7 }
 0xba8   : > { %v7735_v14 = vpop.f32.mrf.mxu1 }
 0xba9   : > { %v5215_v27 = vrot.slane %v5207_v41, %v8450_v42  ;;  %v5222_v12 = vrot.slane %v5208_v16, %v8450_v42 }
 0xbaa   : > { %v5090_v15 = vpop.f32.mrf.mxu1 }
 0xbac   : > { %v7736_v50 = vpop.f32.mrf.mxu1 }
 0xbb2   : > { %v5133_v18 = vpop.f32.mrf.mxu0 }
 0xbb3   : > { %v5223_v47 = vcombine.low %v5041_v30, %v5133_v18  ;;  %v5224_v19 = vcombine.high %v5041_v30, %v5133_v18 }
 0xbb4   : > { %v7741_v22 = vpop.f32.mrf.mxu0 }
 0xbb5   : > { %v5231_v29 = vrot.slane %v5223_v47, %v8450_v42  ;;  %v5238_v33 = vrot.slane %v5224_v19, %v8450_v42 }
 0xbb6   : > { %v5136_v11 = vpop.f32.mrf.mxu0 }
 0xbb7   : > { %v5239_v43 = vcombine.low %v5215_v27, %v5231_v29  ;;  %v5240_v44 = vcombine.high %v5215_v27, %v5231_v29  ;;  %v5255_v31 = vcombine.low %v5222_v12, %v5238_v33  ;;  %v5256_v34 = vcombine.high %v5222_v12, %v5238_v33 }
 0xbb8   : > { %v7742_v10 = vpop.f32.mrf.mxu0 }
 0xbb9   : > { %v5247_v48 = vrot.slane %v5239_v43, %v8453_v49  ;;  %v5254_v24 = vrot.slane %v5240_v44, %v8453_v49  ;;  %v5263_v17 = vrot.slane %v5255_v31, %v8453_v49  ;;  %v5270_v5 = vrot.slane %v5256_v34, %v8453_v49 }
 0xbbb   : > { %v5343_v52 = vcombine.low %v5247_v48, %v5254_v24  ;;  %v7263_v45 = vcombine.high %v5247_v48, %v5254_v24  ;;  %v5359_v54 = vcombine.low %v5263_v17, %v5270_v5  ;;  %v7264_v55 = vcombine.high %v5263_v17, %v5270_v5 }
 0xbbd   : > { %v5350_v26 = vrot.slane %v5343_v52, %v8450_v42  ;;  %v5358_v8 = vrot.slane %v7263_v45, %v8450_v42  ;;  %v5366_v56 = vrot.slane %v5359_v54, %v8450_v42  ;;  %v5374_v6 = vrot.slane %v7264_v55, %v8450_v42  ;;  %v7977_v45 = vld [vmem:[%s9595_s6 + $0x18] sm:$0xff]   ;;  %v7978_v54 = vld [vmem:[%s9595_s6] sm:$0xff]   ;;  %v7979_v55 = vld [vmem:[%s9595_s6 + $0x10] sm:$0xff]  }
 0xbbf   : > { %v5376_v35 = vcombine.high %v5350_v26, %v5358_v8  ;;  %v5392_v37 = vcombine.high %v5366_v56, %v5374_v6  ;;  %v5375_v23 = vcombine.low %v5350_v26, %v5358_v8  ;;  %v5391_v9 = vcombine.low %v5366_v56, %v5374_v6 }
 0xbc1   : > { %v5390_v57 = vrot.slane %v5376_v35, %v8453_v49  ;;  %v5406_v46 = vrot.slane %v5392_v37, %v8453_v49  ;;  %v5383_v53 = vrot.slane %v5375_v23, %v8453_v49  ;;  %v5399_v60 = vrot.slane %v5391_v9, %v8453_v49 }
 0xbc3   : > { %v5409_v59 = vcombine.low %v5390_v57, %v5406_v46  ;;  %v5408_v61 = vcombine.high %v5383_v53, %v5399_v60  ;;  %v5407_v63 = vcombine.low %v5383_v53, %v5399_v60  ;;  %v5410_v30 = vcombine.high %v5390_v57, %v5406_v46  ;;  %v8116_v57 = vld [vmem:[%s8335_s2] ss:$0 sm:$0xff]  ;;  %s9597_s2 = scalar_lea.vmem %s9548_s19, %s8284_s23 }
 0xbc5   : > { %v7958_v25 = vpack.i.bf16 %v5409_v59, %v5341_v39  ;;  %v7953_v4 = vpack.i.bf16 %v5408_v61, %v5340_v1  ;;  %v7963_v20 = vpack.i.bf16 %v5410_v30, %v5342_v2  ;;  %v8117_v59 = vld [vmem:[%s8341_s26] ss:$0 sm:$0xff] }
 0xbc7   : > { %7959 = vrot.lane.b32.xlu1 %v7958_v25, %s8161_s4  ;;  %7954 = vrot.lane.b32.xlu0 %v7953_v4, %s8162_s20 }
 0xbcb   : > { %7964 = vrot.lane.b32.xlu1 %v7963_v20, %s8163_s3 }
 0xc39   : > { %v7960_v51 = vpop.permute.xlu1 %7959  ;;  %v7955_v13 = vpop.permute.xlu0 %7954 }
 0xc3a   : > { %v7957_v21 = vunpack.i.h.bf16 %v7955_v13  ;;  %v7956_v28 = vunpack.i.l.bf16 %v7955_v13  ;;  %v7962_v40 = vunpack.i.h.bf16 %v7960_v51  ;;  %v7961_v7 = vunpack.i.l.bf16 %v7960_v51 }
 0xc3c   : > { %v5435_v39 = vsel %vm1988_vm3, %v5339_v0, %v7956_v28  ;;  %v5436_v1 = vsel %vm1988_vm3, %v5407_v63, %v7957_v21  ;;  %v7980_v28 = vld [vmem:[%s9595_s6 + $0x28] sm:$0xff]   ;;  %vm6342_vm3 = vcmask 523264  }
 0xc3d   : > { %v7965_v14 = vpop.permute.xlu1 %7964  ;;  %v5437_v2 = vsel %vm3136_vm13, %v5435_v39, %v7961_v7  ;;  %v5438_v41 = vsel %vm3136_vm13, %v5436_v1, %v7962_v40  ;;  %v7981_v1 = vld [vmem:[%s9595_s6 + $0x38] sm:$0xff]  }
 0xc3e   : > { %v7967_v15 = vunpack.i.h.bf16 %v7965_v14  ;;  %v7966_v50 = vunpack.i.l.bf16 %v7965_v14 }
 0xc40   : > { %v5439_v16 = vsel %vm3139_vm14, %v5437_v2, %v7966_v50  ;;  %v5440_v18 = vsel %vm3139_vm14, %v5438_v41, %v7967_v15  ;;  %v7982_v2 = vld [vmem:[%s9595_s6 + $0x20] sm:$0xff]  }
 0xc41   : > { %v5441_v47 = vpack.c.bf16 %v5440_v18, %v5439_v16  ;;  %v7983_v16 = vld [vmem:[%s9595_s6 + $0x30] sm:$0xff]  }
 0xc43   : > { %7748 = vmatmul.mubr.msk.bf16.vlgmr.msra.gmra.mxu1 %vm925_vm2, %v5441_v47 }
 0xc44   : > { %7763 = vmatprep.mubr.msk.bf16.mxu1 %vm8155_vm1, %v8154_v3  ;;  %7760 = vmatpush3.bf16.msra.mxu1 %v7977_v45  ;;  %v7995_v45 = vld [vmem:[%s8359_s12 + $0x30] sm:$0xff]  }
 0xc45   : > { %7761 = vmatprep.subr.bf16.mxu1 %v8154_v3 }
 0xc48   : > { %7762 = vmatpush3.bf16.msra.mxu1 %v7979_v55  ;;  %v7997_v55 = vld [vmem:[%s8359_s12 + $0x28] sm:$0xff]  }
 0xc49   : > { %7775 = vmatprep.subr.bf16.mxu1 %v8154_v3 }
 0xd03   : > { %v5479_v58 = vpop.f32.mrf.mxu1 }
 0xd04   : > { %v5480_v0 = vadd.f32 %v8115_v62, %v5479_v58  ;;  %v7984_v58 = vld [vmem:[%s9595_s6 + $0x48] sm:$0xff]  }
 0xd05   : > { %v7749_v19 = vpop.f32.mrf.mxu1 }
 0xd06   : > { %v5486_v22 = vadd.f32 %v5480_v0, %v8879_v36  ;;  %v7985_v0 = vld [vmem:[%s9595_s6 + $0x58] sm:$0xff]  }
 0xd07   : > { %v5482_v27 = vpop.f32.mrf.mxu1 }
 0xd08   : > { %v5483_v12 = vadd.f32 %v8115_v62, %v5482_v27  ;;  %v5488_v29 = vsel %vm925_vm2, %v5486_v22, 0.0  ;;  %v7986_v27 = vld [vmem:[%s9595_s6 + $0x40] sm:$0xff]  }
 0xd09   : > { %5489 = vadd.xlane.f32.xlu0 %v5488_v29  ;;  %v7750_v33 = vpop.f32.mrf.mxu1 }
 0xd0a   : > { %v5487_v11 = vadd.f32 %v5483_v12, %v8881_v32  ;;  %v7976_v32 = vld [vmem:[%s9595_s6 + $0x8] sm:$0xff]   ;;  %v7987_v12 = vld [vmem:[%s9595_s6 + $0x50] sm:$0xff]  }
 0xd0b   : > { %7752 = vmatpush3.bf16.msra.mxu0 %v7976_v32  ;;  %v7994_v32 = vld [vmem:[%s8359_s12 + $0x10] sm:$0xff]  }
 0xd0c   : > { %v5491_v43 = vsel %vm925_vm2, %v5487_v11, 0.0  ;;  %7753 = vmatprep.subr.bf16.mxu0 %v8154_v3 }
 0xd0d   : > { %5492 = vadd.xlane.f32.xlu1 %v5491_v43 }
 0xd0f   : > { %7754 = vmatpush3.bf16.msra.mxu0 %v7978_v54  ;;  %v7996_v54 = vld [vmem:[%s8359_s12 + $0x8] sm:$0xff]  }
 0xd10   : > { %7767 = vmatprep.subr.bf16.mxu0 %v8154_v3 }
 0xd92   : > { %v5490_v44 = vpop.xlane.xlu0 %5489 }
 0xd93   : > { %v5494_v31 = vmul.f32 0.03125, %v5490_v44  ;;  %v7989_v44 = vld [vmem:[%s9595_s6 + $0x78] sm:$0xff]  }
 0xd95   : > { %v5496_v34 = vsub.f32 %v5486_v22, %v5494_v31 }
 0xd96   : > { %v5493_v10 = vpop.xlane.xlu1 %5492 }
 0xd97   : > { %v5495_v36 = vmul.f32 0.03125, %v5493_v10  ;;  %v5498_v48 = vmul.f32 %v5496_v34, %v5496_v34  ;;  %v7990_v10 = vld [vmem:[%s9595_s6 + $0x60] sm:$0xff]  }
 0xd99   : > { %v5497_v24 = vsub.f32 %v5487_v11, %v5495_v36  ;;  %v5500_v17 = vsel %vm925_vm2, %v5498_v48, 0.0  ;;  %v7988_v11 = vld [vmem:[%s9595_s6 + $0x68] sm:$0xff]   ;;  %v7991_v36 = vld [vmem:[%s9595_s6 + $0x70] sm:$0xff]  }
 0xd9a   : > { %5501 = vadd.xlane.f32.xlu0 %v5500_v17 }
 0xd9b   : > { %v5499_v5 = vmul.f32 %v5497_v24, %v5497_v24 }
 0xd9d   : > { %v5503_v52 = vsel %vm925_vm2, %v5499_v5, 0.0  ;;  %v7993_v5 = vld [vmem:[%s8359_s12 + $0x38] sm:$0xff]  }
 0xd9e   : > { %5504 = vadd.xlane.f32.xlu0 %v5503_v52 }
 0xe23   : > { %v5502_v26 = vpop.xlane.xlu0 %5501 }
 0xe24   : > { %v5506_v8 = vmul.f32 0.03125, %v5502_v26  ;;  %v7998_v26 = vld [vmem:[%s8359_s12] sm:$0xff]  }
 0xe26   : > { %v5508_v56 = vadd.f32 1e-05, %v5506_v8  ;;  %v7999_v8 = vld [vmem:[%s8359_s12 + $0x20] sm:$0xff]  }
 0xe27   : > { %v5505_v6 = vpop.xlane.xlu0 %5504 }
 0xe28   : > { %8094 = vrsqrt.f32 %v5508_v56  ;;  %v5507_v35 = vmul.f32 0.03125, %v5505_v6  ;;  %v8164_v56 = vmov 1966171168  }
 0xe29   : > { %v5693_v6 = vunpack.c.l.s4 %v8164_v56 }
 0xe2a   : > { %v5509_v37 = vadd.f32 1e-05, %v5507_v35 }
 0xe2b   : > { %v5694_v35 = vunpack.c.0.s8 %v5693_v6  ;;  %v8011_v6 = vld [vmem:[%s8359_s12 + $0x90] sm:$0xff]  }
 0xe2c   : > { %8096 = vrsqrt.f32 %v5509_v37 }
 0xe2d   : > { %v9385_v37 = vsub.s32 %v5694_v35, %v8447_v38 }
 0xe35   : > { %v8095_v23 = vpop.eup %8094 }
 0xe36   : > { %v5512_v9 = vmul.f32 %v8095_v23, %v5496_v34  ;;  %v5550_v23 = vld [vmem:[%s8353_s10] sm:$0xff] }
 0xe38   : > { %v5514_v46 = vmul.f32 %v8116_v57, %v5512_v9  ;;  %v5698_v9 = vrot.slane %v5550_v23, %v9385_v37 }
 0xe39   : > { %v8097_v53 = vpop.eup %8096 }
 0xe3a   : > { %v5513_v60 = vmul.f32 %v8097_v53, %v5497_v24  ;;  %v9298_v61 = vadd.f32 %v8117_v59, %v5514_v46  ;;  %v7992_v24 = vld [vmem:[%s8359_s12 + $0x18] sm:$0xff]   ;;  %v5714_v46 = vrot.slane %v5698_v9, %v9385_v37  ;;  %v9391_v53 = vsub.s32 0, %v8447_v38 }
 0xe3b   : > { %v8001_v38 = vld [vmem:[%s8359_s12 + $0x78] sm:$0xff]  }
 0xe3c   : > { %v5515_v63 = vmul.f32 %v8116_v57, %v5513_v60  ;;  %v5623_v4 = vrot.slane %v9298_v61, %v8450_v42  ;;  %v5616_v39 = vcombine.high %v9298_v61, %v8154_v3  ;;  %v5706_v57 = vcombine.high %v5698_v9, %v5698_v9 }
 0xe3e   : > { %v9300_v25 = vadd.f32 %v8117_v59, %v5515_v63  ;;  %v5630_v41 = vrot.slane %v5616_v39, %v8450_v42  ;;  %v5728_v60 = vrot.slane %v5706_v57, %v9385_v37  ;;  %v5743_v59 = vrot.slane %v5714_v46, %v9391_v53  ;;  %v8012_v57 = vld [vmem:[%s8359_s12 + $0xb0] sm:$0xff]  }
 0xe40   : > { %v5638_v30 = vrot.slane %v9300_v25, %v8450_v42  ;;  %v5631_v21 = vcombine.high %v9300_v25, %v8154_v3  ;;  %v5747_v63 = vrot.slane %v5728_v60, %v9391_v53 }
 0xe42   : > { %v5646_v20 = vcombine.low %v5623_v4, %v5638_v30  ;;  %v5647_v13 = vcombine.high %v5623_v4, %v5638_v30  ;;  %v5645_v50 = vrot.slane %v5631_v21, %v8450_v42 }
 0xe44   : > { %v5654_v51 = vrot.slane %v5646_v20, %v8453_v49  ;;  %v5661_v15 = vrot.slane %v5647_v13, %v8453_v49  ;;  %v5662_v47 = vcombine.low %v5630_v41, %v5645_v50  ;;  %v5663_v33 = vcombine.high %v5630_v41, %v5645_v50  ;;  %v8000_v13 = vld [vmem:[%s8359_s12 + $0x58] sm:$0xff]  }
 0xe45   : > { %v5736_v50 = vcombine.high %v5714_v46, %v5714_v46 }
 0xe46   : > { %v5682_v40 = vpack.c.bf16 %v5654_v51, %v5654_v51  ;;  %v5678_v7 = vcombine.high %v5654_v51, %v8154_v3  ;;  %v5679_v18 = vcombine.high %v5661_v15, %v8154_v3  ;;  %v5684_v62 = vpack.c.bf16 %v5661_v15, %v5661_v15  ;;  %v8002_v15 = vld [vmem:[%s8359_s12 + $0x50] sm:$0xff]  }
 0xe47   : > { %v5670_v22 = vrot.slane %v5662_v47, %v8453_v49  ;;  %v5677_v34 = vrot.slane %v5663_v33, %v8453_v49 }
 0xe48   : > { %7756 = vmatmul.mubr.msk.bf16.vlgmr.msra.gmra.mxu0 %vm925_vm2, %v5682_v40  ;;  %v5683_v14 = vpack.c.bf16 %v5678_v7, %v5678_v7  ;;  %v5685_v19 = vpack.c.bf16 %v5679_v18, %v5679_v18  ;;  %v5738_v18 = vcombine.high %v5728_v60, %v5728_v60 }
 0xe49   : > { %7768 = vmatpush3.bf16.msra.mxu0 %v7980_v28  ;;  %7771 = vmatprep.mubr.msk.bf16.mxu0 %vm8155_vm1, %v8154_v3  ;;  %v5680_v29 = vcombine.high %v5670_v22, %v8154_v3  ;;  %v5686_v43 = vpack.c.bf16 %v5670_v22, %v5670_v22  ;;  %v5681_v48 = vcombine.high %v5677_v34, %v8154_v3 }
 0xe4a   : > { %7764 = vmatmul.mubr.msk.bf16.vlgmr.msra.gmra.mxu1 %vm925_vm2, %v5683_v14  ;;  %7769 = vmatprep.subr.bf16.mxu0 %v8154_v3  ;;  %v5688_v17 = vpack.c.bf16 %v5677_v34, %v5677_v34 }
 0xe4b   : > { %7776 = vmatpush3.bf16.msra.mxu1 %v7981_v1  ;;  %7779 = vmatprep.mubr.msk.bf16.mxu1 %vm8155_vm1, %v8154_v3  ;;  %v5687_v31 = vpack.c.bf16 %v5680_v29, %v5680_v29  ;;  %v5689_v52 = vpack.c.bf16 %v5681_v48, %v5681_v48  ;;  %v5691_v29 = vcombine.high %v5550_v23, %v5550_v23 }
 0xe4c   : > { %7777 = vmatprep.subr.bf16.mxu1 %v8154_v3 }
 0xe4d   : > { %7770 = vmatpush3.bf16.msra.mxu0 %v7982_v2  ;;  %v5705_v48 = vrot.slane %v5691_v29, %v9385_v37 }
 0xe4e   : > { %7783 = vmatprep.subr.bf16.mxu0 %v8154_v3 }
 0xe4f   : > { %7778 = vmatpush3.bf16.msra.mxu1 %v7983_v16  ;;  %v8003_v16 = vld [vmem:[%s8359_s12 + $0x70] sm:$0xff]   ;;  %v5721_v35 = vrot.slane %v5705_v48, %v9385_v37 }
 0xe50   : > { %7772 = vmatmul.mubr.msk.bf16.vlgmr.msra.gmra.mxu0 %vm925_vm2, %v5684_v62  ;;  %7791 = vmatprep.subr.bf16.mxu1 %v8154_v3  ;;  %v8004_v62 = vld [vmem:[%s8359_s12 + $0x48] sm:$0xff]  }
 0xe51   : > { %7784 = vmatpush3.bf16.msra.mxu0 %v7984_v58  ;;  %7787 = vmatprep.mubr.msk.bf16.mxu0 %vm8155_vm1, %v8154_v3 }
 0xe52   : > { %7780 = vmatmul.mubr.msk.bf16.vlgmr.msra.gmra.mxu1 %vm925_vm2, %v5685_v19  ;;  %7785 = vmatprep.subr.bf16.mxu0 %v8154_v3 }
 0xe53   : > { %7792 = vmatpush3.bf16.msra.mxu1 %v7985_v0  ;;  %7795 = vmatprep.mubr.msk.bf16.mxu1 %vm8155_vm1, %v8154_v3  ;;  %v5751_v0 = vrot.slane %v5736_v50, %v9391_v53  ;;  %v8018_v50 = vld [vmem:[%s8359_s12 + $0xf8] sm:$0xff]  }
 0xe54   : > { %7793 = vmatprep.subr.bf16.mxu1 %v8154_v3 }
 0xe55   : > { %7786 = vmatpush3.bf16.msra.mxu0 %v7986_v27  ;;  %v8005_v27 = vld [vmem:[%s8359_s12 + $0x68] sm:$0xff]  }
 0xe56   : > { %7799 = vmatprep.subr.bf16.mxu0 %v8154_v3 }
 0xe57   : > { %7794 = vmatpush3.bf16.msra.mxu1 %v7987_v12  ;;  %v5755_v12 = vrot.slane %v5738_v18, %v9391_v53  ;;  %v8020_v18 = vld [vmem:[%s8359_s12 + $0xf0] sm:$0xff]  }
 0xe58   : > { %7788 = vmatmul.mubr.msk.bf16.vlgmr.msra.gmra.mxu0 %vm925_vm2, %v5686_v43  ;;  %7807 = vmatprep.subr.bf16.mxu1 %v8154_v3  ;;  %v8007_v43 = vld [vmem:[%s8359_s12 + $0x40] sm:$0xff]  }
 0xe59   : > { %7800 = vmatpush3.bf16.msra.mxu0 %v7988_v11  ;;  %7803 = vmatprep.mubr.msk.bf16.mxu0 %vm8155_vm1, %v8154_v3 }
 0xe5a   : > { %7796 = vmatmul.mubr.msk.bf16.vlgmr.msra.gmra.mxu1 %vm925_vm2, %v5687_v31  ;;  %7801 = vmatprep.subr.bf16.mxu0 %v8154_v3 }
 0xe5b   : > { %7808 = vmatpush3.bf16.msra.mxu1 %v7989_v44  ;;  %7811 = vmatprep.mubr.msk.bf16.mxu1 %vm8155_vm1, %v8154_v3 }
 0xe5c   : > { %7809 = vmatprep.subr.bf16.mxu1 %v8154_v3 }
 0xe5d   : > { %7802 = vmatpush3.bf16.msra.mxu0 %v7990_v10  ;;  %v8008_v10 = vld [vmem:[%s8359_s12 + $0x60] sm:$0xff]  }
 0xe5e   : > { %7815 = vmatprep.subr.bf16.mxu0 %v8154_v3 }
 0xe5f   : > { %7810 = vmatpush3.bf16.msra.mxu1 %v7991_v36 }
 0xe60   : > { %7804 = vmatmul.mubr.msk.bf16.vlgmr.msra.gmra.mxu0 %vm925_vm2, %v5688_v17  ;;  %7827 = vmatprep.subr.bf16.mxu1 %v8154_v3 }
 0xe61   : > { %7816 = vmatpush3.bf16.msra.mxu0 %v7992_v24  ;;  %7823 = vmatprep.mubr.msk.bf16.mxu0 %vm8155_vm1, %v8154_v3 }
 0xe62   : > { %7812 = vmatmul.mubr.msk.bf16.vlgmr.msra.gmra.mxu1 %vm925_vm2, %v5689_v52  ;;  %7817 = vmatprep.subr.bf16.mxu0 %v8154_v3 }
 0xe63   : > { %7828 = vmatpush3.bf16.msra.mxu1 %v7993_v5  ;;  %7835 = vmatprep.mubr.msk.bf16.mxu1 %vm8155_vm1, %v8154_v3  ;;  %v8009_v5 = vld [vmem:[%s8359_s12 + $0x98] sm:$0xff]  }
 0xe64   : > { %7829 = vmatprep.subr.bf16.mxu1 %v8154_v3 }
 0xe65   : > { %7818 = vmatpush3.bf16.msra.mxu0 %v7994_v32 }
 0xe66   : > { %7819 = vmatprep.subr.bf16.mxu0 %v8154_v3 }
 0xe67   : > { %7830 = vmatpush3.bf16.msra.mxu1 %v7995_v45 }
 0xe68   : > { %7831 = vmatprep.subr.bf16.mxu1 %v8154_v3 }
 0xe69   : > { %7820 = vmatpush3.bf16.msra.mxu0 %v7996_v54  ;;  %v8010_v54 = vld [vmem:[%s8359_s12 + $0xb8] sm:$0xff]  }
 0xe6a   : > { %7821 = vmatprep.subr.bf16.mxu0 %v8154_v3 }
 0xe6b   : > { %7832 = vmatpush3.bf16.msra.mxu1 %v7997_v55 }
 0xe6c   : > { %7833 = vmatprep.subr.bf16.mxu1 %v8154_v3 }
 0xe6d   : > { %7822 = vmatpush3.bf16.msra.mxu0 %v7998_v26  ;;  %v5707_v26 = vcombine.high %v5705_v48, %v5705_v48 }
 0xe6e   : > { %7839 = vmatprep.subr.bf16.mxu0 %v8154_v3 }
 0xe6f   : > { %7834 = vmatpush3.bf16.msra.mxu1 %v7999_v8  ;;  %v5735_v46 = vrot.slane %v5707_v26, %v9385_v37 }
 0xe70   : > { %7851 = vmatprep.subr.bf16.mxu1 %v8154_v3 }
 0xf08   : > { %v5829_v4 = vpop.f32.mrf.mxu0 }
 0xf09   : > { %v5830_v30 = vadd.f32 %v5829_v4, %v5743_v59  ;;  %v5759_v4 = vrot.slane %v5721_v35, %v9391_v53 }
 0xf0a   : > { %v7757_v20 = vpop.f32.mrf.mxu0  ;;  %v5884_v51 = vpop.f32.mrf.mxu1 }
 0xf0b   : > { %v6220_v21 = vpack.c.bf16 %v5830_v30, %v5830_v30  ;;  %v5885_v28 = vadd.f32 %v5884_v51, %v5747_v63  ;;  %v8013_v63 = vld [vmem:[%s8359_s12 + $0x88] sm:$0xff]  }
 0xf0c   : > { %v5832_v40 = vpop.f32.mrf.mxu0  ;;  %v7765_v7 = vpop.f32.mrf.mxu1  ;;  %v8014_v51 = vld [vmem:[%s8359_s12 + $0xa8] sm:$0xff]  }
 0xf0d   : > { %v6221_v39 = vpack.c.bf16 %v5885_v28, %v5885_v28  ;;  %7824 = vmatmul.mubr.msk.bf16.vlgmr.msra.gmra.mxu0 %vm6342_vm3, %v6220_v21  ;;  %v8015_v40 = vld [vmem:[%s8359_s12 + $0x80] sm:$0xff]  }
 0xf0e   : > { %7840 = vmatpush3.bf16.msra.mxu0 %v8000_v13  ;;  %v7758_v1 = vpop.f32.mrf.mxu0  ;;  %v5887_v14 = vpop.f32.mrf.mxu1  ;;  %7847 = vmatprep.mubr.msk.bf16.mxu0 %vm8155_vm1, %v8154_v3  ;;  %v5763_v13 = vrot.slane %v5735_v46, %v9391_v53 }
 0xf0f   : > { %7836 = vmatmul.mubr.msk.bf16.vlgmr.msra.gmra.mxu1 %vm6342_vm3, %v6221_v39  ;;  %7841 = vmatprep.subr.bf16.mxu0 %v8154_v3  ;;  %v8016_v39 = vld [vmem:[%s8359_s12 + $0xa0] sm:$0xff]   ;;  %v8017_v14 = vld [vmem:[%s8359_s12 + $0xd8] sm:$0xff]  }
 0xf10   : > { %7852 = vmatpush3.bf16.msra.mxu1 %v8001_v38  ;;  %v7766_v2 = vpop.f32.mrf.mxu1  ;;  %v5939_v41 = vpop.f32.mrf.mxu0  ;;  %7859 = vmatprep.mubr.msk.bf16.mxu1 %vm8155_vm1, %v8154_v3 }
 0xf11   : > { %7853 = vmatprep.subr.bf16.mxu1 %v8154_v3  ;;  %v5940_v44 = vadd.f32 %v5939_v41, %v5751_v0  ;;  %v8019_v41 = vld [vmem:[%s8359_s12 + $0xd0] sm:$0xff]   ;;  %v8022_v0 = vld [vmem:[%s8359_s12 + $0xe8] sm:$0xff]  }
 0xf12   : > { %7842 = vmatpush3.bf16.msra.mxu0 %v8002_v15  ;;  %v7773_v47 = vpop.f32.mrf.mxu0  ;;  %v5994_v58 = vpop.f32.mrf.mxu1 }
 0xf13   : > { %7843 = vmatprep.subr.bf16.mxu0 %v8154_v3  ;;  %v5995_v36 = vadd.f32 %v5994_v58, %v5755_v12  ;;  %v6222_v52 = vpack.c.bf16 %v5940_v44, %v5940_v44  ;;  %v5739_v47 = vcombine.high %v5735_v46, %v5735_v46  ;;  %v8021_v58 = vld [vmem:[%s8359_s12 + $0xc8] sm:$0xff]   ;;  %v8024_v12 = vld [vmem:[%s8359_s12 + $0xe0] sm:$0xff]  }
 0xf14   : > { %7854 = vmatpush3.bf16.msra.mxu1 %v8003_v16  ;;  %v5942_v19 = vpop.f32.mrf.mxu0  ;;  %v7781_v22 = vpop.f32.mrf.mxu1  ;;  %v5737_v16 = vcombine.high %v5721_v35, %v5721_v35 }
 0xf15   : > { %7855 = vmatprep.subr.bf16.mxu1 %v8154_v3  ;;  %v6223_v55 = vpack.c.bf16 %v5995_v36, %v5995_v36  ;;  %v5771_v19 = vrot.slane %v5739_v47, %v9391_v53  ;;  %v8023_v22 = vld [vmem:[%s8359_s12 + $0xc0] sm:$0xff]  }
 0xf16   : > { %7844 = vmatpush3.bf16.msra.mxu0 %v8004_v62  ;;  %v7774_v33 = vpop.f32.mrf.mxu0  ;;  %v5997_v11 = vpop.f32.mrf.mxu1  ;;  %v5767_v62 = vrot.slane %v5737_v16, %v9391_v53 }
 0xf17   : > { %7845 = vmatprep.subr.bf16.mxu0 %v8154_v3 }
 0xf18   : > { %7856 = vmatpush3.bf16.msra.mxu1 %v8005_v27  ;;  %v7782_v31 = vpop.f32.mrf.mxu1  ;;  %v6049_v34 = vpop.f32.mrf.mxu0 }
 0xf19   : > { %7857 = vmatprep.subr.bf16.mxu1 %v8154_v3  ;;  %v6050_v7 = vadd.f32 %v6049_v34, %v5759_v4 }
 0xf1a   : > { %7846 = vmatpush3.bf16.msra.mxu0 %v8007_v43  ;;  %v7789_v24 = vpop.f32.mrf.mxu0  ;;  %v6104_v17 = vpop.f32.mrf.mxu1 }
 0xf1b   : > { %7863 = vmatprep.subr.bf16.mxu0 %v8154_v3  ;;  %v6105_v1 = vadd.f32 %v6104_v17, %v5763_v13  ;;  %v6224_v15 = vpack.c.bf16 %v6050_v7, %v6050_v7 }
 0xf1c   : > { %7858 = vmatpush3.bf16.msra.mxu1 %v8008_v10  ;;  %v6052_v32 = vpop.f32.mrf.mxu0  ;;  %v7797_v45 = vpop.f32.mrf.mxu1 }
 0xf1d   : > { %7848 = vmatmul.mubr.msk.bf16.vlgmr.msra.gmra.mxu0 %vm6342_vm3, %v6222_v52  ;;  %7875 = vmatprep.subr.bf16.mxu1 %v8154_v3  ;;  %v6225_v2 = vpack.c.bf16 %v6105_v1, %v6105_v1  ;;  %v5615_v45 = vld [vmem:[%s8364_s13] sm:$0xff]  ;;  %s9596_s13 = scalar_lea.vmem %s9547_s18, %s8284_s23 }
 0xf1e   : > { %7864 = vmatpush3.bf16.msra.mxu0 %v8009_v5  ;;  %v7790_v8 = vpop.f32.mrf.mxu0  ;;  %v6107_v56 = vpop.f32.mrf.mxu1  ;;  %7871 = vmatprep.mubr.msk.bf16.mxu0 %vm8155_vm1, %v8154_v3 }
 0xf1f   : > { %7860 = vmatmul.mubr.msk.bf16.vlgmr.msra.gmra.mxu1 %vm6342_vm3, %v6223_v55  ;;  %7865 = vmatprep.subr.bf16.mxu0 %v8154_v3  ;;  %v6236_v8 = vrot.slane %v5615_v45, %v9385_v37 }
 0xf20   : > { %7876 = vmatpush3.bf16.msra.mxu1 %v8010_v54  ;;  %v7798_v23 = vpop.f32.mrf.mxu1  ;;  %v6159_v9 = vpop.f32.mrf.mxu0  ;;  %7883 = vmatprep.mubr.msk.bf16.mxu1 %vm8155_vm1, %v8154_v3 }
 0xf21   : > { %7877 = vmatprep.subr.bf16.mxu1 %v8154_v3  ;;  %v6160_v27 = vadd.f32 %v6159_v9, %v5767_v62  ;;  %v6244_v56 = vcombine.high %v6236_v8, %v6236_v8 }
 0xf22   : > { %7866 = vmatpush3.bf16.msra.mxu0 %v8011_v6  ;;  %v7805_v60 = vpop.f32.mrf.mxu0  ;;  %v6214_v59 = vpop.f32.mrf.mxu1  ;;  %v6229_v6 = vcombine.high %v5615_v45, %v5615_v45 }
 0xf23   : > { %7867 = vmatprep.subr.bf16.mxu0 %v8154_v3  ;;  %v6215_v29 = vadd.f32 %v6214_v59, %v5771_v19  ;;  %v6226_v33 = vpack.c.bf16 %v6160_v27, %v6160_v27  ;;  %v6266_v23 = vrot.slane %v6244_v56, %v9385_v37  ;;  %v6252_v60 = vrot.slane %v6236_v8, %v9385_v37 }
 0xf24   : > { %7878 = vmatpush3.bf16.msra.mxu1 %v8012_v57  ;;  %v6162_v30 = vpop.f32.mrf.mxu0  ;;  %v7813_v20 = vpop.f32.mrf.mxu1  ;;  %v6243_v9 = vrot.slane %v6229_v6, %v9385_v37 }
 0xf25   : > { %7879 = vmatprep.subr.bf16.mxu1 %v8154_v3  ;;  %v6227_v11 = vpack.c.bf16 %v6215_v29, %v6215_v29  ;;  %v6276_v59 = vcombine.high %v6266_v23, %v6266_v23  ;;  %v6274_v30 = vcombine.high %v6252_v60, %v6252_v60  ;;  %v6285_v7 = vrot.slane %v6266_v23, %v9391_v53 }
 0xf26   : > { %7868 = vmatpush3.bf16.msra.mxu0 %v8013_v63  ;;  %v7806_v21 = vpop.f32.mrf.mxu0  ;;  %v6217_v28 = vpop.f32.mrf.mxu1  ;;  %v6245_v20 = vcombine.high %v6243_v9, %v6243_v9 }
 0xf27   : > { %7869 = vmatprep.subr.bf16.mxu0 %v8154_v3  ;;  %v6293_v21 = vrot.slane %v6276_v59, %v9391_v53  ;;  %v6259_v28 = vrot.slane %v6243_v9, %v9385_v37 }
 0xf28   : > { %7880 = vmatpush3.bf16.msra.mxu1 %v8014_v51  ;;  %v7814_v38 = vpop.f32.mrf.mxu1 }
 0xf29   : > { %7881 = vmatprep.subr.bf16.mxu1 %v8154_v3  ;;  %v6289_v38 = vrot.slane %v6274_v30, %v9391_v53  ;;  %v6275_v1 = vcombine.high %v6259_v28, %v6259_v28  ;;  %v6297_v16 = vrot.slane %v6259_v28, %v9391_v53 }
 0xf2a   : > { %7870 = vmatpush3.bf16.msra.mxu0 %v8015_v40 }
 0xf2b   : > { %7887 = vmatprep.subr.bf16.mxu0 %v8154_v3 }
 0xf2c   : > { %7882 = vmatpush3.bf16.msra.mxu1 %v8016_v39  ;;  %v6273_v39 = vrot.slane %v6245_v20, %v9385_v37 }
 0xf2d   : > { %7872 = vmatmul.mubr.msk.bf16.vlgmr.msra.gmra.mxu0 %vm6342_vm3, %v6224_v15  ;;  %7899 = vmatprep.subr.bf16.mxu1 %v8154_v3 }
 0xf2e   : > { %7888 = vmatpush3.bf16.msra.mxu0 %v8017_v14  ;;  %7895 = vmatprep.mubr.msk.bf16.mxu0 %vm8155_vm1, %v8154_v3  ;;  %v6281_v14 = vrot.slane %v6252_v60, %v9391_v53  ;;  %v6301_v62 = vrot.slane %v6273_v39, %v9391_v53 }
 0xf2f   : > { %7884 = vmatmul.mubr.msk.bf16.vlgmr.msra.gmra.mxu1 %vm6342_vm3, %v6225_v2  ;;  %7889 = vmatprep.subr.bf16.mxu0 %v8154_v3 }
 0xf30   : > { %7900 = vmatpush3.bf16.msra.mxu1 %v8018_v50  ;;  %7907 = vmatprep.mubr.msk.bf16.mxu1 %vm8155_vm1, %v8154_v3  ;;  %v6277_v50 = vcombine.high %v6273_v39, %v6273_v39 }
 0xf31   : > { %7901 = vmatprep.subr.bf16.mxu1 %v8154_v3 }
 0xf32   : > { %7890 = vmatpush3.bf16.msra.mxu0 %v8019_v41 }
 0xf33   : > { %7891 = vmatprep.subr.bf16.mxu0 %v8154_v3 }
 0xf34   : > { %7902 = vmatpush3.bf16.msra.mxu1 %v8020_v18  ;;  %v6305_v18 = vrot.slane %v6275_v1, %v9391_v53 }
 0xf35   : > { %7903 = vmatprep.subr.bf16.mxu1 %v8154_v3 }
 0xf36   : > { %7892 = vmatpush3.bf16.msra.mxu0 %v8021_v58 }
 0xf37   : > { %7893 = vmatprep.subr.bf16.mxu0 %v8154_v3 }
 0xf38   : > { %7904 = vmatpush3.bf16.msra.mxu1 %v8022_v0  ;;  %v6309_v0 = vrot.slane %v6277_v50, %v9391_v53 }
 0xf39   : > { %7905 = vmatprep.subr.bf16.mxu1 %v8154_v3 }
 0xf3a   : > { %7894 = vmatpush3.bf16.msra.mxu0 %v8023_v22 }
 0xf3c   : > { %7906 = vmatpush3.bf16.msra.mxu1 %v8024_v12 }
 0xf3d   : > { %7896 = vmatmul.mubr.msk.bf16.vlgmr.msra.gmra.mxu0 %vm6342_vm3, %v6226_v33 }
 0xf3f   : > { %7908 = vmatmul.mubr.msk.bf16.vlgmr.msra.gmra.mxu1 %vm6342_vm3, %v6227_v11 }
 0xfcd   : > { %v6380_v43 = vpop.f32.mrf.mxu0 }
 0xfce   : > { %v6381_v47 = vadd.f32 %v6380_v43, %v6281_v14 }
 0xfcf   : > { %v7825_v44 = vpop.f32.mrf.mxu0  ;;  %v6447_v31 = vpop.f32.mrf.mxu1 }
 0xfd0   : > { %v6448_v2 = vadd.f32 %v6447_v31, %v6285_v7  ;;  %v7331_v7 = vld [vmem:[%s9597_s2] ss:$0 sm:$0xff] }
 0xfd1   : > { %v6383_v34 = vpop.f32.mrf.mxu0  ;;  %v7837_v10 = vpop.f32.mrf.mxu1 }
 0xfd3   : > { %v7826_v36 = vpop.f32.mrf.mxu0  ;;  %v6450_v48 = vpop.f32.mrf.mxu1 }
 0xfd5   : > { %v7838_v24 = vpop.f32.mrf.mxu1 }
 0xfdd   : > { %v6514_v17 = vpop.f32.mrf.mxu0 }
 0xfde   : > { %v6515_v41 = vadd.f32 %v6514_v17, %v6289_v38 }
 0xfdf   : > { %v7849_v5 = vpop.f32.mrf.mxu0  ;;  %v6581_v3 = vpop.f32.mrf.mxu1 }
 0xfe0   : > { %v6582_v15 = vadd.f32 %v6581_v3, %v6293_v21  ;;  %v6855_v22 = vcombine.low %v6381_v47, %v6515_v41  ;;  %v7330_v21 = vld [vmem:[%s9596_s13] ss:$0 sm:$0xff] }
 0xfe1   : > { %v6517_v52 = vpop.f32.mrf.mxu0  ;;  %v7861_v32 = vpop.f32.mrf.mxu1 }
 0xfe2   : > { %v6863_v58 = vcombine.low %v6448_v2, %v6582_v15  ;;  %v6862_v43 = vrot.slane %v6855_v22, %v8450_v42 }
 0xfe3   : > { %v7850_v54 = vpop.f32.mrf.mxu0  ;;  %v6584_v55 = vpop.f32.mrf.mxu1 }
 0xfe4   : > { %v6870_v33 = vrot.slane %v6863_v58, %v8450_v42 }
 0xfe5   : > { %v7862_v26 = vpop.f32.mrf.mxu1 }
 0xfe6   : > { %v6887_v17 = vcombine.low %v6862_v43, %v6870_v33 }
 0xfe8   : > { %v6894_v32 = vrot.slane %v6887_v17, %v8453_v49 }
 0xfed   : > { %v6648_v35 = vpop.f32.mrf.mxu0 }
 0xfee   : > { %v6649_v37 = vadd.f32 %v6648_v35, %v6297_v16 }
 0xfef   : > { %v7873_v57 = vpop.f32.mrf.mxu0  ;;  %v6715_v46 = vpop.f32.mrf.mxu1 }
 0xff0   : > { %v6716_v11 = vadd.f32 %v6715_v46, %v6301_v62 }
 0xff1   : > { %v6651_v63 = vpop.f32.mrf.mxu0  ;;  %v7885_v4 = vpop.f32.mrf.mxu1 }
 0xff3   : > { %v7874_v51 = vpop.f32.mrf.mxu0  ;;  %v6718_v13 = vpop.f32.mrf.mxu1 }
 0xff5   : > { %v7886_v40 = vpop.f32.mrf.mxu1 }
 0xffd   : > { %v6782_v19 = vpop.f32.mrf.mxu0 }
 0xffe   : > { %v6783_v27 = vadd.f32 %v6782_v19, %v6305_v18 }
 0xfff   : > { %v7897_v12 = vpop.f32.mrf.mxu0  ;;  %v6849_v29 = vpop.f32.mrf.mxu1 }
0x1000   : > { %v6871_v44 = vcombine.low %v6649_v37, %v6783_v27  ;;  %v6850_v31 = vadd.f32 %v6849_v29, %v6309_v0 }
0x1001   : > { %v6785_v34 = vpop.f32.mrf.mxu0  ;;  %v7909_v10 = vpop.f32.mrf.mxu1 }
0x1002   : > { %v6879_v36 = vcombine.low %v6716_v11, %v6850_v31  ;;  %v6878_v53 = vrot.slane %v6871_v44, %v8450_v42 }
0x1003   : > { %v7898_v48 = vpop.f32.mrf.mxu0  ;;  %v6852_v24 = vpop.f32.mrf.mxu1 }
0x1004   : > { %v6886_v5 = vrot.slane %v6879_v36, %v8450_v42 }
0x1005   : > { %v7910_v3 = vpop.f32.mrf.mxu1 }
0x1006   : > { %v6895_v52 = vcombine.low %v6878_v53, %v6886_v5 }
0x1008   : > { %v6902_v45 = vrot.slane %v6895_v52, %v8453_v49 }
0x100a   : > { %v6904_v54 = vcombine.high %v6894_v32, %v6902_v45  ;;  %v6903_v55 = vcombine.low %v6894_v32, %v6902_v45 }
0x100c   : > { %v6906_v26 = vadd.f32 %v6904_v54, %v9300_v25  ;;  %v6905_v8 = vadd.f32 %v6903_v55, %v9298_v61 }
0x100e   : > { %v6910_v56 = vsel %vm925_vm2, %v6906_v26, 0.0  ;;  %v6907_v6 = vsel %vm925_vm2, %v6905_v8, 0.0 }
0x100f   : > { %6911 = vadd.xlane.f32.xlu0 %v6910_v56  ;;  %6908 = vadd.xlane.f32.xlu1 %v6907_v6 }
0x1098   : > { %v6912_v35 = vpop.xlane.xlu0 %6911  ;;  %v6909_v42 = vpop.xlane.xlu1 %6908 }
0x1099   : > { %v6914_v23 = vmul.f32 0.03125, %v6912_v35  ;;  %v6913_v9 = vmul.f32 0.03125, %v6909_v42 }
0x109b   : > { %v6916_v57 = vsub.f32 %v6906_v26, %v6914_v23  ;;  %v6915_v46 = vsub.f32 %v6905_v8, %v6913_v9 }
0x109d   : > { %v6918_v49 = vmul.f32 %v6916_v57, %v6916_v57  ;;  %v6917_v60 = vmul.f32 %v6915_v46, %v6915_v46 }
0x109f   : > { %v6922_v59 = vsel %vm925_vm2, %v6918_v49, 0.0  ;;  %v6919_v61 = vsel %vm925_vm2, %v6917_v60, 0.0 }
0x10a0   : > { %6923 = vadd.xlane.f32.xlu0 %v6922_v59  ;;  %6920 = vadd.xlane.f32.xlu1 %v6919_v61 }
0x1129   : > { %v6924_v25 = vpop.xlane.xlu0 %6923  ;;  %v6921_v63 = vpop.xlane.xlu1 %6920 }
0x112a   : > { %v6926_v4 = vmul.f32 0.03125, %v6924_v25  ;;  %v6925_v30 = vmul.f32 0.03125, %v6921_v63 }
0x112c   : > { %v6928_v20 = vadd.f32 1e-05, %v6926_v4  ;;  %v6927_v51 = vadd.f32 1e-05, %v6925_v30 }
0x112e   : > { %8098 = vrsqrt.f32 %v6928_v20 }
0x112f   : > { %8100 = vrsqrt.f32 %v6927_v51 }
0x113b   : > { %v8099_v13 = vpop.eup %8098 }
0x113c   : > { %v8101_v28 = vpop.eup %8100  ;;  %v6932_v40 = vmul.f32 %v8099_v13, %v6916_v57 }
0x113d   : > { %v6931_v38 = vmul.f32 %v8101_v28, %v6915_v46 }
0x113e   : > { %v6940_v39 = vmul.f32 %v7330_v21, %v6932_v40 }
0x113f   : > { %v6939_v1 = vmul.f32 %v7330_v21, %v6931_v38  ;;  %6954 = sbr.rel (%p7332_p5) target bundleno = 4421 (0x1145), region = 108 }
0x1140   : > { %v6948_v14 = vadd.f32 %v7331_v7, %v6940_v39 }
0x1141   : > { %v6947_v15 = vadd.f32 %v7331_v7, %v6939_v1 }
0x1142   : > { %6950 = vst.msk [vmem:[#allocation2 + $0x8] sm:$0xff] %vm925_vm2, %v6948_v14 }
0x1143   : > { %6949 = vst.msk [vmem:[#allocation2] sm:$0xff] %vm925_vm2, %v6947_v15 }
0x1144   : > { %6955 = vst.msk [vmem:[#allocation3] sm:$0xff] %vm925_vm2, %v6947_v15  ;;  %6956 = vst.msk [vmem:[#allocation3 + $0x8] sm:$0xff] %vm925_vm2, %v6948_v14 }
0x1145 PF: > { %p7915_p6 = scmp.eq.s32.totalorder %s8278_s22, 1  ;;  %s8165_s23 = smov [#allocation3]  }
0x1146   : > { %s6963_s26 = sshll.u32 %s8165_s23, 4  ;;  %s6964_s26 = int_to_ptr.vmem [resolvable:$true] %s6963_s26 }
0x1147   : > { %s8118_s30 = scalar_lea.vmem %s6964_s26, 256  ;;  %p8125_p10 = scmp.lt.s32.totalorder %s6964_s26, %s6964_s26 }
0x1148   : > { %p8119_p7 = scmp.ne.s32.totalorder %s6964_s26, %s8118_s30  ;;  %p8126_p11 = scmp.lt.s32.totalorder %s8118_s30, %s8118_s30 }
0x114a   : > { %p8120_p8 = pnand %p8119_p7, %p7915_p6  ;;  %p8127_p12 = por %p8126_p11, %p8125_p10 }
0x114c   : > { %p8121_p9 = pneg %p8120_p8 }
0x114e   : > { %p8128_p13 = pnand %p8127_p12, %p8121_p9 }
0x1150   : > { %8131 = shalt.err (!%p8128_p13)
}
0x1151   : > { %s8166_s25 = smov 128   ;;  %s9598_s3 = sld [smem:[#allocation25_spill]] }
0x1157   : > { %7912 = dma.vmem_to_hbm [thread:$0]  (%p7915_p6), %s6964_s26, 256, %s9598_s3, [#allocation4], %s8166_s25, %s8166_s25, %s8162_s20  }
0x1158   : > { %8147 = dma.done.wait (%p7915_p6), [#allocation4], 256  }
0x1159   : > { %8149 = vsyncadd (%p7915_p6), [#allocation4], 4294967040 }
0x115a PF: > { %s9599_s8 = sld [smem:[#allocation6_spill]] }
0x1160   : > { %s31_s1 = sadd.s32 1, %s9599_s8  }
0x1161   : > { %p28_p0 = scmp.ge.s32.totalorder %s31_s1, 4  }
0x1163   :  { %30 = sbr.rel (!%p28_p0) target bundleno = 18 (0x12), region = 180 }
0x1168   :  { %6979 = vsyncpa [#allocation4], 1 }
0x1169   :  { %6981 = vsyncpa [#allocation4 + $0x1], 1 }

</bundles_post_ra>
